<compile_context>
chip_gen: v7x
topology: tpu7x:2x2x1
jax: 0.10.0
libtpu: 0.0.40
codegen_flags: <defaults>
</compile_context>

<pallas_src>
import functools

import jax
import jax.numpy as jnp
from jax.experimental import pallas as pl
from jax.experimental.pallas import tpu as pltpu


def _round_up(a, b):
    return pl.cdiv(a, b) * b


def _pick_hidden_chunk(H, requested):
    """Largest multiple of 128 <= requested that divides H (falls back to H)."""
    if H % 128 != 0:
        return H
    th = (max(128, min(int(requested), H)) // 128) * 128
    while H % th != 0:
        th -= 128
    return th


def _estimate_vmem_bytes(tm, th, D, x_isize, out_isize, mm_isize):
    # double-buffered pipeline buffers + scratch + live (tm, th) intermediates
    buffered = 2 * (tm * D * x_isize + tm * D * out_isize
                    + D * th * mm_isize + th * 4
                    + th * D * mm_isize + D * 4)
    scratch = tm * D * mm_isize + tm * D * 4
    live = tm * th * (4 + mm_isize)
    return buffered + scratch + live


def _wrap_prepost_kernel(x_ref, w1_ref, b1_ref, w2_ref, b2_ref, o_ref,
                         h_norm_ref, acc_ref, *, mm_dtype, approx_gelu, eps):
    j = pl.program_id(1)
    nj = pl.num_programs(1)

    # --- init (first H chunk): LayerNorm (affine already folded into w1/b1) ---
    @pl.when(j == 0)
    def _():
        x = x_ref[...].astype(jnp.float32)               # (TM, D)
        mu = jnp.mean(x, axis=-1, keepdims=True)
        xc = x - mu
        var = jnp.mean(xc * xc, axis=-1, keepdims=True)
        h_norm_ref[...] = (xc * jax.lax.rsqrt(var + eps)).astype(mm_dtype)
        acc_ref[...] = jnp.zeros_like(acc_ref)

    # --- streamed FFN: (TM, th) intermediate only; f32 accumulation ---
    h1 = jnp.dot(h_norm_ref[...], w1_ref[...],
                 preferred_element_type=jnp.float32) + b1_ref[...]
    # tanh GELU (default) routes the transcendental to the EUP slot.
    h1 = jax.nn.gelu(h1, approximate=approx_gelu)
    acc_ref[...] += jnp.dot(h1.astype(mm_dtype), w2_ref[...],
                            preferred_element_type=jnp.float32)

    # --- finalize (last H chunk): bias, residual add, store ---
    @pl.when(j == nj - 1)
    def _():
        x = x_ref[...].astype(jnp.float32)
        o_ref[...] = (x + acc_ref[...] + b2_ref[...]).astype(o_ref.dtype)


def prepare_params(gamma, beta, w1, b1, w2, b2, *, matmul_dtype=jnp.bfloat16):
    """One-time parameter prep (call at model setup, NOT per forward step).

    Folds the LayerNorm affine into the first matmul:
        w1' = gamma[:, None] * w1,   b1' = beta @ w1 + b1
    and casts the weights to the MXU input dtype so the hot path issues no
    per-call convert ops over the weight matrices.
    """
    D, H = w1.shape
    w1f = gamma.astype(jnp.float32)[:, None] * w1.astype(jnp.float32)
    b1f = beta.astype(jnp.float32) @ w1.astype(jnp.float32) + b1.astype(jnp.float32)
    return dict(
        w1=w1f.astype(matmul_dtype),                      # (D, H)
        b1=b1f.reshape(1, H).astype(jnp.float32),         # (1, H)
        w2=w2.astype(matmul_dtype),                       # (H, D)
        b2=b2.reshape(1, D).astype(jnp.float32),          # (1, D)
    )


def wrap_pre_post_process(x, cond, params, decode_step=None, decode_idx=None, *,
                          tile_rows=256, hidden_chunk=2048,
                          approximate_gelu=True, eps=1e-5,
                          vmem_limit_bytes=None):
    """out = x + FFN(LayerNorm(x)).

    `cond`, `decode_step`, `decode_idx` are accepted for API parity with the
    PyTorch module; the synthetic norm/fn ignore them.  `params` comes from
    prepare_params() (weights pre-folded/pre-cast once).
    """
    del cond, decode_step, decode_idx
    B, S, D = x.shape
    w1, b1, w2, b2 = params["w1"], params["b1"], params["w2"], params["b2"]
    H = w1.shape[1]
    mm_dtype = w1.dtype
    M = B * S

    # Row tile: large enough to amortize per-grid-step overhead and fill the
    # MXU M dimension, never larger than the sublane-rounded token count.
    tm = int(_round_up(max(8, min(int(tile_rows), int(_round_up(M, 8)))), 8))
    grid_m = int(pl.cdiv(M, tm))          # ragged tail handled by masked writeback
    th = _pick_hidden_chunk(H, hidden_chunk)
    grid_h = H // th

    x2 = x.reshape(M, D)
    x_isize = jnp.dtype(x.dtype).itemsize
    mm_isize = jnp.dtype(mm_dtype).itemsize

    kernel = functools.partial(_wrap_prepost_kernel, mm_dtype=mm_dtype,
                               approx_gelu=approximate_gelu, eps=eps)

    cparams = dict(dimension_semantics=("parallel", "arbitrary"))
    if vmem_limit_bytes is None:
        est = _estimate_vmem_bytes(tm, th, D, x_isize, x_isize, mm_isize)
        if est > (28 << 20):
            vmem_limit_bytes = min(int(est * 1.25) + (4 << 20), 96 << 20)
    if vmem_limit_bytes is not None:
        cparams["vmem_limit_bytes"] = int(vmem_limit_bytes)

    cost = pl.CostEstimate(
        flops=4 * M * D * H,
        transcendentals=M * H,
        bytes_accessed=(2 * M * D * x_isize            # x in, out
                        + 2 * D * H * mm_isize         # w1, w2
                        + (H + 2 * D) * 4),            # biases
    )

    out2 = pl.pallas_call(
        kernel,
        out_shape=jax.ShapeDtypeStruct((M, D), x.dtype),
        grid_spec=pltpu.PrefetchScalarGridSpec(
            num_scalar_prefetch=0,
            grid=(grid_m, grid_h),
            in_specs=[
                pl.BlockSpec((tm, D), lambda i, j: (i, 0)),   # x tile (resident over j)
                pl.BlockSpec((D, th), lambda i, j: (0, j)),   # w1 chunk
                pl.BlockSpec((1, th), lambda i, j: (0, j)),   # b1 chunk
                pl.BlockSpec((th, D), lambda i, j: (j, 0)),   # w2 chunk
                pl.BlockSpec((1, D), lambda i, j: (0, 0)),    # b2 (resident)
            ],
            out_specs=pl.BlockSpec((tm, D), lambda i, j: (i, 0)),
            scratch_shapes=[
                pltpu.VMEM((tm, D), mm_dtype),    # normalized tokens (reused over j)
                pltpu.VMEM((tm, D), jnp.float32), # f32 accumulator for second matmul
            ],
        ),
        compiler_params=pltpu.CompilerParams(**cparams),
        cost_estimate=cost,
    )(x2, w1, b1, w2, b2)

    return out2.reshape(B, S, D)


def _reference(x, gamma, beta, w1, b1, w2, b2, approximate_gelu=True):
    xf = x.astype(jnp.float32)
    mu = jnp.mean(xf, axis=-1, keepdims=True)
    var = jnp.mean((xf - mu) ** 2, axis=-1, keepdims=True)
    h = (xf - mu) * jax.lax.rsqrt(var + 1e-5) * gamma + beta
    h = jax.nn.gelu(h @ w1 + b1, approximate=approximate_gelu) @ w2 + b2
    return (xf + h).astype(x.dtype)


if __name__ == "__main__":
    key = jax.random.PRNGKey(0)
    D, H = 128, 512  # lane-aligned channel / hidden dims (small synthetic sizes)
    k = jax.random.split(key, 8)

    # Deterministic synthetic parameters (non-trivial gamma/beta exercise the fold).
    gamma = 1.0 + 0.1 * jax.random.normal(k[0], (D,), jnp.float32)
    beta = 0.05 * jax.random.normal(k[1], (D,), jnp.float32)
    w1 = jax.random.normal(k[2], (D, H), jnp.float32) * (1.0 / jnp.sqrt(D))
    b1 = jax.random.normal(k[3], (H,), jnp.float32) * 0.01
    w2 = jax.random.normal(k[4], (H, D), jnp.float32) * (1.0 / jnp.sqrt(H))
    b2 = jax.random.normal(k[5], (D,), jnp.float32) * 0.01

    # One-time prep (fold LN affine + cast weights); not on the hot path.
    params_bf16 = prepare_params(gamma, beta, w1, b1, w2, b2, matmul_dtype=jnp.bfloat16)
    params_f32 = prepare_params(gamma, beta, w1, b1, w2, b2, matmul_dtype=jnp.float32)

    # Case 1: default perf path (bf16 MXU inputs, tanh GELU). M=512 -> 2 row tiles.
    B, S = 2, 256
    x = jax.random.normal(k[6], (B, S, D), jnp.float32)
    cond = jax.random.normal(k[7], (B, S, D), jnp.float32)  # unused by norm/fn
    ref = _reference(x, gamma, beta, w1, b1, w2, b2, approximate_gelu=True)
    out = jax.block_until_ready(
        wrap_pre_post_process(x, cond, params_bf16, decode_step=None, decode_idx=None))
    assert out.shape == x.shape and out.dtype == x.dtype
    assert float(jnp.max(jnp.abs(out - ref))) < 5e-2, "bf16 path mismatch vs reference"

    # Case 2: ragged token count (no pad/slice; masked tail writeback) + H chunking.
    B2, S2 = 2, 200
    x_tail = jax.random.normal(k[7], (B2, S2, D), jnp.float32)
    ref_tail = _reference(x_tail, gamma, beta, w1, b1, w2, b2, approximate_gelu=True)
    out_tail = jax.block_until_ready(
        wrap_pre_post_process(x_tail, None, params_bf16, hidden_chunk=256))
    assert out_tail.shape == x_tail.shape
    assert float(jnp.max(jnp.abs(out_tail - ref_tail))) < 5e-2, "ragged/chunked mismatch"

    # Case 3: f32 MXU path (accuracy check only; not the perf path) with H chunking.
    out_f32 = jax.block_until_ready(
        wrap_pre_post_process(x, cond, params_f32, hidden_chunk=256))
    assert float(jnp.max(jnp.abs(out_f32 - ref))) < 2e-3, "f32 path mismatch vs reference"

    # Case 4: bf16 activations end-to-end (memory-bound v5e/v6e perf path).
    xb = x.astype(jnp.bfloat16)
    refb = _reference(xb, gamma, beta, w1, b1, w2, b2, approximate_gelu=True)
    outb = jax.block_until_ready(wrap_pre_post_process(xb, None, params_bf16))
    assert outb.dtype == jnp.bfloat16
    assert float(jnp.max(jnp.abs(outb.astype(jnp.float32) -
                                 refb.astype(jnp.float32)))) < 1e-1, "bf16-activation mismatch"

    # TODO(synk): training-mode dropout (pltpu.prng_*) and cond-dependent norm/fn
    # variants are not exercised by this synthetic instantiation.
    print("KERNEL_OK")
</pallas_src>

<mosaic_0001>
module attributes {stable_mosaic.version = 11 : i64} {
  func.func @_wrap_prepost_kernel(%arg0: i32, %arg1: i32, %arg2: memref<256x128xf32, #tpu.memory_space<vmem>>, %arg3: memref<128x512xbf16, #tpu.memory_space<vmem>>, %arg4: memref<1x512xf32, #tpu.memory_space<vmem>>, %arg5: memref<512x128xbf16, #tpu.memory_space<vmem>>, %arg6: memref<1x128xf32, #tpu.memory_space<vmem>>, %arg7: memref<256x128xf32, #tpu.memory_space<vmem>>, %arg8: memref<256x128xbf16, #tpu.memory_space<vmem>>, %arg9: memref<256x128xf32, #tpu.memory_space<vmem>>) attributes {dimension_semantics = [#tpu.dimension_semantics<parallel>, #tpu.dimension_semantics<arbitrary>], iteration_bounds = array<i64: 2, 1>, scalar_prefetch = 0 : i64, scratch_operands = 2 : i64, tpu.core_type = #tpu.core_type<tc>, window_params = [{transform_indices = @transform_0, window_bounds = array<i64: 256, 128>}, {transform_indices = @transform_1, window_bounds = array<i64: 128, 512>}, {transform_indices = @transform_2, window_bounds = array<i64: 1, 512>}, {transform_indices = @transform_3, window_bounds = array<i64: 512, 128>}, {pipeline_mode = #tpu.pipeline_mode<synchronous>, transform_indices = @transform_4, window_bounds = array<i64: 1, 128>}, {transform_indices = @transform_5, window_bounds = array<i64: 256, 128>}]} {
    %c0_i32 = arith.constant 0 : i32
    %0 = arith.cmpi eq, %arg1, %c0_i32 : i32
    %1 = arith.extui %0 : i1 to i32
    %c0_i32_0 = arith.constant 0 : i32
    %2 = arith.cmpi ne, %1, %c0_i32_0 : i32
    scf.if %2 {
      %c0_19 = arith.constant 0 : index
      %c0_20 = arith.constant 0 : index
      %31 = vector.load %arg2[%c0_19, %c0_20] : memref<256x128xf32, #tpu.memory_space<vmem>>, vector<256x128xf32>
      %cst_21 = arith.constant dense<0.000000e+00> : vector<256xf32>
      %32 = vector.multi_reduction <add>, %31, %cst_21 [1] : vector<256x128xf32> to vector<256xf32>
      %33 = vector.shape_cast %32 : vector<256xf32> to vector<256x1xf32>
      %cst_22 = arith.constant 1.280000e+02 : f32
      %34 = vector.broadcast %cst_22 : f32 to vector<256x1xf32>
      %35 = arith.divf %33, %34 : vector<256x1xf32>
      %36 = vector.broadcast %35 : vector<256x1xf32> to vector<256x128xf32>
      %37 = arith.subf %31, %36 : vector<256x128xf32>
      %38 = arith.mulf %37, %37 : vector<256x128xf32>
      %cst_23 = arith.constant dense<0.000000e+00> : vector<256xf32>
      %39 = vector.multi_reduction <add>, %38, %cst_23 [1] : vector<256x128xf32> to vector<256xf32>
      %40 = vector.shape_cast %39 : vector<256xf32> to vector<256x1xf32>
      %cst_24 = arith.constant 1.280000e+02 : f32
      %41 = vector.broadcast %cst_24 : f32 to vector<256x1xf32>
      %42 = arith.divf %40, %41 : vector<256x1xf32>
      %cst_25 = arith.constant 9.99999974E-6 : f32
      %43 = vector.broadcast %cst_25 : f32 to vector<256x1xf32>
      %44 = arith.addf %42, %43 : vector<256x1xf32>
      %45 = math.rsqrt %44 : vector<256x1xf32>
      %46 = vector.broadcast %45 : vector<256x1xf32> to vector<256x128xf32>
      %47 = arith.mulf %37, %46 : vector<256x128xf32>
      %48 = arith.truncf %47 : vector<256x128xf32> to vector<256x128xbf16>
      %c0_26 = arith.constant 0 : index
      %c0_27 = arith.constant 0 : index
      %49 = vector.load %arg8[%c0_26, %c0_27] : memref<256x128xbf16, #tpu.memory_space<vmem>>, vector<256x128xbf16>
      tpu.vector_store %arg8[%c0_26, %c0_27], %48 {strides = array<i32>} : memref<256x128xbf16, #tpu.memory_space<vmem>>, vector<256x128xbf16>,
      %cst_28 = arith.constant 0.000000e+00 : f32
      %50 = vector.broadcast %cst_28 : f32 to vector<256x128xf32>
      %c0_29 = arith.constant 0 : index
      %c0_30 = arith.constant 0 : index
      %51 = vector.load %arg9[%c0_29, %c0_30] : memref<256x128xf32, #tpu.memory_space<vmem>>, vector<256x128xf32>
      tpu.vector_store %arg9[%c0_29, %c0_30], %50 {strides = array<i32>} : memref<256x128xf32, #tpu.memory_space<vmem>>, vector<256x128xf32>,
    } else {
    }
    %c0 = arith.constant 0 : index
    %c0_1 = arith.constant 0 : index
    %3 = vector.load %arg8[%c0, %c0_1] : memref<256x128xbf16, #tpu.memory_space<vmem>>, vector<256x128xbf16>
    %c0_2 = arith.constant 0 : index
    %c0_3 = arith.constant 0 : index
    %4 = vector.load %arg3[%c0_2, %c0_3] : memref<128x512xbf16, #tpu.memory_space<vmem>>, vector<128x512xbf16>
    %cst = arith.constant dense<0.000000e+00> : vector<256x512xf32>
    %5 = tpu.matmul %3, %4, %cst {dimension_numbers = #tpu.dot_dimension_numbers<[1], [0], [0], [1], [0, 0, 1, 1], [], []>} : vector<256x128xbf16>, vector<128x512xbf16>, vector<256x512xf32> -> vector<256x512xf32>
    %c0_4 = arith.constant 0 : index
    %c0_5 = arith.constant 0 : index
    %6 = vector.load %arg4[%c0_4, %c0_5] : memref<1x512xf32, #tpu.memory_space<vmem>>, vector<1x512xf32>
    %7 = vector.broadcast %6 : vector<1x512xf32> to vector<256x512xf32>
    %8 = arith.addf %5, %7 : vector<256x512xf32>
    %9 = arith.mulf %8, %8 : vector<256x512xf32>
    %10 = arith.mulf %8, %9 : vector<256x512xf32>
    %cst_6 = arith.constant 4.471500e-02 : f32
    %11 = vector.broadcast %cst_6 : f32 to vector<256x512xf32>
    %12 = arith.mulf %11, %10 : vector<256x512xf32>
    %13 = arith.addf %8, %12 : vector<256x512xf32>
    %cst_7 = arith.constant 0.797884583 : f32
    %14 = vector.broadcast %cst_7 : f32 to vector<256x512xf32>
    %15 = arith.mulf %14, %13 : vector<256x512xf32>
    %16 = math.tanh %15 : vector<256x512xf32>
    %cst_8 = arith.constant 1.000000e+00 : f32
    %17 = vector.broadcast %cst_8 : f32 to vector<256x512xf32>
    %18 = arith.addf %17, %16 : vector<256x512xf32>
    %cst_9 = arith.constant 5.000000e-01 : f32
    %19 = vector.broadcast %cst_9 : f32 to vector<256x512xf32>
    %20 = arith.mulf %19, %18 : vector<256x512xf32>
    %21 = arith.mulf %8, %20 : vector<256x512xf32>
    %c0_10 = arith.constant 0 : index
    %c0_11 = arith.constant 0 : index
    %22 = vector.load %arg9[%c0_10, %c0_11] : memref<256x128xf32, #tpu.memory_space<vmem>>, vector<256x128xf32>
    %23 = arith.truncf %21 : vector<256x512xf32> to vector<256x512xbf16>
    %c0_12 = arith.constant 0 : index
    %c0_13 = arith.constant 0 : index
    %24 = vector.load %arg5[%c0_12, %c0_13] : memref<512x128xbf16, #tpu.memory_space<vmem>>, vector<512x128xbf16>
    %cst_14 = arith.constant dense<0.000000e+00> : vector<256x128xf32>
    %25 = tpu.matmul %23, %24, %cst_14 {dimension_numbers = #tpu.dot_dimension_numbers<[1], [0], [0], [1], [0, 0, 1, 1], [], []>} : vector<256x512xbf16>, vector<512x128xbf16>, vector<256x128xf32> -> vector<256x128xf32>
    %26 = arith.addf %22, %25 : vector<256x128xf32>
    %c0_15 = arith.constant 0 : index
    %c0_16 = arith.constant 0 : index
    %27 = vector.load %arg9[%c0_15, %c0_16] : memref<256x128xf32, #tpu.memory_space<vmem>>, vector<256x128xf32>
    tpu.vector_store %arg9[%c0_15, %c0_16], %26 {strides = array<i32>} : memref<256x128xf32, #tpu.memory_space<vmem>>, vector<256x128xf32>,
    %c0_i32_17 = arith.constant 0 : i32
    %28 = arith.cmpi eq, %arg1, %c0_i32_17 : i32
    %29 = arith.extui %28 : i1 to i32
    %c0_i32_18 = arith.constant 0 : i32
    %30 = arith.cmpi ne, %29, %c0_i32_18 : i32
    scf.if %30 {
      %c0_19 = arith.constant 0 : index
      %c0_20 = arith.constant 0 : index
      %31 = vector.load %arg2[%c0_19, %c0_20] : memref<256x128xf32, #tpu.memory_space<vmem>>, vector<256x128xf32>
      %c0_21 = arith.constant 0 : index
      %c0_22 = arith.constant 0 : index
      %32 = vector.load %arg9[%c0_21, %c0_22] : memref<256x128xf32, #tpu.memory_space<vmem>>, vector<256x128xf32>
      %33 = arith.addf %31, %32 : vector<256x128xf32>
      %c0_23 = arith.constant 0 : index
      %c0_24 = arith.constant 0 : index
      %34 = vector.load %arg6[%c0_23, %c0_24] : memref<1x128xf32, #tpu.memory_space<vmem>>, vector<1x128xf32>
      %35 = vector.broadcast %34 : vector<1x128xf32> to vector<256x128xf32>
      %36 = arith.addf %33, %35 : vector<256x128xf32>
      %c0_25 = arith.constant 0 : index
      %c0_26 = arith.constant 0 : index
      %37 = vector.load %arg7[%c0_25, %c0_26] : memref<256x128xf32, #tpu.memory_space<vmem>>, vector<256x128xf32>
      tpu.vector_store %arg7[%c0_25, %c0_26], %36 {strides = array<i32>} : memref<256x128xf32, #tpu.memory_space<vmem>>, vector<256x128xf32>,
    } else {
    }
    return
  }
  func.func @transform_0(%arg0: i32, %arg1: i32) -> (i32, i32) {
    %c0_i32 = arith.constant 0 : i32
    %c0_i32_0 = arith.constant 0 : i32
    return %arg0, %c0_i32 : i32, i32
  }
  func.func @transform_1(%arg0: i32, %arg1: i32) -> (i32, i32) {
    %c0_i32 = arith.constant 0 : i32
    %c0_i32_0 = arith.constant 0 : i32
    return %c0_i32, %arg1 : i32, i32
  }
  func.func @transform_2(%arg0: i32, %arg1: i32) -> (i32, i32) {
    %c0_i32 = arith.constant 0 : i32
    %c0_i32_0 = arith.constant 0 : i32
    return %c0_i32, %arg1 : i32, i32
  }
  func.func @transform_3(%arg0: i32, %arg1: i32) -> (i32, i32) {
    %c0_i32 = arith.constant 0 : i32
    %c0_i32_0 = arith.constant 0 : i32
    return %arg1, %c0_i32 : i32, i32
  }
  func.func @transform_4(%arg0: i32, %arg1: i32) -> (i32, i32) {
    %c0_i32 = arith.constant 0 : i32
    %c0_i32_0 = arith.constant 0 : i32
    %c0_i32_1 = arith.constant 0 : i32
    return %c0_i32, %c0_i32_0 : i32, i32
  }
  func.func @transform_5(%arg0: i32, %arg1: i32) -> (i32, i32) {
    %c0_i32 = arith.constant 0 : i32
    %c0_i32_0 = arith.constant 0 : i32
    return %arg0, %c0_i32 : i32, i32
  }
}

</mosaic_0001>

<bundles_post_ra>
// kernel: tpu_custom_call.1
= control target key start
LH: loop header
LB: loop body
LE: loop exit
PB: predicated region body
PF: predicated region fallthrough
CT: control target
= control target key end

     0   :  { %10 = vsyncpa [#allocation5], 0  ;;  %s7129_s0 = inlined_call_operand.hbm [shape: f32[512,128], index: 0, kind: input, shape index: {}]   ;;  %s7130_s1 = inlined_call_operand.hbm [shape: bf16[128,512], index: 1, kind: input, shape index: {}]   ;;  %s7131_s2 = inlined_call_operand.vmem [shape: f32[1,512], index: 2, kind: input, shape index: {}]   ;;  %s7132_s3 = inlined_call_operand.hbm [shape: bf16[512,128], index: 3, kind: input, shape index: {}]   ;;  %s7133_s4 = inlined_call_operand.vmem [shape: f32[1,128], index: 4, kind: input, shape index: {}]   ;;  %s7134_s5 = inlined_call_operand.hbm [shape: f32[512,128], index: 5, kind: output, shape index: {}]  }
   0x1   :  { %12 = vsyncpa [#allocation5 + $0x1], 0 }
   0x2   :  { %13 = vsyncpa [#allocation8], 0 }
   0x3   :  { %14 = vsyncpa [#allocation6], 0 }
   0x4   :  { %16 = vsyncpa [#allocation6 + $0x1], 0  ;;  %s4603_s18 = smov 0   ;;  %s4605_s19 = smov 0  }
   0x5   :  { %s4607_s20 = smov 0   ;;  %s4609_s21 = smov 0  }
   0x6   :  { %s4611_s22 = smov 0   ;;  %s4613_s23 = smov 0  }
   0x7 LB: > { %s3583_s24 = sadd.s32 4294967295, %s4558_s23   ;;  %s3584_s25 = sadd.s32 4294967294, %s4558_s23   ;;  %s4558_s23 = sphi %s4613_s23, %s22_s23   ;;  %s4554_s22 = sphi %s4611_s22, %s7582_s22   ;;  %s4550_s21 = sphi %s4609_s21, %s7581_s21   ;;  %s4546_s20 = sphi %s4607_s20, %s7580_s20   ;;  %s4542_s19 = sphi %s4605_s19, %s7579_s19   ;;  %s4538_s18 = sphi %s4603_s18, %s7578_s18  }
   0x8   : > { %p54_p0 = scmp.ne.s32.totalorder %s4542_s19, %s4538_s18  ;;  %p4637_p1 = scmp.eq.s32.totalorder %s3583_s24, 0 }
   0x9   : > { %p4641_p2 = scmp.eq.s32.totalorder %s3583_s24, 1  ;;  %p183_p3 = scmp.eq.s32.totalorder %s3584_s25, 1 }
   0xa   : > { %s7219_s26 = scalar_select %p4637_p1, 1, 0 }
   0xb   : > { %p4647_p4 = por %p4637_p1, %p54_p0  ;;  %p3585_p5 = scmp.ge.s32.totalorder %s4558_s23, 1 }
   0xc   : > { %p4652_p6 = por %p183_p3, %p54_p0  ;;  %p190_p7 = scmp.lt.s32.totalorder %s4558_s23, 3 }
   0xd   : > { %s7221_s28 = scalar_select %p4647_p4, 1, 0 }
   0xe   : > { %s7222_s29 = scalar_select %p4652_p6, 1, 0 }
   0xf   : > { %p4657_p8 = pnand %p3585_p5, %p190_p7  ;;  %s4560_s6 = smov [#allocation7]  }
  0x10   : > { %s205_s7 = sshll.u32 %s4560_s6, 4  ;;  %s4561_s9 = smov [#allocation9]   ;;  %s4661_s7 = int_to_ptr.vmem [resolvable:$true] %s205_s7 }
  0x11   : > { %p3906_p9 = pneg %p4657_p8  ;;  %s229_s10 = sshll.u32 %s4561_s9, 4  ;;  %s4672_s10 = int_to_ptr.vmem [resolvable:$true] %s229_s10 }
  0x12   : > { %s4386_s13 = scalar_lea.hbm %s7130_s1, 4096 }
  0x13   : > { %p4668_p11 = pnand %p3906_p9, %p4637_p1  ;;  %p4387_p12 = scmp.ne.s32.totalorder %s7130_s1, %s4386_s13 }
  0x14   : > { %p4393_p5 = scmp.lt.u32.totalorder %s4386_s13, %s7130_s1 }
  0x15   : > { %p4388_p13 = pneg %p4668_p11 }
  0x17   : > { %p4389_p0 = pnand %p4388_p13, %p4387_p12 }
  0x19   : > { %p4390_p3 = pneg %p4389_p0 }
  0x1b   : > { %p4395_p7 = pnand %p4393_p5, %p4390_p3 }
  0x1d   : > { %4398 = shalt.err (!%p4395_p7)
}
  0x1e   : > { %s4399_s24 = scalar_lea.vmem %s4661_s7, 4096  ;;  %p4407_p1 = scmp.lt.s32.totalorder %s4661_s7, %s4661_s7 }
  0x1f   : > { %p4400_p9 = scmp.ne.s32.totalorder %s4661_s7, %s4399_s24  ;;  %p4408_p12 = scmp.lt.s32.totalorder %s4399_s24, %s4399_s24 }
  0x21   : > { %p4402_p10 = pnand %p4400_p9, %p4388_p13  ;;  %p4409_p0 = por %p4408_p12, %p4407_p1 }
  0x23   : > { %p4403_p6 = pneg %p4402_p10 }
  0x25   : > { %p4410_p4 = pnand %p4409_p0, %p4403_p6 }
  0x27   : > { %4413 = shalt.err (!%p4410_p4)
}
  0x28   : > { %s4562_s25 = smov 256   ;;  %s4563_s6 = smov 16  }
  0x29   : > { %3909 = dma.hbm_to_vmem [thread:$0]  (!%p4668_p11), %s7130_s1, 4096, %s4661_s7, [#allocation8], %s4562_s25, %s4562_s25, %s4563_s6  }
  0x2a   : > { %s4414_s14 = scalar_lea.hbm %s7132_s3, 4096 }
  0x2b   : > { %p4415_p1 = scmp.ne.s32.totalorder %s7132_s3, %s4414_s14  ;;  %p4421_p10 = scmp.lt.u32.totalorder %s4414_s14, %s7132_s3 }
  0x2d   : > { %p4417_p4 = pnand %p4415_p1, %p4388_p13 }
  0x2f   : > { %p4418_p6 = pneg %p4417_p4 }
  0x31   : > { %p4423_p3 = pnand %p4421_p10, %p4418_p6 }
  0x33   : > { %4426 = shalt.err (!%p4423_p3)
}
  0x34   : > { %s4427_s7 = scalar_lea.vmem %s4672_s10, 4096  ;;  %p4435_p12 = scmp.lt.s32.totalorder %s4672_s10, %s4672_s10 }
  0x35   : > { %p4428_p5 = scmp.ne.s32.totalorder %s4672_s10, %s4427_s7  ;;  %p4436_p0 = scmp.lt.s32.totalorder %s4427_s7, %s4427_s7 }
  0x37   : > { %p4430_p7 = pnand %p4428_p5, %p4388_p13  ;;  %p4437_p1 = por %p4436_p0, %p4435_p12 }
  0x39   : > { %p4431_p9 = pneg %p4430_p7 }
  0x3b   : > { %p4438_p4 = pnand %p4437_p1, %p4431_p9 }
  0x3d   : > { %4441 = shalt.err (!%p4438_p4)
}
  0x3e   : > { %s4564_s25 = smov 64   ;;  %s4565_s6 = smov 4  }
  0x3f   : > { %3912 = dma.hbm_to_vmem [thread:$0]  (!%p4668_p11), %s7132_s3, 4096, %s4672_s10, [#allocation8], %s4564_s25, %s4564_s25, %s4565_s6  }
  0x40   : > { %s34_s12 = sadd.s32 1, %s4554_s22  ;;  %s41_s13 = sadd.s32 1, %s4546_s20 }
  0x41   : > { %p36_p13 = scmp.ge.s32.totalorder %s34_s12, 2  ;;  %p48_p6 = scmp.ne.s32.totalorder %s4546_s20, %s4542_s19 }
  0x42   : > { %p49_p10 = scmp.eq.s32.totalorder %s4558_s23, 0  ;;  %p3923_p3 = scmp.lt.s32.totalorder %s4558_s23, 2 }
  0x43   : > { %s7584_s12 = smov (%p36_p13, %s34_s12), 0  ;;  %p4736_p7 = por %p4641_p2, %p48_p6 }
  0x44   : > { %p50_p5 = por %p49_p10, %p48_p6  ;;  %s38_s8 = ssub.s32 %s4554_s22, %s7584_s12 }
  0x45   : > { %s7225_s14 = scalar_select %p4736_p7, 1, 0 }
  0x46   : > { %s246_s15 = sand.u32 1, %s4546_s20   ;;  %p39_p9 = scmp.eq.s32.totalorder %s38_s8, 0 }
  0x47   : > { %s3590_s10 = sshll.u32 %s246_s15, 8  ;;  %s3668_s16 = sshll.u32 %s4554_s22, 12 }
  0x48   : > { %s4745_s17 = scalar_select %p39_p9, %s4546_s20, %s41_s13  }
  0x49   : > { %s4750_s25 = scalar_lea.hbm %s7129_s0, %s3668_s16  ;;  %s250_s27 = scalar_lea.vmem [#allocation4], %s3590_s10 }
  0x4a   : > { %s257_s6 = sshll.u32 %s250_s27, 4  ;;  %p4754_p2 = pnand %p3923_p3, %p50_p5  ;;  %s4758_s6 = int_to_ptr.vmem [resolvable:$true] %s257_s6 }
  0x4b   : > { %s4760_s11 = scalar_lea.sflag [#allocation5], %s246_s15  ;;  %s4442_s13 = scalar_lea.hbm %s4750_s25, 4096 }
  0x4c   : > { %p4443_p11 = scmp.ne.s32.totalorder %s4750_s25, %s4442_s13  ;;  %p4444_p12 = pneg %p4754_p2 }
  0x4d   : > { %s4447_s16 = scalar_lea.hbm %s7129_s0, 8192  ;;  %p4448_p4 = scmp.lt.u32.totalorder %s4750_s25, %s7129_s0 }
  0x4e   : > { %p4445_p0 = pnand %p4444_p12, %p4443_p11  ;;  %p4449_p13 = scmp.lt.u32.totalorder %s4447_s16, %s4442_s13 }
  0x4f   : > { %p4451_p10 = scmp.lt.u32.totalorder %s4442_s13, %s4750_s25 }
  0x50   : > { %p4446_p1 = pneg %p4445_p0  ;;  %p4450_p6 = por %p4449_p13, %p4448_p4 }
  0x52   : > { %p4452_p3 = por %p4451_p10, %p4450_p6 }
  0x54   : > { %p4453_p5 = pnand %p4452_p3, %p4446_p1 }
  0x56   : > { %4456 = shalt.err (!%p4453_p5)
}
  0x57   : > { %s4457_s15 = scalar_lea.vmem %s4758_s6, 4096  ;;  %s4566_s27 = smov [#allocation4]  }
  0x58   : > { %p4458_p9 = scmp.ne.s32.totalorder %s4758_s6, %s4457_s15  ;;  %s4462_s8 = sshll.u32 %s4566_s27, 4  ;;  %s4463_s8 = int_to_ptr.vmem [resolvable:$false] %s4462_s8 }
  0x59   : > { %s4464_s10 = scalar_lea.vmem %s4463_s8, 8192  ;;  %p4465_p7 = scmp.lt.s32.totalorder %s4758_s6, %s4463_s8 }
  0x5a   : > { %p4460_p11 = pnand %p4458_p9, %p4444_p12  ;;  %p4466_p4 = scmp.lt.s32.totalorder %s4464_s10, %s4457_s15 }
  0x5c   : > { %p4461_p0 = pneg %p4460_p11  ;;  %p4467_p13 = por %p4466_p4, %p4465_p7 }
  0x5e   : > { %p4468_p6 = pnand %p4467_p13, %p4461_p0 }
  0x60   : > { %4471 = shalt.err (!%p4468_p6)
}
  0x61   : > { %s4567_s13 = smov 128   ;;  %s4568_s16 = smov 8  }
  0x62   : > { %3916 = dma.hbm_to_vmem [thread:$0]  (!%p4754_p2), %s4750_s25, 4096, %s4758_s6, %s4760_s11, %s4567_s13, %s4567_s13, %s4568_s16  }
  0x63   : > { %269 = sbr.rel (%p4657_p8) target bundleno = 1228 (0x4cc), region = 40 }
  0x6a   : > { %s4791_s24 = sand.u32 1, %s4542_s19   ;;  %p7227_p7 = scmp.ne.s32.totalorder %s7221_s28, 0 }
  0x6b   : > { %s3594_s7 = sshll.u32 %s4791_s24, 8  ;;  %s272_s15 = scalar_lea.sflag [#allocation5], %s4791_s24 }
  0x6c   : > { %s4797_s27 = scalar_lea.vmem [#allocation4], %s3594_s7 }
  0x6d   : > { %4525 = dma.done.wait (%p7227_p7), %s272_s15, 4096  }
  0x6e   : > { %4527 = vsyncadd (%p7227_p7), %s272_s15, 4294963200  ;;  %p7228_p2 = scmp.ne.s32.totalorder %s7219_s26, 0 }
  0x70   : > { %4529 = dma.done.wait (%p7228_p2), [#allocation8], 8192  }
  0x71   : > { %4531 = vsyncadd (%p7228_p2), [#allocation8], 4294959104  ;;  %v4808_v0 = vld [vmem:[%s4797_s27] sm:$0xff]  ;;  %v4811_v1 = vld [vmem:[%s4797_s27 + $0x10] sm:$0xff]  ;;  %s6982_s6 = scalar_lea.vmem [#allocation10], %s3594_s7  ;;  %s3669_s9 = sshll.u32 %s4550_s21, 12 }
  0x72   : > { %360 = vadd.xlane.f32.xlu0 %v4808_v0  ;;  %364 = vadd.xlane.f32.xlu1 %v4811_v1  ;;  %v4816_v2 = vld [vmem:[%s4797_s27 + $0x8] sm:$0xff]  ;;  %v4819_v3 = vld [vmem:[%s4797_s27 + $0x18] sm:$0xff]  ;;  %v4824_v4 = vld [vmem:[%s4797_s27 + $0x20] sm:$0xff]  ;;  %s3467_s11 = sshll.u32 %s6982_s6, 4  ;;  %s7075_s13 = scalar_lea.hbm %s7134_s5, %s3669_s9  ;;  %s7077_s11 = int_to_ptr.vmem [resolvable:$true] %s3467_s11 }
  0x73   : > { %v4827_v5 = vld [vmem:[%s4797_s27 + $0x28] sm:$0xff]  ;;  %v4830_v6 = vld [vmem:[%s4797_s27 + $0x30] sm:$0xff]  ;;  %v4833_v7 = vld [vmem:[%s4797_s27 + $0x38] sm:$0xff]  ;;  %s3454_s16 = scalar_lea.sflag [#allocation6], %s4791_s24  ;;  %s4472_s21 = scalar_lea.vmem %s7077_s11, 4096 }
  0x74   : > { %v4838_v8 = vld [vmem:[%s4797_s27 + $0x40] sm:$0xff]  ;;  %v4841_v9 = vld [vmem:[%s4797_s27 + $0x48] sm:$0xff]  ;;  %v4846_v10 = vld [vmem:[%s4797_s27 + $0x50] sm:$0xff]  ;;  %p4473_p8 = scmp.ne.s32.totalorder %s7077_s11, %s4472_s21  ;;  %p7575_p12 = scmp.ne.s32.totalorder %s7225_s14, 0 }
  0x75   : > { %v4849_v11 = vld [vmem:[%s4797_s27 + $0x58] sm:$0xff]  ;;  %v4854_v12 = vld [vmem:[%s4797_s27 + $0x60] sm:$0xff]  ;;  %v4859_v13 = vld [vmem:[%s4797_s27 + $0x68] sm:$0xff]  ;;  %s4570_s7 = smov [#allocation10]  }
  0x76   : > { %362 = vadd.xlane.f32.xlu0 %v4816_v2  ;;  %366 = vadd.xlane.f32.xlu1 %v4819_v3  ;;  %v4862_v14 = vld [vmem:[%s4797_s27 + $0x70] sm:$0xff]  ;;  %v4865_v15 = vld [vmem:[%s4797_s27 + $0x78] sm:$0xff]  ;;  %v4870_v16 = vld [vmem:[%s4797_s27 + $0x80] sm:$0xff]  ;;  %p4474_p1 = pnand %p4473_p8, %p7575_p12  ;;  %s4476_s15 = sshll.u32 %s4570_s7, 4  ;;  %s4477_s15 = int_to_ptr.vmem [resolvable:$false] %s4476_s15 }
  0x77   : > { %v4875_v17 = vld [vmem:[%s4797_s27 + $0x88] sm:$0xff]  ;;  %v4878_v18 = vld [vmem:[%s4797_s27 + $0x90] sm:$0xff]  ;;  %v4883_v19 = vld [vmem:[%s4797_s27 + $0x98] sm:$0xff]  ;;  %p4479_p3 = scmp.lt.s32.totalorder %s7077_s11, %s4477_s15 }
  0x78   : > { %v3986_v20 = vld [vmem:[#allocation7 + $0x4] ss:$16 sps:$4 sm:$0xff]   ;;  %v3988_v21 = vld [vmem:[#allocation7 + $0xc] ss:$16 sps:$4 sm:$0xff]   ;;  %v3990_v22 = vld [vmem:[#allocation7] ss:$16 sps:$4 sm:$0xff]   ;;  %p4475_p10 = pneg %p4474_p1 }
  0x79   : > { %v3991_v23 = vld [vmem:[#allocation7 + $0x8] ss:$16 sps:$4 sm:$0xff]   ;;  %v3992_v24 = vld [vmem:[#allocation7 + $0x24] ss:$16 sps:$4 sm:$0xff]   ;;  %v3994_v25 = vld [vmem:[#allocation7 + $0x2c] ss:$16 sps:$4 sm:$0xff]   ;;  %1007 = vmatprep.subr.bf16.mxu0 %v3986_v20  ;;  %1200 = vmatprep.subr.bf16.mxu1 %v3988_v21 }
  0x7a   : > { %368 = vadd.xlane.f32.xlu0 %v4824_v4  ;;  %370 = vadd.xlane.f32.xlu1 %v4827_v5  ;;  %v3996_v26 = vld [vmem:[#allocation7 + $0x20] ss:$16 sps:$4 sm:$0xff]   ;;  %v3997_v27 = vld [vmem:[#allocation7 + $0x28] ss:$16 sps:$4 sm:$0xff]   ;;  %v3998_v28 = vld [vmem:[#allocation7 + $0x44] ss:$16 sps:$4 sm:$0xff]  }
  0x7b   : > { %1008 = vmatpush1.bf16.msra.mxu0 %v3990_v22  ;;  %1201 = vmatpush1.bf16.msra.mxu1 %v3991_v23  ;;  %v4000_v29 = vld [vmem:[#allocation7 + $0x4c] ss:$16 sps:$4 sm:$0xff]   ;;  %v4899_v42 = vld [vmem:[%s4797_s27 + $0xa0] sm:$0xff]  ;;  %v4919_v53 = vld [vmem:[%s4797_s27 + $0xb0] sm:$0xff] }
  0x7c   : > { %1009 = vmatprep.subr.bf16.mxu0 %v3992_v24  ;;  %1202 = vmatprep.subr.bf16.mxu1 %v3994_v25  ;;  %v4910_v48 = vld [vmem:[%s4797_s27 + $0xa8] sm:$0xff]  ;;  %v4002_v58 = vld [vmem:[#allocation7 + $0x40] ss:$16 sps:$4 sm:$0xff]   ;;  %v4928_v60 = vld [vmem:[%s4797_s27 + $0xb8] sm:$0xff] }
  0x7d   : > { %v4003_v59 = vld [vmem:[#allocation7 + $0x48] ss:$16 sps:$4 sm:$0xff]   ;;  %v4004_v62 = vld [vmem:[#allocation7 + $0x64] ss:$16 sps:$4 sm:$0xff]   ;;  %v4006_v63 = vld [vmem:[#allocation7 + $0x6c] ss:$16 sps:$4 sm:$0xff]  }
  0x7e   : > { %372 = vadd.xlane.f32.xlu0 %v4830_v6  ;;  %374 = vadd.xlane.f32.xlu1 %v4833_v7  ;;  %v4010_v21 = vld [vmem:[#allocation7 + $0x84] ss:$16 sps:$4 sm:$0xff]   ;;  %v4012_v22 = vld [vmem:[#allocation7 + $0x8c] ss:$16 sps:$4 sm:$0xff]   ;;  %v4014_v25 = vld [vmem:[#allocation7 + $0x80] ss:$16 sps:$4 sm:$0xff]  }
  0x7f   : > { %1010 = vmatpush1.bf16.msra.mxu0 %v3996_v26  ;;  %1203 = vmatpush1.bf16.msra.mxu1 %v3997_v27  ;;  %v4015_v26 = vld [vmem:[#allocation7 + $0x88] ss:$16 sps:$4 sm:$0xff]  }
  0x80   : > { %1011 = vmatprep.subr.bf16.mxu0 %v3998_v28  ;;  %1204 = vmatprep.subr.bf16.mxu1 %v4000_v29  ;;  %v4946_v27 = vld [vmem:[%s4797_s27 + $0xc8] sm:$0xff] }
  0x82   : > { %376 = vadd.xlane.f32.xlu0 %v4838_v8  ;;  %378 = vadd.xlane.f32.xlu1 %v4841_v9 }
  0x83   : > { %1012 = vmatpush1.bf16.msra.mxu0 %v4002_v58  ;;  %1205 = vmatpush1.bf16.msra.mxu1 %v4003_v59 }
  0x84   : > { %1013 = vmatprep.subr.bf16.mxu0 %v4004_v62  ;;  %1206 = vmatprep.subr.bf16.mxu1 %v4006_v63  ;;  %v4033_v62 = vld [vmem:[#allocation7 + $0xe8] ss:$16 sps:$4 sm:$0xff]   ;;  %v4973_v63 = vld [vmem:[%s4797_s27 + $0xe0] sm:$0xff] }
  0x86   : > { %380 = vadd.xlane.f32.xlu0 %v4846_v10  ;;  %382 = vadd.xlane.f32.xlu1 %v4849_v11 }
  0x8a   : > { %384 = vadd.xlane.f32.xlu0 %v4854_v12  ;;  %386 = vadd.xlane.f32.xlu1 %v4859_v13 }
  0x8e   : > { %388 = vadd.xlane.f32.xlu0 %v4862_v14  ;;  %390 = vadd.xlane.f32.xlu1 %v4865_v15 }
  0x92   : > { %392 = vadd.xlane.f32.xlu0 %v4870_v16  ;;  %394 = vadd.xlane.f32.xlu1 %v4875_v17 }
  0x96   : > { %396 = vadd.xlane.f32.xlu0 %v4878_v18  ;;  %398 = vadd.xlane.f32.xlu1 %v4883_v19 }
  0xff   : > { %v361_v30 = vpop.xlane.xlu0 %360  ;;  %v365_v31 = vpop.xlane.xlu1 %364 }
 0x100   : > { %v425_v32 = vmul.f32 0.0078125, %v361_v30  ;;  %v427_v34 = vmul.f32 0.0078125, %v365_v31  ;;  %v4016_v30 = vld [vmem:[#allocation7 + $0xa4] ss:$16 sps:$4 sm:$0xff]   ;;  %v4018_v31 = vld [vmem:[#allocation7 + $0xac] ss:$16 sps:$4 sm:$0xff]  }
 0x102   : > { %v4888_v33 = vsub.f32 %v4808_v0, %v425_v32  ;;  %v4896_v40 = vsub.f32 %v4811_v1, %v427_v34 }
 0x103   : > { %v363_v35 = vpop.xlane.xlu0 %362  ;;  %v367_v36 = vpop.xlane.xlu1 %366 }
 0x104   : > { %v426_v37 = vmul.f32 0.0078125, %v363_v35  ;;  %v489_v38 = vmul.f32 %v4888_v33, %v4888_v33  ;;  %v428_v41 = vmul.f32 0.0078125, %v367_v36  ;;  %v491_v46 = vmul.f32 %v4896_v40, %v4896_v40  ;;  %v4020_v35 = vld [vmem:[#allocation7 + $0xa0] ss:$16 sps:$4 sm:$0xff]   ;;  %v4021_v36 = vld [vmem:[#allocation7 + $0xa8] ss:$16 sps:$4 sm:$0xff]  }
 0x106   : > { %v4893_v39 = vsub.f32 %v4816_v2, %v426_v37  ;;  %521 = vadd.xlane.f32.xlu0 %v489_v38  ;;  %v4905_v45 = vsub.f32 %v4819_v3, %v428_v41  ;;  %v4008_v3 = vld [vmem:[#allocation7 + $0x60] ss:$16 sps:$4 sm:$0xff]  }
 0x107   : > { %v369_v43 = vpop.xlane.xlu0 %368  ;;  %v371_v49 = vpop.xlane.xlu1 %370  ;;  %1014 = vmatpush1.bf16.msra.mxu0 %v4008_v3  ;;  %v4955_v37 = vld [vmem:[%s4797_s27 + $0xd0] sm:$0xff] }
 0x108   : > { %v490_v44 = vmul.f32 %v4893_v39, %v4893_v39  ;;  %v429_v47 = vmul.f32 0.0078125, %v369_v43  ;;  %v492_v51 = vmul.f32 %v4905_v45, %v4905_v45  ;;  %v430_v52 = vmul.f32 0.0078125, %v371_v49  ;;  %1015 = vmatprep.subr.bf16.mxu0 %v4010_v21  ;;  %v4022_v43 = vld [vmem:[#allocation7 + $0xc4] ss:$16 sps:$4 sm:$0xff]   ;;  %v4026_v49 = vld [vmem:[#allocation7 + $0xc0] ss:$16 sps:$4 sm:$0xff]  }
 0x109   : > { %v4569_v21 = vmov 0  }
 0x10a   : > { %400 = vadd.xlane.f32.xlu0 %v4899_v42  ;;  %523 = vadd.xlane.f32.xlu1 %v490_v44  ;;  %v4914_v50 = vsub.f32 %v4824_v4, %v429_v47  ;;  %v4923_v55 = vsub.f32 %v4827_v5, %v430_v52  ;;  %v4009_v4 = vld [vmem:[#allocation7 + $0x68] ss:$16 sps:$4 sm:$0xff]   ;;  %v4937_v5 = vld [vmem:[%s4797_s27 + $0xc0] sm:$0xff]  ;;  %v4024_v44 = vld [vmem:[#allocation7 + $0xcc] ss:$16 sps:$4 sm:$0xff]  }
 0x10b   : > { %v373_v54 = vpop.xlane.xlu0 %372  ;;  %v375_v61 = vpop.xlane.xlu1 %374  ;;  %1207 = vmatpush1.bf16.msra.mxu1 %v4009_v4  ;;  %1016 = vmatpush1.bf16.msra.mxu0 %v4014_v25  ;;  %v4964_v52 = vld [vmem:[%s4797_s27 + $0xd8] sm:$0xff]  ;;  %v4982_v4 = vld [vmem:[%s4797_s27 + $0xe8] sm:$0xff] }
 0x10c   : > { %v493_v56 = vmul.f32 %v4914_v50, %v4914_v50  ;;  %v431_v57 = vmul.f32 0.0078125, %v373_v54  ;;  %v494_v1 = vmul.f32 %v4923_v55, %v4923_v55  ;;  %v432_v2 = vmul.f32 0.0078125, %v375_v61  ;;  %1208 = vmatprep.subr.bf16.mxu1 %v4012_v22  ;;  %1017 = vmatprep.subr.bf16.mxu0 %v4016_v30  ;;  %v4032_v61 = vld [vmem:[#allocation7 + $0xe0] ss:$16 sps:$4 sm:$0xff]  }
 0x10d   : > { %1039 = vmatprep.mubr.bf16.mxu0 %v4569_v21  ;;  %1232 = vmatprep.mubr.bf16.mxu1 %v4569_v21 }
 0x10e   : > { %525 = vadd.xlane.f32.xlu0 %v491_v46  ;;  %402 = vadd.xlane.f32.xlu1 %v4910_v48  ;;  %v4932_v0 = vsub.f32 %v4830_v6, %v431_v57  ;;  %v4941_v6 = vsub.f32 %v4833_v7, %v432_v2  ;;  %v4030_v57 = vld [vmem:[#allocation7 + $0xec] ss:$16 sps:$4 sm:$0xff]  }
 0x10f   : > { %v377_v20 = vpop.xlane.xlu0 %376  ;;  %v379_v28 = vpop.xlane.xlu1 %378  ;;  %1209 = vmatpush1.bf16.msra.mxu1 %v4015_v26  ;;  %1018 = vmatpush1.bf16.msra.mxu0 %v4020_v35  ;;  %v4993_v26 = vld [vmem:[%s4797_s27 + $0xf0] sm:$0xff] }
 0x110   : > { %v495_v23 = vmul.f32 %v4932_v0, %v4932_v0  ;;  %v433_v24 = vmul.f32 0.0078125, %v377_v20  ;;  %v496_v32 = vmul.f32 %v4941_v6, %v4941_v6  ;;  %v434_v34 = vmul.f32 0.0078125, %v379_v28  ;;  %1210 = vmatprep.subr.bf16.mxu1 %v4018_v31  ;;  %1019 = vmatprep.subr.bf16.mxu0 %v4022_v43 }
 0x112   : > { %404 = vadd.xlane.f32.xlu0 %v4919_v53  ;;  %527 = vadd.xlane.f32.xlu1 %v492_v51  ;;  %v4950_v7 = vsub.f32 %v4838_v8, %v433_v24  ;;  %v4959_v8 = vsub.f32 %v4841_v9, %v434_v34  ;;  %v4027_v51 = vld [vmem:[#allocation7 + $0xc8] ss:$16 sps:$4 sm:$0xff]  }
 0x113   : > { %v381_v29 = vpop.xlane.xlu0 %380  ;;  %1211 = vmatpush1.bf16.msra.mxu1 %v4021_v36  ;;  %v383_v38 = vpop.xlane.xlu1 %382  ;;  %1020 = vmatpush1.bf16.msra.mxu0 %v4026_v49  ;;  %v5005_v34 = vld [vmem:[%s4797_s27 + $0xf8] sm:$0xff] }
 0x114   : > { %v497_v46 = vmul.f32 %v4950_v7, %v4950_v7  ;;  %v435_v47 = vmul.f32 0.0078125, %v381_v29  ;;  %1212 = vmatprep.subr.bf16.mxu1 %v4024_v44  ;;  %v498_v58 = vmul.f32 %v4959_v8, %v4959_v8  ;;  %v436_v59 = vmul.f32 0.0078125, %v383_v38 }
 0x116   : > { %406 = vadd.xlane.f32.xlu1 %v4928_v60  ;;  %529 = vadd.xlane.f32.xlu0 %v493_v56  ;;  %v4028_v56 = vld [vmem:[#allocation7 + $0xe4] ss:$16 sps:$4 sm:$0xff]   ;;  %v4968_v9 = vsub.f32 %v4846_v10, %v435_v47  ;;  %v4977_v10 = vsub.f32 %v4849_v11, %v436_v59 }
 0x117   : > { %v385_v41 = vpop.xlane.xlu0 %384  ;;  %1213 = vmatpush1.bf16.msra.mxu1 %v4027_v51  ;;  %v387_v54 = vpop.xlane.xlu1 %386  ;;  %1021 = vmatprep.subr.bf16.mxu0 %v4028_v56 }
 0x118   : > { %1214 = vmatprep.subr.bf16.mxu1 %v4030_v57  ;;  %1022 = vmatpush1.bf16.msra.mxu0 %v4032_v61  ;;  %v499_v2 = vmul.f32 %v4968_v9, %v4968_v9  ;;  %v437_v3 = vmul.f32 0.0078125, %v385_v41  ;;  %v438_v22 = vmul.f32 0.0078125, %v387_v54  ;;  %v500_v24 = vmul.f32 %v4977_v10, %v4977_v10 }
 0x11a   : > { %531 = vadd.xlane.f32.xlu1 %v494_v1  ;;  %408 = vadd.xlane.f32.xlu0 %v4937_v5  ;;  %v4988_v11 = vsub.f32 %v4854_v12, %v437_v3  ;;  %v4996_v28 = vsub.f32 %v4859_v13, %v438_v22 }
 0x11b   : > { %v389_v1 = vpop.xlane.xlu0 %388  ;;  %1215 = vmatpush1.bf16.msra.mxu1 %v4033_v62  ;;  %v391_v20 = vpop.xlane.xlu1 %390 }
 0x11c   : > { %v439_v25 = vmul.f32 0.0078125, %v389_v1  ;;  %v440_v29 = vmul.f32 0.0078125, %v391_v20  ;;  %v501_v12 = vmul.f32 %v4988_v11, %v4988_v11  ;;  %v502_v13 = vmul.f32 %v4996_v28, %v4996_v28 }
 0x11e   : > { %410 = vadd.xlane.f32.xlu1 %v4946_v27  ;;  %533 = vadd.xlane.f32.xlu0 %v495_v23  ;;  %v5000_v31 = vsub.f32 %v4862_v14, %v439_v25  ;;  %v5008_v36 = vsub.f32 %v4865_v15, %v440_v29 }
 0x11f   : > { %v393_v23 = vpop.xlane.xlu0 %392  ;;  %v395_v30 = vpop.xlane.xlu1 %394 }
 0x120   : > { %v503_v14 = vmul.f32 %v5000_v31, %v5000_v31  ;;  %v442_v41 = vmul.f32 0.0078125, %v395_v30 }
 0x122   : > { %535 = vadd.xlane.f32.xlu1 %v496_v32  ;;  %412 = vadd.xlane.f32.xlu0 %v4955_v37  ;;  %v441_v32 = vmul.f32 0.0078125, %v393_v23  ;;  %v5021_v15 = vsub.f32 %v4875_v17, %v442_v41 }
 0x123   : > { %v397_v35 = vpop.xlane.xlu0 %396  ;;  %v399_v44 = vpop.xlane.xlu1 %398 }
 0x124   : > { %v5014_v38 = vsub.f32 %v4870_v16, %v441_v32  ;;  %v443_v43 = vmul.f32 0.0078125, %v397_v35  ;;  %v444_v49 = vmul.f32 0.0078125, %v399_v44  ;;  %v506_v54 = vmul.f32 %v5021_v15, %v5021_v15 }
 0x126   : > { %414 = vadd.xlane.f32.xlu1 %v4964_v52  ;;  %537 = vadd.xlane.f32.xlu0 %v497_v46  ;;  %v504_v46 = vmul.f32 %v5008_v36, %v5008_v36  ;;  %v5024_v47 = vsub.f32 %v4878_v18, %v443_v43  ;;  %v505_v16 = vmul.f32 %v5014_v38, %v5014_v38 }
 0x127   : > { %v5029_v51 = vsub.f32 %v4883_v19, %v444_v49 }
 0x128   : > { %v507_v56 = vmul.f32 %v5024_v47, %v5024_v47 }
 0x129   : > { %v508_v17 = vmul.f32 %v5029_v51, %v5029_v51 }
 0x12a   : > { %539 = vadd.xlane.f32.xlu1 %v498_v58  ;;  %416 = vadd.xlane.f32.xlu0 %v4973_v63 }
 0x12e   : > { %418 = vadd.xlane.f32.xlu1 %v4982_v4  ;;  %541 = vadd.xlane.f32.xlu0 %v499_v2 }
 0x132   : > { %543 = vadd.xlane.f32.xlu1 %v500_v24  ;;  %420 = vadd.xlane.f32.xlu0 %v4993_v26 }
 0x136   : > { %422 = vadd.xlane.f32.xlu1 %v5005_v34  ;;  %545 = vadd.xlane.f32.xlu0 %v501_v12 }
 0x13a   : > { %547 = vadd.xlane.f32.xlu1 %v502_v13  ;;  %549 = vadd.xlane.f32.xlu0 %v503_v14 }
 0x13e   : > { %551 = vadd.xlane.f32.xlu1 %v504_v46  ;;  %553 = vadd.xlane.f32.xlu0 %v505_v16 }
 0x142   : > { %555 = vadd.xlane.f32.xlu1 %v506_v54  ;;  %557 = vadd.xlane.f32.xlu0 %v507_v56 }
 0x146   : > { %559 = vadd.xlane.f32.xlu1 %v508_v17 }
 0x193   : > { %v522_v18 = vpop.xlane.xlu0 %521 }
 0x194   : > { %v585_v57 = vmul.f32 0.0078125, %v522_v18 }
 0x196   : > { %v617_v58 = vadd.f32 1e-05, %v585_v57 }
 0x197   : > { %v524_v59 = vpop.xlane.xlu1 %523  ;;  %v401_v61 = vpop.xlane.xlu0 %400 }
 0x198   : > { %v586_v62 = vmul.f32 0.0078125, %v524_v59  ;;  %v445_v19 = vmul.f32 0.0078125, %v401_v61  ;;  %4066 = vrsqrt.f32 %v617_v58 }
 0x19a   : > { %v618_v1 = vadd.f32 1e-05, %v586_v62  ;;  %v5038_v2 = vsub.f32 %v4899_v42, %v445_v19 }
 0x19b   : > { %v403_v3 = vpop.xlane.xlu1 %402  ;;  %v526_v20 = vpop.xlane.xlu0 %525 }
 0x19c   : > { %4068 = vrsqrt.f32 %v618_v1  ;;  %v446_v22 = vmul.f32 0.0078125, %v403_v3  ;;  %v587_v23 = vmul.f32 0.0078125, %v526_v20  ;;  %v509_v24 = vmul.f32 %v5038_v2, %v5038_v2 }
 0x19e   : > { %v5043_v25 = vsub.f32 %v4910_v48, %v446_v22  ;;  %v619_v29 = vadd.f32 1e-05, %v587_v23  ;;  %561 = vadd.xlane.f32.xlu0 %v509_v24 }
 0x19f   : > { %v528_v30 = vpop.xlane.xlu1 %527  ;;  %v405_v12 = vpop.xlane.xlu0 %404 }
 0x1a0   : > { %v588_v32 = vmul.f32 0.0078125, %v528_v30  ;;  %v447_v35 = vmul.f32 0.0078125, %v405_v12  ;;  %v510_v42 = vmul.f32 %v5043_v25, %v5043_v25  ;;  %4070 = vrsqrt.f32 %v619_v29 }
 0x1a2   : > { %v620_v13 = vadd.f32 1e-05, %v588_v32  ;;  %v5048_v14 = vsub.f32 %v4919_v53, %v447_v35  ;;  %563 = vadd.xlane.f32.xlu1 %v510_v42  ;;  %v4067_v44 = vpop.eup %4066 }
 0x1a3   : > { %v407_v41 = vpop.xlane.xlu1 %406  ;;  %v530_v43 = vpop.xlane.xlu0 %529  ;;  %v681_v53 = vmul.f32 %v4067_v44, %v4888_v33 }
 0x1a4   : > { %4072 = vrsqrt.f32 %v620_v13  ;;  %v448_v48 = vmul.f32 0.0078125, %v407_v41  ;;  %v589_v46 = vmul.f32 0.0078125, %v530_v43  ;;  %v511_v16 = vmul.f32 %v5048_v14, %v5048_v14 }
 0x1a6   : > { %v4069_v49 = vpop.eup %4068  ;;  %v5053_v54 = vsub.f32 %v4928_v60, %v448_v48  ;;  %v621_v56 = vadd.f32 1e-05, %v589_v46  ;;  %565 = vadd.xlane.f32.xlu0 %v511_v16 }
 0x1a7   : > { %v532_v17 = vpop.xlane.xlu1 %531  ;;  %v409_v18 = vpop.xlane.xlu0 %408  ;;  %v682_v57 = vmul.f32 %v4069_v49, %v4893_v39 }
 0x1a8   : > { %v590_v58 = vmul.f32 0.0078125, %v532_v17  ;;  %v449_v59 = vmul.f32 0.0078125, %v409_v18  ;;  %v512_v61 = vmul.f32 %v5053_v54, %v5053_v54  ;;  %4074 = vrsqrt.f32 %v621_v56 }
 0x1a9   : > { %v713_v62 = vpack.c.bf16 %v682_v57, %v681_v53 }
 0x1aa   : > { %v622_v19 = vadd.f32 1e-05, %v590_v58  ;;  %v5060_v1 = vsub.f32 %v4937_v5, %v449_v59  ;;  %567 = vadd.xlane.f32.xlu1 %v512_v61  ;;  %v4071_v20 = vpop.eup %4070 }
 0x1ab   : > { %v411_v60 = vpop.xlane.xlu1 %410  ;;  %1040 = vmatmul.mubr.bf16.vlgmr.msra.gmra.mrb[0].mxu0 %v713_v62  ;;  %1233 = vmatmul.mubr.bf16.vlgmr.msra.gmra.mrb[0].mxu1 %v713_v62  ;;  %v534_v3 = vpop.xlane.xlu0 %533  ;;  %v683_v12 = vmul.f32 %v4071_v20, %v4896_v40 }
 0x1ac   : > { %4076 = vrsqrt.f32 %v622_v19  ;;  %v450_v33 = vmul.f32 0.0078125, %v411_v60  ;;  %v591_v39 = vmul.f32 0.0078125, %v534_v3  ;;  %v513_v22 = vmul.f32 %v5060_v1, %v5060_v1  ;;  %1049 = vmatprep.mubr.bf16.mxu0 %v4569_v21  ;;  %1242 = vmatprep.mubr.bf16.mxu1 %v4569_v21 }
 0x1ae   : > { %v4073_v23 = vpop.eup %4072  ;;  %v5067_v5 = vsub.f32 %v4946_v27, %v450_v33  ;;  %v623_v24 = vadd.f32 1e-05, %v591_v39  ;;  %569 = vadd.xlane.f32.xlu0 %v513_v22 }
 0x1af   : > { %v536_v29 = vpop.xlane.xlu1 %535  ;;  %v413_v30 = vpop.xlane.xlu0 %412  ;;  %v684_v32 = vmul.f32 %v4073_v23, %v4905_v45 }
 0x1b0   : > { %v592_v35 = vmul.f32 0.0078125, %v536_v29  ;;  %v451_v42 = vmul.f32 0.0078125, %v413_v30  ;;  %v514_v13 = vmul.f32 %v5067_v5, %v5067_v5  ;;  %4078 = vrsqrt.f32 %v623_v24 }
 0x1b1   : > { %v714_v41 = vpack.c.bf16 %v684_v32, %v683_v12 }
 0x1b2   : > { %v624_v43 = vadd.f32 1e-05, %v592_v35  ;;  %v5074_v44 = vsub.f32 %v4955_v37, %v451_v42  ;;  %571 = vadd.xlane.f32.xlu1 %v514_v13  ;;  %v4075_v46 = vpop.eup %4074 }
 0x1b3   : > { %v415_v27 = vpop.xlane.xlu1 %414  ;;  %1050 = vmatmul.mubr.bf16.gmra.mrb[4].mxu0 %v714_v41  ;;  %1243 = vmatmul.mubr.bf16.gmra.mrb[4].mxu1 %v714_v41  ;;  %v538_v48 = vpop.xlane.xlu0 %537  ;;  %v685_v53 = vmul.f32 %v4075_v46, %v4914_v50 }
 0x1b4   : > { %4080 = vrsqrt.f32 %v624_v43  ;;  %v452_v40 = vmul.f32 0.0078125, %v415_v27  ;;  %v593_v45 = vmul.f32 0.0078125, %v538_v48  ;;  %v515_v16 = vmul.f32 %v5074_v44, %v5074_v44  ;;  %1059 = vmatprep.mubr.bf16.mxu0 %v4569_v21  ;;  %1252 = vmatprep.mubr.bf16.mxu1 %v4569_v21 }
 0x1b6   : > { %v4077_v49 = vpop.eup %4076  ;;  %v5081_v37 = vsub.f32 %v4964_v52, %v452_v40  ;;  %v625_v56 = vadd.f32 1e-05, %v593_v45  ;;  %573 = vadd.xlane.f32.xlu0 %v515_v16 }
 0x1b7   : > { %v540_v17 = vpop.xlane.xlu1 %539  ;;  %v417_v18 = vpop.xlane.xlu0 %416  ;;  %v686_v57 = vmul.f32 %v4077_v49, %v4923_v55 }
 0x1b8   : > { %v594_v58 = vmul.f32 0.0078125, %v540_v17  ;;  %v453_v59 = vmul.f32 0.0078125, %v417_v18  ;;  %v516_v61 = vmul.f32 %v5081_v37, %v5081_v37  ;;  %4082 = vrsqrt.f32 %v625_v56 }
 0x1b9   : > { %v715_v62 = vpack.c.bf16 %v686_v57, %v685_v53 }
 0x1ba   : > { %v626_v19 = vadd.f32 1e-05, %v594_v58  ;;  %v5088_v60 = vsub.f32 %v4973_v63, %v453_v59  ;;  %575 = vadd.xlane.f32.xlu1 %v516_v61  ;;  %v4079_v20 = vpop.eup %4078 }
 0x1bb   : > { %v419_v52 = vpop.xlane.xlu1 %418  ;;  %1060 = vmatmul.mubr.bf16.gmra.mrb[8].mxu0 %v715_v62  ;;  %1253 = vmatmul.mubr.bf16.gmra.mrb[8].mxu1 %v715_v62  ;;  %v542_v3 = vpop.xlane.xlu0 %541  ;;  %v687_v29 = vmul.f32 %v4079_v20, %v4932_v0 }
 0x1bc   : > { %4084 = vrsqrt.f32 %v626_v19  ;;  %v454_v50 = vmul.f32 0.0078125, %v419_v52  ;;  %v595_v55 = vmul.f32 0.0078125, %v542_v3  ;;  %v517_v33 = vmul.f32 %v5088_v60, %v5088_v60  ;;  %1069 = vmatprep.mubr.bf16.mxu0 %v4569_v21  ;;  %1262 = vmatprep.mubr.bf16.mxu1 %v4569_v21 }
 0x1be   : > { %v4081_v39 = vpop.eup %4080  ;;  %v5095_v63 = vsub.f32 %v4982_v4, %v454_v50  ;;  %v627_v22 = vadd.f32 1e-05, %v595_v55  ;;  %577 = vadd.xlane.f32.xlu0 %v517_v33 }
 0x1bf   : > { %v544_v23 = vpop.xlane.xlu1 %543  ;;  %v421_v24 = vpop.xlane.xlu0 %420  ;;  %v688_v30 = vmul.f32 %v4081_v39, %v4941_v6 }
 0x1c0   : > { %v596_v12 = vmul.f32 0.0078125, %v544_v23  ;;  %v455_v32 = vmul.f32 0.0078125, %v421_v24  ;;  %v518_v35 = vmul.f32 %v5095_v63, %v5095_v63  ;;  %4086 = vrsqrt.f32 %v627_v22 }
 0x1c1   : > { %v716_v42 = vpack.c.bf16 %v688_v30, %v687_v29 }
 0x1c2   : > { %v628_v13 = vadd.f32 1e-05, %v596_v12  ;;  %v5102_v41 = vsub.f32 %v4993_v26, %v455_v32  ;;  %579 = vadd.xlane.f32.xlu1 %v518_v35  ;;  %v4083_v27 = vpop.eup %4082 }
 0x1c3   : > { %v423_v4 = vpop.xlane.xlu1 %422  ;;  %1070 = vmatmul.mubr.bf16.gmra.mrb[12].mxu0 %v716_v42  ;;  %1263 = vmatmul.mubr.bf16.gmra.mrb[12].mxu1 %v716_v42  ;;  %v546_v43 = vpop.xlane.xlu0 %545  ;;  %v689_v49 = vmul.f32 %v4083_v27, %v4950_v7 }
 0x1c4   : > { %4088 = vrsqrt.f32 %v628_v13  ;;  %v456_v0 = vmul.f32 0.0078125, %v423_v4  ;;  %v597_v6 = vmul.f32 0.0078125, %v546_v43  ;;  %v519_v48 = vmul.f32 %v5102_v41, %v5102_v41  ;;  %1079 = vmatprep.mubr.bf16.mxu0 %v4569_v21  ;;  %1272 = vmatprep.mubr.bf16.mxu1 %v4569_v21 }
 0x1c6   : > { %v4085_v46 = vpop.eup %4084  ;;  %v5109_v26 = vsub.f32 %v5005_v34, %v456_v0  ;;  %v629_v40 = vadd.f32 1e-05, %v597_v6  ;;  %581 = vadd.xlane.f32.xlu0 %v519_v48  ;;  %v4034_v6 = vld [vmem:[#allocation9 + $0x40] sm:$0xff]  }
 0x1c7   : > { %v548_v45 = vpop.xlane.xlu1 %547  ;;  %v550_v16 = vpop.xlane.xlu0 %549  ;;  %v690_v56 = vmul.f32 %v4085_v46, %v4959_v8  ;;  %v4035_v48 = vld [vmem:[#allocation9 + $0xc0] sm:$0xff]   ;;  %3670 = vmatprep.subr.bf16.mxu0 %v4034_v6  ;;  %v4065_v6 = vld [vmem:[#allocation9 + $0xb8] sm:$0xff]  }
 0x1c8   : > { %v598_v17 = vmul.f32 0.0078125, %v548_v45  ;;  %v520_v18 = vmul.f32 %v5109_v26, %v5109_v26  ;;  %4090 = vrsqrt.f32 %v629_v40  ;;  %v599_v58 = vmul.f32 0.0078125, %v550_v16  ;;  %v4036_v40 = vld [vmem:[#allocation9] sm:$0xff]   ;;  %3782 = vmatprep.subr.bf16.mxu1 %v4035_v48 }
 0x1c9   : > { %v717_v53 = vpack.c.bf16 %v690_v56, %v689_v49  ;;  %v4037_v45 = vld [vmem:[#allocation9 + $0x80] sm:$0xff]   ;;  %3671 = vmatpush3.bf16.msra.mxu0 %v4036_v40  ;;  %v4038_v56 = vld [vmem:[#allocation9 + $0x48] sm:$0xff]  }
 0x1ca   : > { %v630_v57 = vadd.f32 1e-05, %v598_v17  ;;  %583 = vadd.xlane.f32.xlu1 %v520_v18  ;;  %v4087_v34 = vpop.eup %4086  ;;  %v631_v8 = vadd.f32 1e-05, %v599_v58  ;;  %3783 = vmatpush3.bf16.msra.mxu1 %v4037_v45  ;;  %v4039_v17 = vld [vmem:[#allocation9 + $0xc8] sm:$0xff]  }
 0x1cb   : > { %v552_v59 = vpop.xlane.xlu1 %551  ;;  %1080 = vmatmul.mubr.bf16.gmra.mrb[16].mxu0 %v717_v53  ;;  %1273 = vmatmul.mubr.bf16.gmra.mrb[16].mxu1 %v717_v53  ;;  %v554_v19 = vpop.xlane.xlu0 %553  ;;  %v691_v3 = vmul.f32 %v4087_v34, %v4968_v9  ;;  %v4040_v18 = vld [vmem:[#allocation9 + $0x8] sm:$0xff]   ;;  %v4043_v34 = vld [vmem:[#allocation9 + $0xd0] sm:$0xff]  }
 0x1cc   : > { %4092 = vrsqrt.f32 %v630_v57  ;;  %v600_v61 = vmul.f32 0.0078125, %v552_v59  ;;  %1089 = vmatprep.mubr.bf16.mxu0 %v4569_v21  ;;  %1282 = vmatprep.mubr.bf16.mxu1 %v4569_v21  ;;  %v601_v33 = vmul.f32 0.0078125, %v554_v19  ;;  %v4041_v57 = vld [vmem:[#allocation9 + $0x88] sm:$0xff]   ;;  %v4042_v59 = vld [vmem:[#allocation9 + $0x50] sm:$0xff]   ;;  %v4050_v19 = vld [vmem:[#allocation9 + $0x60] sm:$0xff]  }
 0x1cd   : > { %3672 = vmatprep.subr.bf16.mxu0 %v4038_v56  ;;  %3784 = vmatprep.subr.bf16.mxu1 %v4039_v17 }
 0x1ce   : > { %v4089_v7 = vpop.eup %4088  ;;  %v632_v62 = vadd.f32 1e-05, %v600_v61  ;;  %v633_v29 = vadd.f32 1e-05, %v601_v33  ;;  %3673 = vmatpush3.bf16.msra.mxu0 %v4040_v18  ;;  %3785 = vmatpush3.bf16.msra.mxu1 %v4041_v57  ;;  %v4044_v61 = vld [vmem:[#allocation9 + $0x10] sm:$0xff]   ;;  %v4056_v33 = vld [vmem:[#allocation9 + $0x28] sm:$0xff]  }
 0x1cf   : > { %v556_v52 = vpop.xlane.xlu1 %555  ;;  %v692_v20 = vmul.f32 %v4089_v7, %v4977_v10  ;;  %v558_v30 = vpop.xlane.xlu0 %557  ;;  %v4045_v7 = vld [vmem:[#allocation9 + $0x90] sm:$0xff]   ;;  %3674 = vmatprep.subr.bf16.mxu0 %v4042_v59  ;;  %3786 = vmatprep.subr.bf16.mxu1 %v4043_v34 }
 0x1d0   : > { %4094 = vrsqrt.f32 %v632_v62  ;;  %v602_v50 = vmul.f32 0.0078125, %v556_v52  ;;  %v603_v42 = vmul.f32 0.0078125, %v558_v30  ;;  %v4049_v62 = vld [vmem:[#allocation9 + $0x98] sm:$0xff]   ;;  %v4051_v52 = vld [vmem:[#allocation9 + $0xe0] sm:$0xff]  }
 0x1d1   : > { %v718_v55 = vpack.c.bf16 %v692_v20, %v691_v3  ;;  %4096 = vrsqrt.f32 %v631_v8  ;;  %v4047_v8 = vld [vmem:[#allocation9 + $0xd8] sm:$0xff]   ;;  %v4052_v3 = vld [vmem:[#allocation9 + $0x20] sm:$0xff]  }
 0x1d2   : > { %v4091_v39 = vpop.eup %4090  ;;  %v634_v22 = vadd.f32 1e-05, %v602_v50  ;;  %v635_v27 = vadd.f32 1e-05, %v603_v42  ;;  %3675 = vmatpush3.bf16.msra.mxu0 %v4044_v61  ;;  %3787 = vmatpush3.bf16.msra.mxu1 %v4045_v7  ;;  %v4053_v20 = vld [vmem:[#allocation9 + $0xa0] sm:$0xff]   ;;  %v4054_v50 = vld [vmem:[#allocation9 + $0x68] sm:$0xff]  }
 0x1d3   : > { %1090 = vmatmul.mubr.bf16.gmra.mrb[20].mxu0 %v718_v55  ;;  %1283 = vmatmul.mubr.bf16.gmra.mrb[20].mxu1 %v718_v55  ;;  %v560_v23 = vpop.xlane.xlu1 %559  ;;  %v693_v9 = vmul.f32 %v4091_v39, %v4988_v11  ;;  %v4055_v55 = vld [vmem:[#allocation9 + $0xe8] sm:$0xff]   ;;  %v4061_v42 = vld [vmem:[#allocation9 + $0xb0] sm:$0xff]  }
 0x1d4   : > { %1099 = vmatprep.mubr.bf16.mxu0 %v4569_v21  ;;  %1292 = vmatprep.mubr.bf16.mxu1 %v4569_v21  ;;  %4098 = vrsqrt.f32 %v634_v22  ;;  %v604_v12 = vmul.f32 0.0078125, %v560_v23  ;;  %v4057_v39 = vld [vmem:[#allocation9 + $0xa8] sm:$0xff]  }
 0x1d5   : > { %4100 = vrsqrt.f32 %v633_v29  ;;  %3788 = vmatprep.subr.bf16.mxu1 %v4047_v8 }
 0x1d6   : > { %v4093_v24 = vpop.eup %4092  ;;  %v636_v4 = vadd.f32 1e-05, %v604_v12  ;;  %3789 = vmatpush3.bf16.msra.mxu1 %v4049_v62  ;;  %v4059_v12 = vld [vmem:[#allocation9 + $0xf0] sm:$0xff]  }
 0x1d7   : > { %v694_v10 = vmul.f32 %v4093_v24, %v4996_v28  ;;  %3790 = vmatprep.subr.bf16.mxu1 %v4051_v52 }
 0x1d8   : > { %4102 = vrsqrt.f32 %v636_v4 }
 0x1d9   : > { %v719_v32 = vpack.c.bf16 %v694_v10, %v693_v9  ;;  %4104 = vrsqrt.f32 %v635_v27  ;;  %v4058_v10 = vld [vmem:[#allocation9 + $0x70] sm:$0xff]   ;;  %v4063_v27 = vld [vmem:[#allocation9 + $0xf8] sm:$0xff]  }
 0x1da   : > { %v4095_v35 = vpop.eup %4094  ;;  %3791 = vmatpush3.bf16.msra.mxu1 %v4053_v20 }
 0x1db   : > { %1100 = vmatmul.mubr.bf16.gmra.mrb[24].mxu0 %v719_v32  ;;  %1293 = vmatmul.mubr.bf16.gmra.mrb[24].mxu1 %v719_v32  ;;  %v4097_v13 = vpop.eup %4096  ;;  %v696_v43 = vmul.f32 %v4095_v35, %v5008_v36  ;;  %v4060_v35 = vld [vmem:[#allocation9 + $0x30] sm:$0xff]  }
 0x1dc   : > { %1109 = vmatprep.mubr.bf16.mxu0 %v4569_v21  ;;  %1302 = vmatprep.mubr.bf16.mxu1 %v4569_v21  ;;  %v695_v11 = vmul.f32 %v4097_v13, %v5000_v31 }
 0x1dd   : > { %3792 = vmatprep.subr.bf16.mxu1 %v4055_v55 }
 0x1de   : > { %v720_v28 = vpack.c.bf16 %v696_v43, %v695_v11  ;;  %v4099_v0 = vpop.eup %4098  ;;  %3793 = vmatpush3.bf16.msra.mxu1 %v4057_v39  ;;  %v4062_v43 = vld [vmem:[#allocation9 + $0x78] sm:$0xff]  }
 0x1df   : > { %v4101_v46 = vpop.eup %4100  ;;  %v698_v36 = vmul.f32 %v4099_v0, %v5021_v15  ;;  %3794 = vmatprep.subr.bf16.mxu1 %v4059_v12  ;;  %v4064_v0 = vld [vmem:[#allocation9 + $0x38] sm:$0xff]  }
 0x1e0   : > { %v697_v31 = vmul.f32 %v4101_v46, %v5014_v38 }
 0x1e2   : > { %v721_v16 = vpack.c.bf16 %v698_v36, %v697_v31  ;;  %v4103_v49 = vpop.eup %4102  ;;  %3795 = vmatpush3.bf16.msra.mxu1 %v4061_v42 }
 0x1e3   : > { %1110 = vmatmul.mubr.bf16.gmra.mrb[28].mxu0 %v720_v28  ;;  %1303 = vmatmul.mubr.bf16.gmra.mrb[28].mxu1 %v720_v28  ;;  %v4105_v53 = vpop.eup %4104  ;;  %v700_v15 = vmul.f32 %v4103_v49, %v5029_v51  ;;  %v4046_v51 = vld [vmem:[#allocation9 + $0x58] sm:$0xff]  }
 0x1e4   : > { %1119 = vmatprep.mubr.bf16.mxu0 %v4569_v21  ;;  %1312 = vmatprep.mubr.bf16.mxu1 %v4569_v21  ;;  %v699_v38 = vmul.f32 %v4105_v53, %v5024_v47  ;;  %v4048_v47 = vld [vmem:[#allocation9 + $0x18] sm:$0xff]  }
 0x1e5   : > { %3676 = vmatprep.subr.bf16.mxu0 %v4046_v51  ;;  %3796 = vmatprep.subr.bf16.mxu1 %v4063_v27 }
 0x1e6   : > { %v722_v58 = vpack.c.bf16 %v700_v15, %v699_v38  ;;  %3677 = vmatpush3.bf16.msra.mxu0 %v4048_v47  ;;  %3797 = vmatpush3.bf16.msra.mxu1 %v4065_v6 }
 0x1e7   : > { %3678 = vmatprep.subr.bf16.mxu0 %v4050_v19 }
 0x1ea   : > { %3679 = vmatpush3.bf16.msra.mxu0 %v4052_v3 }
 0x1eb   : > { %1120 = vmatmul.mubr.bf16.gmra.mrb[32].mxu0 %v721_v16  ;;  %1313 = vmatmul.mubr.bf16.gmra.mrb[32].mxu1 %v721_v16 }
 0x1ec   : > { %1129 = vmatprep.mubr.bf16.mxu0 %v4569_v21  ;;  %1322 = vmatprep.mubr.bf16.mxu1 %v4569_v21 }
 0x1ed   : > { %3680 = vmatprep.subr.bf16.mxu0 %v4054_v50 }
 0x1ee   : > { %3681 = vmatpush3.bf16.msra.mxu0 %v4056_v33 }
 0x1ef   : > { %3682 = vmatprep.subr.bf16.mxu0 %v4058_v10 }
 0x1f2   : > { %3683 = vmatpush3.bf16.msra.mxu0 %v4060_v35 }
 0x1f3   : > { %1130 = vmatmul.mubr.bf16.gmra.mrb[36].mxu0 %v722_v58  ;;  %1323 = vmatmul.mubr.bf16.gmra.mrb[36].mxu1 %v722_v58 }
 0x1f4   : > { %1139 = vmatprep.mubr.bf16.mxu0 %v4569_v21  ;;  %1332 = vmatprep.mubr.bf16.mxu1 %v4569_v21 }
 0x1f5   : > { %3684 = vmatprep.subr.bf16.mxu0 %v4062_v43 }
 0x1f6   : > { %3685 = vmatpush3.bf16.msra.mxu0 %v4064_v0  ;;  %v825_v0 = vld [vmem:[%s7131_s2] sm:$0xf] }
 0x22b   : > { %v562_v22 = vpop.xlane.xlu0 %561 }
 0x22c   : > { %v605_v23 = vmul.f32 0.0078125, %v562_v22 }
 0x22e   : > { %v637_v24 = vadd.f32 1e-05, %v605_v23 }
 0x22f   : > { %v564_v29 = vpop.xlane.xlu1 %563 }
 0x230   : > { %v606_v30 = vmul.f32 0.0078125, %v564_v29  ;;  %4106 = vrsqrt.f32 %v637_v24 }
 0x232   : > { %v638_v9 = vadd.f32 1e-05, %v606_v30 }
 0x233   : > { %v566_v32 = vpop.xlane.xlu0 %565 }
 0x234   : > { %4108 = vrsqrt.f32 %v638_v9  ;;  %v607_v13 = vmul.f32 0.0078125, %v566_v32 }
 0x236   : > { %v639_v4 = vadd.f32 1e-05, %v607_v13 }
 0x237   : > { %v568_v11 = vpop.xlane.xlu1 %567 }
 0x238   : > { %v608_v28 = vmul.f32 0.0078125, %v568_v11  ;;  %4110 = vrsqrt.f32 %v639_v4  ;;  %v827_v11 = vlaneseq }
 0x23a   : > { %v640_v48 = vadd.f32 1e-05, %v608_v28  ;;  %v4107_v40 = vpop.eup %4106 }
 0x23b   : > { %v570_v46 = vpop.xlane.xlu0 %569  ;;  %v701_v49 = vmul.f32 %v4107_v40, %v5038_v2 }
 0x23c   : > { %4112 = vrsqrt.f32 %v640_v48  ;;  %v609_v45 = vmul.f32 0.0078125, %v570_v46 }
 0x23e   : > { %v4109_v36 = vpop.eup %4108  ;;  %v641_v31 = vadd.f32 1e-05, %v609_v45 }
 0x23f   : > { %v572_v16 = vpop.xlane.xlu1 %571  ;;  %v702_v56 = vmul.f32 %v4109_v36, %v5043_v25 }
 0x240   : > { %v610_v17 = vmul.f32 0.0078125, %v572_v16  ;;  %4114 = vrsqrt.f32 %v641_v31 }
 0x241   : > { %v723_v18 = vpack.c.bf16 %v702_v56, %v701_v49 }
 0x242   : > { %v642_v53 = vadd.f32 1e-05, %v610_v17  ;;  %v4111_v15 = vpop.eup %4110 }
 0x243   : > { %1140 = vmatmul.mubr.bf16.gmra.mrb[40].mxu0 %v723_v18  ;;  %1333 = vmatmul.mubr.bf16.gmra.mrb[40].mxu1 %v723_v18  ;;  %v574_v57 = vpop.xlane.xlu0 %573  ;;  %v703_v2 = vmul.f32 %v4111_v15, %v5048_v14 }
 0x244   : > { %4116 = vrsqrt.f32 %v642_v53  ;;  %v611_v38 = vmul.f32 0.0078125, %v574_v57  ;;  %1149 = vmatprep.mubr.bf16.mxu0 %v4569_v21  ;;  %1342 = vmatprep.mubr.bf16.mxu1 %v4569_v21 }
 0x246   : > { %v4113_v58 = vpop.eup %4112  ;;  %v643_v59 = vadd.f32 1e-05, %v611_v38 }
 0x247   : > { %v576_v34 = vpop.xlane.xlu1 %575  ;;  %v704_v25 = vmul.f32 %v4113_v58, %v5053_v54 }
 0x248   : > { %v612_v61 = vmul.f32 0.0078125, %v576_v34  ;;  %4118 = vrsqrt.f32 %v643_v59 }
 0x249   : > { %v724_v7 = vpack.c.bf16 %v704_v25, %v703_v2 }
 0x24a   : > { %v644_v51 = vadd.f32 1e-05, %v612_v61  ;;  %v4115_v47 = vpop.eup %4114 }
 0x24b   : > { %1150 = vmatmul.mubr.bf16.gmra.mrb[44].mxu0 %v724_v7  ;;  %1343 = vmatmul.mubr.bf16.gmra.mrb[44].mxu1 %v724_v7  ;;  %v578_v8 = vpop.xlane.xlu0 %577  ;;  %v705_v14 = vmul.f32 %v4115_v47, %v5060_v1 }
 0x24c   : > { %4120 = vrsqrt.f32 %v644_v51  ;;  %v613_v62 = vmul.f32 0.0078125, %v578_v8  ;;  %1159 = vmatprep.mubr.bf16.mxu0 %v4569_v21  ;;  %1352 = vmatprep.mubr.bf16.mxu1 %v4569_v21 }
 0x24e   : > { %v4117_v19 = vpop.eup %4116  ;;  %v645_v52 = vadd.f32 1e-05, %v613_v62 }
 0x24f   : > { %v580_v3 = vpop.xlane.xlu1 %579  ;;  %v706_v54 = vmul.f32 %v4117_v19, %v5067_v5 }
 0x250   : > { %v614_v20 = vmul.f32 0.0078125, %v580_v3  ;;  %4122 = vrsqrt.f32 %v645_v52 }
 0x251   : > { %v725_v50 = vpack.c.bf16 %v706_v54, %v705_v14 }
 0x252   : > { %v646_v55 = vadd.f32 1e-05, %v614_v20  ;;  %v4119_v39 = vpop.eup %4118 }
 0x253   : > { %1160 = vmatmul.mubr.bf16.gmra.mrb[48].mxu0 %v725_v50  ;;  %1353 = vmatmul.mubr.bf16.gmra.mrb[48].mxu1 %v725_v50  ;;  %v582_v33 = vpop.xlane.xlu0 %581  ;;  %v707_v1 = vmul.f32 %v4119_v39, %v5074_v44 }
 0x254   : > { %4124 = vrsqrt.f32 %v646_v55  ;;  %v615_v22 = vmul.f32 0.0078125, %v582_v33  ;;  %1169 = vmatprep.mubr.bf16.mxu0 %v4569_v21  ;;  %1362 = vmatprep.mubr.bf16.mxu1 %v4569_v21 }
 0x256   : > { %v4121_v23 = vpop.eup %4120  ;;  %v647_v24 = vadd.f32 1e-05, %v615_v22 }
 0x257   : > { %v584_v29 = vpop.xlane.xlu1 %583  ;;  %v708_v5 = vmul.f32 %v4121_v23, %v5081_v37 }
 0x258   : > { %v616_v30 = vmul.f32 0.0078125, %v584_v29  ;;  %4126 = vrsqrt.f32 %v647_v24 }
 0x259   : > { %v726_v9 = vpack.c.bf16 %v708_v5, %v707_v1 }
 0x25a   : > { %v648_v10 = vadd.f32 1e-05, %v616_v30  ;;  %v4123_v12 = vpop.eup %4122 }
 0x25b   : > { %1170 = vmatmul.mubr.bf16.gmra.mrb[52].mxu0 %v726_v9  ;;  %1363 = vmatmul.mubr.bf16.gmra.mrb[52].mxu1 %v726_v9  ;;  %v709_v35 = vmul.f32 %v4123_v12, %v5088_v60  ;;  %v828_v60 = vshrl.u32 %v827_v11, 7 }
 0x25c   : > { %4128 = vrsqrt.f32 %v648_v10  ;;  %1179 = vmatprep.mubr.bf16.mxu0 %v4569_v21  ;;  %1372 = vmatprep.mubr.bf16.mxu1 %v4569_v21 }
 0x25d   : > { %v829_v28 = vsub.s32 0, %v828_v60  ;;  %v833_v6 = vsub.s32 1, %v828_v60  ;;  %v841_v48 = vsub.s32 3, %v828_v60 }
 0x25e   : > { %v4125_v32 = vpop.eup %4124 }
 0x25f   : > { %v710_v42 = vmul.f32 %v4125_v32, %v5095_v63  ;;  %v837_v63 = vsub.s32 2, %v828_v60  ;;  %v5162_v46 = vrot.slane %v825_v0, %v829_v28 }
 0x261   : > { %v727_v44 = vpack.c.bf16 %v710_v42, %v709_v35 }
 0x262   : > { %v4127_v37 = vpop.eup %4126 }
 0x263   : > { %1180 = vmatmul.mubr.bf16.gmra.mrb[56].mxu0 %v727_v44  ;;  %1373 = vmatmul.mubr.bf16.gmra.mrb[56].mxu1 %v727_v44  ;;  %v711_v4 = vmul.f32 %v4127_v37, %v5102_v41  ;;  %v5166_v41 = vrot.slane %v825_v0, %v833_v6 }
 0x264   : > { %1189 = vmatprep.mubr.bf16.mxu0 %v4569_v21  ;;  %1382 = vmatprep.mubr.bf16.mxu1 %v4569_v21  ;;  %v5164_v21 = vrot.slane %v825_v0, %v837_v63 }
 0x265   : > { %7229 = vst [vmem:[#allocation14_spill] sm:$0xff] %v5166_v41 }
 0x266   : > { %v4129_v13 = vpop.eup %4128 }
 0x267   : > { %v712_v43 = vmul.f32 %v4129_v13, %v5109_v26  ;;  %v5168_v26 = vrot.slane %v825_v0, %v841_v48 }
 0x269   : > { %v728_v27 = vpack.c.bf16 %v712_v43, %v711_v4  ;;  %7230 = vst [vmem:[#allocation15_spill] sm:$0xff] %v5168_v26 }
 0x26b   : > { %1190 = vmatmul.mubr.bf16.gmra.mrb[60].mxu0 %v728_v27  ;;  %1383 = vmatmul.mubr.bf16.gmra.mrb[60].mxu1 %v728_v27 }
 0x27e   : > { %v1041_v40 = vpop.f32.mrb[0].mxu0  ;;  %v1234_v45 = vpop.f32.mrb[0].mxu1 }
 0x27f   : > { %v5171_v36 = vadd.f32 %v1041_v40, %v5162_v46  ;;  %v5174_v31 = vadd.f32 %v1234_v45, %v5164_v21  ;;  %v1043_v16 = vpop.f32.mrb[1].mxu0  ;;  %v1236_v49 = vpop.f32.mrb[1].mxu1 }
 0x280   : > { %v5177_v56 = vadd.f32 %v1043_v16, %v5166_v41  ;;  %v5180_v17 = vadd.f32 %v1236_v49, %v5168_v26  ;;  %v1045_v18 = vpop.f32.mrb[2].mxu0  ;;  %v1238_v53 = vpop.f32.mrb[2].mxu1 }
 0x281   : > { %v1393_v57 = vmul.f32 %v5171_v36, %v5171_v36  ;;  %v1395_v15 = vmul.f32 %v5174_v31, %v5174_v31  ;;  %v5187_v38 = vadd.f32 %v1045_v18, %v5162_v46  ;;  %v5190_v58 = vadd.f32 %v1238_v53, %v5164_v21  ;;  %v1047_v59 = vpop.f32.mrb[3].mxu0  ;;  %v1240_v34 = vpop.f32.mrb[3].mxu1 }
 0x282   : > { %v1394_v2 = vmul.f32 %v5177_v56, %v5177_v56  ;;  %v1396_v25 = vmul.f32 %v5180_v17, %v5180_v17  ;;  %v5197_v61 = vadd.f32 %v1047_v59, %v5166_v41  ;;  %v5200_v7 = vadd.f32 %v1240_v34, %v5168_v26 }
 0x283   : > { %v1521_v51 = vmul.f32 %v1393_v57, %v5171_v36  ;;  %v1523_v8 = vmul.f32 %v1395_v15, %v5174_v31  ;;  %v1397_v47 = vmul.f32 %v5187_v38, %v5187_v38  ;;  %v1399_v62 = vmul.f32 %v5190_v58, %v5190_v58 }
 0x284   : > { %v1522_v19 = vmul.f32 %v1394_v2, %v5177_v56  ;;  %v1524_v52 = vmul.f32 %v1396_v25, %v5180_v17  ;;  %v1398_v3 = vmul.f32 %v5197_v61, %v5197_v61  ;;  %v1400_v14 = vmul.f32 %v5200_v7, %v5200_v7 }
 0x285   : > { %v1649_v54 = vmul.f32 0.044715, %v1521_v51  ;;  %v1651_v20 = vmul.f32 0.044715, %v1523_v8  ;;  %v1525_v50 = vmul.f32 %v1397_v47, %v5187_v38  ;;  %v1527_v55 = vmul.f32 %v1399_v62, %v5190_v58 }
 0x286   : > { %v1650_v33 = vmul.f32 0.044715, %v1522_v19  ;;  %v1652_v39 = vmul.f32 0.044715, %v1524_v52  ;;  %v1526_v22 = vmul.f32 %v1398_v3, %v5197_v61  ;;  %v1528_v23 = vmul.f32 %v1400_v14, %v5200_v7  ;;  %v1051_v24 = vpop.f32.mrb[4].mxu0  ;;  %v1244_v29 = vpop.f32.mrb[4].mxu1 }
 0x287   : > { %v1777_v1 = vadd.f32 %v1649_v54, %v5171_v36  ;;  %v1779_v5 = vadd.f32 %v1651_v20, %v5174_v31  ;;  %v1653_v30 = vmul.f32 0.044715, %v1525_v50  ;;  %v1655_v9 = vmul.f32 0.044715, %v1527_v55  ;;  %v1053_v10 = vpop.f32.mrb[5].mxu0  ;;  %v1246_v12 = vpop.f32.mrb[5].mxu1 }
 0x288   : > { %v1778_v32 = vadd.f32 %v1650_v33, %v5177_v56  ;;  %v1780_v35 = vadd.f32 %v1652_v39, %v5180_v17  ;;  %v1654_v42 = vmul.f32 0.044715, %v1526_v22  ;;  %v1656_v44 = vmul.f32 0.044715, %v1528_v23  ;;  %v1055_v37 = vpop.f32.mrb[6].mxu0  ;;  %v1248_v13 = vpop.f32.mrb[6].mxu1 }
 0x289   : > { %v1905_v4 = vmul.f32 0.7978846, %v1777_v1  ;;  %v1907_v43 = vmul.f32 0.7978846, %v1779_v5  ;;  %v1781_v27 = vadd.f32 %v1653_v30, %v5187_v38  ;;  %v1783_v11 = vadd.f32 %v1655_v9, %v5190_v58  ;;  %v1057_v60 = vpop.f32.mrb[7].mxu0  ;;  %v1250_v28 = vpop.f32.mrb[7].mxu1 }
 0x28a   : > { %v1906_v63 = vmul.f32 0.7978846, %v1778_v32  ;;  %v1908_v0 = vmul.f32 0.7978846, %v1780_v35  ;;  %v1782_v6 = vadd.f32 %v1654_v42, %v5197_v61  ;;  %v1784_v48 = vadd.f32 %v1656_v44, %v5200_v7 }
 0x28b   : > { %4130 = vtanh.f32 %v1905_v4  ;;  %v1909_v40 = vmul.f32 0.7978846, %v1781_v27  ;;  %v1911_v45 = vmul.f32 0.7978846, %v1783_v11  ;;  %v5227_v16 = vadd.f32 %v1051_v24, %v5162_v46 }
 0x28c   : > { %4132 = vtanh.f32 %v1907_v43  ;;  %v1910_v49 = vmul.f32 0.7978846, %v1782_v6  ;;  %v1912_v18 = vmul.f32 0.7978846, %v1784_v48  ;;  %v5230_v53 = vadd.f32 %v1244_v29, %v5164_v21 }
 0x28d   : > { %7231 = vst [vmem:[#allocation16_spill] sm:$0xff] %v5227_v16  ;;  %4134 = vtanh.f32 %v1906_v63  ;;  %v1401_v57 = vmul.f32 %v5227_v16, %v5227_v16  ;;  %v5235_v15 = vadd.f32 %v1053_v10, %v5166_v41  ;;  %v5238_v59 = vadd.f32 %v1246_v12, %v5168_v26 }
 0x28e   : > { %7232 = vst [vmem:[#allocation17_spill] sm:$0xff] %v5230_v53  ;;  %4136 = vtanh.f32 %v1908_v0  ;;  %v1403_v34 = vmul.f32 %v5230_v53, %v5230_v53  ;;  %v5243_v2 = vadd.f32 %v1055_v37, %v5162_v46  ;;  %v5246_v25 = vadd.f32 %v1248_v13, %v5164_v21  ;;  %v5248_v51 = vpop.f32.mrb[8].mxu0  ;;  %v5250_v8 = vpop.f32.mrb[8].mxu1 }
 0x28f   : > { %7233 = vst [vmem:[#allocation18_spill] sm:$0xff] %v5238_v59  ;;  %4138 = vtanh.f32 %v1909_v40  ;;  %v1529_v47 = vmul.f32 %v1401_v57, %v5227_v16  ;;  %v1402_v62 = vmul.f32 %v5235_v15, %v5235_v15  ;;  %v1404_v19 = vmul.f32 %v5238_v59, %v5238_v59  ;;  %v5257_v52 = vpop.f32.mrb[9].mxu0  ;;  %v5259_v3 = vpop.f32.mrb[9].mxu1 }
 0x290   : > { %7234 = vst [vmem:[#allocation19_spill] sm:$0xff] %v5243_v2  ;;  %7235 = vst [vmem:[#allocation20_spill] sm:$0xff] %v5246_v25  ;;  %4140 = vtanh.f32 %v1911_v45  ;;  %v1531_v14 = vmul.f32 %v1403_v34, %v5230_v53  ;;  %v1405_v54 = vmul.f32 %v5243_v2, %v5243_v2  ;;  %v1407_v20 = vmul.f32 %v5246_v25, %v5246_v25  ;;  %v5266_v50 = vpop.f32.mrb[10].mxu0  ;;  %v5268_v55 = vpop.f32.mrb[10].mxu1 }
 0x291   : > { %4142 = vtanh.f32 %v1910_v49  ;;  %v1657_v33 = vmul.f32 0.044715, %v1529_v47  ;;  %v1530_v39 = vmul.f32 %v1402_v62, %v5235_v15  ;;  %v1532_v22 = vmul.f32 %v1404_v19, %v5238_v59  ;;  %v5272_v23 = vpop.f32.mrb[11].mxu0  ;;  %v5274_v24 = vpop.f32.mrb[11].mxu1 }
 0x292   : > { %4144 = vtanh.f32 %v1912_v18  ;;  %v1659_v29 = vmul.f32 0.044715, %v1531_v14  ;;  %v1533_v1 = vmul.f32 %v1405_v54, %v5243_v2  ;;  %v1535_v5 = vmul.f32 %v1407_v20, %v5246_v25 }
 0x293   : > { %v1785_v30 = vadd.f32 %v1657_v33, %v5227_v16  ;;  %v1658_v9 = vmul.f32 0.044715, %v1530_v39  ;;  %v1660_v10 = vmul.f32 0.044715, %v1532_v22  ;;  %v5280_v12 = vadd.f32 %v1057_v60, %v5166_v41 }
 0x294   : > { %v1787_v32 = vadd.f32 %v1659_v29, %v5230_v53  ;;  %v1661_v35 = vmul.f32 0.044715, %v1533_v1  ;;  %v1663_v42 = vmul.f32 0.044715, %v1535_v5  ;;  %v5284_v44 = vadd.f32 %v1250_v28, %v5168_v26 }
 0x295   : > { %7236 = vst [vmem:[#allocation21_spill] sm:$0xff] %v5280_v12  ;;  %v4131_v37 = vpop.eup %4130  ;;  %v1913_v13 = vmul.f32 0.7978846, %v1785_v30  ;;  %v1786_v4 = vadd.f32 %v1658_v9, %v5235_v15  ;;  %v1788_v43 = vadd.f32 %v1660_v10, %v5238_v59  ;;  %v1406_v27 = vmul.f32 %v5280_v12, %v5280_v12 }
 0x296   : > { %7237 = vst [vmem:[#allocation22_spill] sm:$0xff] %v5284_v44  ;;  %v4133_v11 = vpop.eup %4132  ;;  %v2161_v63 = vadd.f32 1.0, %v4131_v37  ;;  %v1915_v60 = vmul.f32 0.7978846, %v1787_v32  ;;  %v1789_v0 = vadd.f32 %v1661_v35, %v5243_v2  ;;  %v1791_v6 = vadd.f32 %v1663_v42, %v5246_v25  ;;  %v5292_v48 = vpop.f32.mrb[12].mxu0 }
 0x297   : > { %v5294_v28 = vpop.f32.mrb[12].mxu1  ;;  %v5296_v40 = vpop.eup %4134  ;;  %v2163_v45 = vadd.f32 1.0, %v4133_v11  ;;  %4146 = vtanh.f32 %v1913_v13  ;;  %v1914_v49 = vmul.f32 0.7978846, %v1786_v4  ;;  %v1916_v18 = vmul.f32 0.7978846, %v1788_v43 }
 0x298   : > { %v5298_v57 = vpop.f32.mrb[13].mxu0  ;;  %v5300_v34 = vpop.eup %4136  ;;  %v2289_v47 = vmul.f32 0.5, %v2161_v63  ;;  %4148 = vtanh.f32 %v1915_v60  ;;  %v1917_v62 = vmul.f32 0.7978846, %v1789_v0  ;;  %v1919_v19 = vmul.f32 0.7978846, %v1791_v6 }
 0x299   : > { %v5302_v14 = vpop.f32.mrb[13].mxu1  ;;  %v4139_v54 = vpop.eup %4138  ;;  %v2291_v20 = vmul.f32 0.5, %v2163_v45  ;;  %4150 = vtanh.f32 %v1914_v49  ;;  %v1534_v33 = vmul.f32 %v1406_v27, %v5280_v12  ;;  %v1408_v39 = vmul.f32 %v5284_v44, %v5284_v44 }
 0x29a   : > { %v5307_v22 = vpop.f32.mrb[14].mxu0  ;;  %v5309_v29 = vpop.f32.mrb[14].mxu1  ;;  %v5312_v5 = vmul.f32 %v2289_v47, %v5171_v36  ;;  %v2165_v30 = vadd.f32 1.0, %v4139_v54  ;;  %4152 = vtanh.f32 %v1916_v18  ;;  %v5316_v9 = vadd.f32 %v5248_v51, %v5162_v46 }
 0x29b   : > { %v4141_v1 = vpop.eup %4140  ;;  %v5318_v10 = vpop.f32.mrb[15].mxu0  ;;  %v5325_v42 = vmul.f32 %v2291_v20, %v5174_v31  ;;  %4154 = vtanh.f32 %v1917_v62  ;;  %v1662_v13 = vmul.f32 0.044715, %v1534_v33  ;;  %v1536_v43 = vmul.f32 %v1408_v39, %v5284_v44 }
 0x29c   : > { %7238 = vst [vmem:[#allocation23_spill] sm:$0xff] %v5316_v9  ;;  %v5320_v32 = vpop.f32.mrb[15].mxu1  ;;  %v5322_v35 = vpop.eup %4142  ;;  %v2167_v37 = vadd.f32 1.0, %v4141_v1  ;;  %v2293_v4 = vmul.f32 0.5, %v2165_v30  ;;  %4156 = vtanh.f32 %v1919_v19  ;;  %v1409_v51 = vmul.f32 %v5316_v9, %v5316_v9 }
 0x29d   : > { %v5327_v36 = vpop.eup %4144  ;;  %v1790_v11 = vadd.f32 %v1662_v13, %v5280_v12  ;;  %v5335_v63 = vadd.f32 %v5250_v8, %v5164_v21  ;;  %v5339_v31 = vadd.f32 %v5257_v52, %v5166_v41  ;;  %v1664_v0 = vmul.f32 0.044715, %v1536_v43 }
 0x29e   : > { %v2295_v27 = vmul.f32 0.5, %v2167_v37  ;;  %v5342_v60 = vmul.f32 %v2293_v4, %v5187_v38  ;;  %v1537_v6 = vmul.f32 %v1409_v51, %v5316_v9  ;;  %v5347_v45 = vadd.f32 %v5259_v3, %v5168_v26  ;;  %v5349_v49 = vpop.f32.mrb[16].mxu0  ;;  %v5351_v18 = vpop.f32.mrb[16].mxu1 }
 0x29f   : > { %7239 = vst [vmem:[#allocation24_spill] sm:$0xff] %v5335_v63  ;;  %7240 = vst [vmem:[#allocation25_spill] sm:$0xff] %v5339_v31  ;;  %v1918_v47 = vmul.f32 0.7978846, %v1790_v11  ;;  %v1411_v52 = vmul.f32 %v5335_v63, %v5335_v63  ;;  %v1410_v38 = vmul.f32 %v5339_v31, %v5339_v31  ;;  %v5360_v62 = vpop.f32.mrb[17].mxu0  ;;  %v5362_v19 = vpop.f32.mrb[17].mxu1  ;;  %v1792_v54 = vadd.f32 %v1664_v0, %v5284_v44 }
 0x2a0   : > { %7241 = vst [vmem:[#allocation26_spill] sm:$0xff] %v5347_v45  ;;  %v5354_v8 = vmul.f32 %v2295_v27, %v5190_v58  ;;  %v1665_v20 = vmul.f32 0.044715, %v1537_v6  ;;  %v1412_v58 = vmul.f32 %v5347_v45, %v5347_v45  ;;  %v5369_v33 = vpop.f32.mrb[18].mxu0  ;;  %v5371_v39 = vpop.f32.mrb[18].mxu1  ;;  %v5389_v6 = vadd.f32 %v5266_v50, %v5162_v46 }
 0x2a1   : > { %v5373_v1 = vpop.eup %4146  ;;  %4158 = vtanh.f32 %v1918_v47  ;;  %v1539_v37 = vmul.f32 %v1411_v52, %v5335_v63  ;;  %v1538_v13 = vmul.f32 %v1410_v38, %v5339_v31  ;;  %v5379_v4 = vpop.f32.mrb[19].mxu0  ;;  %v1920_v27 = vmul.f32 0.7978846, %v1792_v54 }
 0x2a2   : > { %v5381_v43 = vpop.f32.mrb[19].mxu1  ;;  %v5383_v51 = vpop.eup %4148  ;;  %v1793_v11 = vadd.f32 %v1665_v20, %v5316_v9  ;;  %v1540_v0 = vmul.f32 %v1412_v58, %v5347_v45  ;;  %7243 = vst [vmem:[#allocation28_spill] sm:$0xff] %v5389_v6  ;;  %v5395_v38 = vadd.f32 %v5268_v55, %v5164_v21  ;;  %v5399_v3 = vadd.f32 %v5272_v23, %v5166_v41 }
 0x2a3   : > { %7242 = vst [vmem:[#allocation27_spill] sm:$0xff] %v5383_v51  ;;  %v5391_v47 = vpop.eup %4150  ;;  %v1667_v52 = vmul.f32 0.044715, %v1539_v37  ;;  %v1666_v30 = vmul.f32 0.044715, %v1538_v13  ;;  %4160 = vtanh.f32 %v1920_v27  ;;  %v1413_v50 = vmul.f32 %v5389_v6, %v5389_v6 }
 0x2a4   : > { %7244 = vst [vmem:[#allocation29_spill] sm:$0xff] %v5395_v38  ;;  %7245 = vst [vmem:[#allocation30_spill] sm:$0xff] %v5399_v3  ;;  %v5401_v54 = vpop.eup %4152  ;;  %v1921_v20 = vmul.f32 0.7978846, %v1793_v11  ;;  %v1668_v58 = vmul.f32 0.044715, %v1540_v0  ;;  %v1415_v55 = vmul.f32 %v5395_v38, %v5395_v38  ;;  %v1414_v23 = vmul.f32 %v5399_v3, %v5399_v3 }
 0x2a5   : > { %v5405_v9 = vpop.eup %4154  ;;  %v1795_v37 = vadd.f32 %v1667_v52, %v5335_v63  ;;  %v1794_v13 = vadd.f32 %v1666_v30, %v5339_v31  ;;  %v1541_v11 = vmul.f32 %v1413_v50, %v5389_v6  ;;  %v5419_v0 = vadd.f32 %v5274_v24, %v5168_v26 }
 0x2a6   : > { %7246 = vst [vmem:[#allocation31_spill] sm:$0xff] %v5405_v9  ;;  %v5413_v25 = vpop.eup %4156  ;;  %4162 = vtanh.f32 %v1921_v20  ;;  %v1796_v27 = vadd.f32 %v1668_v58, %v5347_v45  ;;  %v5421_v52 = vpop.f32.mrb[20].mxu0  ;;  %v1543_v53 = vmul.f32 %v1415_v55, %v5395_v38  ;;  %v1542_v2 = vmul.f32 %v1414_v23, %v5399_v3 }
 0x2a7   : > { %7247 = vst [vmem:[#allocation32_spill] sm:$0xff] %v5413_v25  ;;  %7248 = vst [vmem:[#allocation33_spill] sm:$0xff] %v5419_v0  ;;  %v5423_v30 = vpop.f32.mrb[20].mxu1  ;;  %v1923_v63 = vmul.f32 0.7978846, %v1795_v37  ;;  %v5427_v16 = vpop.f32.mrb[21].mxu0  ;;  %v1416_v24 = vmul.f32 %v5419_v0, %v5419_v0  ;;  %v5435_v45 = vadd.f32 %v5292_v48, %v5162_v46  ;;  %v5443_v23 = vadd.f32 %v5294_v28, %v5164_v21 }
 0x2a8   : > { %v1922_v31 = vmul.f32 0.7978846, %v1794_v13  ;;  %v5429_v20 = vpop.f32.mrb[21].mxu1  ;;  %v1924_v58 = vmul.f32 0.7978846, %v1796_v27  ;;  %v5437_v25 = vpop.f32.mrb[22].mxu0 }
 0x2a9   : > { %v1669_v50 = vmul.f32 0.044715, %v1541_v11  ;;  %7249 = vst [vmem:[#allocation34_spill] sm:$0xff] %v5435_v45  ;;  %v5439_v37 = vpop.f32.mrb[22].mxu1  ;;  %4164 = vtanh.f32 %v1923_v63  ;;  %v1671_v13 = vmul.f32 0.044715, %v1543_v53  ;;  %v1544_v48 = vmul.f32 %v1416_v24, %v5419_v0 }
 0x2aa   : > { %v1670_v55 = vmul.f32 0.044715, %v1542_v2  ;;  %7250 = vst [vmem:[#allocation35_spill] sm:$0xff] %v5443_v23  ;;  %v5445_v27 = vpop.f32.mrb[23].mxu0  ;;  %v5447_v11 = vpop.f32.mrb[23].mxu1  ;;  %4166 = vtanh.f32 %v1922_v31  ;;  %v1417_v44 = vmul.f32 %v5435_v45, %v5435_v45  ;;  %v1419_v28 = vmul.f32 %v5443_v23, %v5443_v23 }
 0x2ab   : > { %v1797_v51 = vadd.f32 %v1669_v50, %v5389_v6  ;;  %v5453_v9 = vpop.eup %4158  ;;  %4168 = vtanh.f32 %v1924_v58  ;;  %v1799_v53 = vadd.f32 %v1671_v13, %v5395_v38  ;;  %v1672_v59 = vmul.f32 0.044715, %v1544_v48 }
 0x2ac   : > { %v1798_v2 = vadd.f32 %v1670_v55, %v5399_v3  ;;  %v1545_v31 = vmul.f32 %v1417_v44, %v5435_v45  ;;  %v5462_v50 = vadd.f32 %v5298_v57, %v5166_v41  ;;  %v1547_v12 = vmul.f32 %v1419_v28, %v5443_v23 }
 0x2ad   : > { %v1925_v63 = vmul.f32 0.7978846, %v1797_v51  ;;  %v1927_v24 = vmul.f32 0.7978846, %v1799_v53  ;;  %v5467_v58 = vadd.f32 %v5302_v14, %v5168_v26  ;;  %v5469_v13 = vpop.eup %4160  ;;  %v1800_v51 = vadd.f32 %v1672_v59, %v5419_v0 }
 0x2ae   : > { %7251 = vst [vmem:[#allocation36_spill] sm:$0xff] %v5462_v50  ;;  %v1926_v6 = vmul.f32 0.7978846, %v1798_v2  ;;  %v1673_v55 = vmul.f32 0.044715, %v1545_v31  ;;  %v1418_v44 = vmul.f32 %v5462_v50, %v5462_v50  ;;  %v5474_v48 = vpop.f32.mrb[24].mxu0  ;;  %v5482_v14 = vadd.f32 %v5307_v22, %v5162_v46 }
 0x2af   : > { %7252 = vst [vmem:[#allocation37_spill] sm:$0xff] %v5467_v58  ;;  %4170 = vtanh.f32 %v1925_v63  ;;  %v5476_v57 = vpop.f32.mrb[24].mxu1  ;;  %v1675_v53 = vmul.f32 0.044715, %v1547_v12  ;;  %v1420_v2 = vmul.f32 %v5467_v58, %v5467_v58  ;;  %v5484_v28 = vpop.f32.mrb[25].mxu0 }
 0x2b0   : > { %4172 = vtanh.f32 %v1927_v24  ;;  %7253 = vst [vmem:[#allocation38_spill] sm:$0xff] %v5482_v14  ;;  %7254 = vst [vmem:[#allocation39_spill] sm:$0xff] %v5484_v28  ;;  %v5486_v59 = vpop.f32.mrb[25].mxu1  ;;  %v5488_v63 = vpop.eup %4162  ;;  %v1928_v31 = vmul.f32 0.7978846, %v1800_v51  ;;  %v1801_v38 = vadd.f32 %v1673_v55, %v5435_v45  ;;  %v1546_v24 = vmul.f32 %v1418_v44, %v5462_v50 }
 0x2b1   : > { %7255 = vst [vmem:[#allocation40_spill] sm:$0xff] %v5488_v63  ;;  %4174 = vtanh.f32 %v1926_v6  ;;  %v5492_v12 = vpop.f32.mrb[26].mxu0  ;;  %v5494_v0 = vpop.f32.mrb[26].mxu1  ;;  %v1803_v3 = vadd.f32 %v1675_v53, %v5443_v23  ;;  %v1548_v22 = vmul.f32 %v1420_v2, %v5467_v58  ;;  %v1421_v28 = vmul.f32 %v5482_v14, %v5482_v14 }
 0x2b2   : > { %7256 = vst [vmem:[#allocation41_spill] sm:$0xff] %v5492_v12  ;;  %7257 = vst [vmem:[#allocation42_spill] sm:$0xff] %v5494_v0  ;;  %v5502_v63 = vadd.f32 %v5309_v29, %v5164_v21  ;;  %v5504_v6 = vpop.f32.mrb[27].mxu0  ;;  %v5506_v51 = vpop.f32.mrb[27].mxu1  ;;  %4176 = vtanh.f32 %v1928_v31  ;;  %v1929_v55 = vmul.f32 0.7978846, %v1801_v38  ;;  %v5510_v45 = vadd.f32 %v5318_v10, %v5166_v41 }
 0x2b3   : > { %v1674_v44 = vmul.f32 0.044715, %v1546_v24  ;;  %v5512_v53 = vpop.eup %4164  ;;  %v1931_v2 = vmul.f32 0.7978846, %v1803_v3  ;;  %v1676_v23 = vmul.f32 0.044715, %v1548_v22  ;;  %v1549_v0 = vmul.f32 %v1421_v28, %v5482_v14 }
 0x2b4   : > { %7258 = vst [vmem:[#allocation43_spill] sm:$0xff] %v5502_v63  ;;  %7259 = vst [vmem:[#allocation44_spill] sm:$0xff] %v5510_v45  ;;  %v1423_v29 = vmul.f32 %v5502_v63, %v5502_v63  ;;  %v5517_v12 = vpop.eup %4166  ;;  %4178 = vtanh.f32 %v1929_v55  ;;  %v1422_v38 = vmul.f32 %v5510_v45, %v5510_v45  ;;  %v5524_v10 = vadd.f32 %v5320_v32, %v5168_v26 }
 0x2b5   : > { %7260 = vst [vmem:[#allocation45_spill] sm:$0xff] %v5512_v53  ;;  %7261 = vst [vmem:[#allocation46_spill] sm:$0xff] %v5517_v12  ;;  %v1802_v31 = vadd.f32 %v1674_v44, %v5462_v50  ;;  %v5526_v24 = vpop.eup %4168  ;;  %4180 = vtanh.f32 %v1931_v2  ;;  %v1804_v3 = vadd.f32 %v1676_v23, %v5467_v58  ;;  %v1677_v28 = vmul.f32 0.044715, %v1549_v0 }
 0x2b6   : > { %7262 = vst [vmem:[#allocation47_spill] sm:$0xff] %v5524_v10  ;;  %v1551_v22 = vmul.f32 %v1423_v29, %v5502_v63  ;;  %v1550_v55 = vmul.f32 %v1422_v38, %v5510_v45  ;;  %v1424_v44 = vmul.f32 %v5524_v10, %v5524_v10  ;;  %v5535_v50 = vadd.f32 %v5349_v49, %v5162_v46  ;;  %v5537_v32 = vpop.f32.mrb[28].mxu0  ;;  %v5539_v12 = vpop.f32.mrb[28].mxu1 }
 0x2b7   : > { %v1930_v53 = vmul.f32 0.7978846, %v1802_v31  ;;  %7264 = vst [vmem:[#allocation49_spill] sm:$0xff] %v5537_v32  ;;  %7265 = vst [vmem:[#allocation50_spill] sm:$0xff] %v5539_v12  ;;  %v1932_v2 = vmul.f32 0.7978846, %v1804_v3  ;;  %v1805_v23 = vadd.f32 %v1677_v28, %v5482_v14  ;;  %v5544_v29 = vadd.f32 %v5351_v18, %v5164_v21 }
 0x2b8   : > { %7263 = vst [vmem:[#allocation48_spill] sm:$0xff] %v5535_v50  ;;  %v1679_v0 = vmul.f32 0.044715, %v1551_v22  ;;  %v5546_v31 = vpop.f32.mrb[29].mxu0  ;;  %v5548_v38 = vpop.f32.mrb[29].mxu1  ;;  %v1552_v32 = vmul.f32 %v1424_v44, %v5524_v10  ;;  %v1425_v3 = vmul.f32 %v5535_v50, %v5535_v50 }
 0x2b9   : > { %7266 = vst [vmem:[#allocation51_spill] sm:$0xff] %v5544_v29  ;;  %7267 = vst [vmem:[#allocation52_spill] sm:$0xff] %v5546_v31  ;;  %v5550_v58 = vpop.eup %4170  ;;  %4182 = vtanh.f32 %v1930_v53  ;;  %v1678_v49 = vmul.f32 0.044715, %v1550_v55  ;;  %v5555_v12 = vpop.f32.mrb[30].mxu0 }
 0x2ba   : > { %7268 = vst [vmem:[#allocation53_spill] sm:$0xff] %v5548_v38  ;;  %7269 = vst [vmem:[#allocation54_spill] sm:$0xff] %v5555_v12  ;;  %v5557_v28 = vpop.f32.mrb[30].mxu1  ;;  %v5559_v22 = vpop.eup %4172  ;;  %4184 = vtanh.f32 %v1932_v2  ;;  %v1933_v18 = vmul.f32 0.7978846, %v1805_v23  ;;  %v1807_v14 = vadd.f32 %v1679_v0, %v5502_v63  ;;  %v1427_v38 = vmul.f32 %v5544_v29, %v5544_v29 }
 0x2bb   : > { %7270 = vst [vmem:[#allocation55_spill] sm:$0xff] %v5557_v28  ;;  %v5564_v53 = vpop.f32.mrb[31].mxu0  ;;  %v5566_v55 = vpop.f32.mrb[31].mxu1  ;;  %v1806_v31 = vadd.f32 %v1678_v49, %v5510_v45  ;;  %v1680_v12 = vmul.f32 0.044715, %v1552_v32  ;;  %v1553_v28 = vmul.f32 %v1425_v3, %v5535_v50  ;;  %v5574_v2 = vadd.f32 %v5360_v62, %v5166_v41 }
 0x2bc   : > { %7271 = vst [vmem:[#allocation56_spill] sm:$0xff] %v5564_v53  ;;  %7272 = vst [vmem:[#allocation57_spill] sm:$0xff] %v5566_v55  ;;  %v5568_v44 = vpop.eup %4174  ;;  %4186 = vtanh.f32 %v1933_v18  ;;  %v1935_v23 = vmul.f32 0.7978846, %v1807_v14  ;;  %v1555_v0 = vmul.f32 %v1427_v38, %v5544_v29  ;;  %v5579_v63 = vadd.f32 %v5362_v19, %v5168_v26 }
 0x2bd   : > { %7273 = vst [vmem:[#allocation58_spill] sm:$0xff] %v5574_v2  ;;  %v5581_v55 = vpop.eup %4176  ;;  %v1934_v53 = vmul.f32 0.7978846, %v1806_v31  ;;  %v1808_v49 = vadd.f32 %v1680_v12, %v5524_v10  ;;  %v1681_v32 = vmul.f32 0.044715, %v1553_v28  ;;  %v1426_v3 = vmul.f32 %v5574_v2, %v5574_v2 }
 0x2be   : > { %7274 = vst [vmem:[#allocation59_spill] sm:$0xff] %v5579_v63  ;;  %4188 = vtanh.f32 %v1935_v23  ;;  %v1683_v62 = vmul.f32 0.044715, %v1555_v0  ;;  %v1428_v14 = vmul.f32 %v5579_v63, %v5579_v63  ;;  %v5590_v38 = vadd.f32 %v5369_v33, %v5162_v46  ;;  %v5592_v19 = vpop.eup %4178  ;;  %v5596_v28 = vpop.f32.mrb[32].mxu0 }
 0x2bf   : > { %7276 = vst [vmem:[#allocation61_spill] sm:$0xff] %v5592_v19  ;;  %4190 = vtanh.f32 %v1934_v53  ;;  %v1936_v18 = vmul.f32 0.7978846, %v1808_v49  ;;  %v1809_v31 = vadd.f32 %v1681_v32, %v5535_v50  ;;  %v1554_v12 = vmul.f32 %v1426_v3, %v5574_v2  ;;  %7277 = vst [vmem:[#allocation62_spill] sm:$0xff] %v5596_v28  ;;  %v5598_v10 = vpop.f32.mrb[32].mxu1  ;;  %v5600_v23 = vpop.eup %4180 }
 0x2c0   : > { %7275 = vst [vmem:[#allocation60_spill] sm:$0xff] %v5590_v38  ;;  %7278 = vst [vmem:[#allocation63_spill] sm:$0xff] %v5598_v10  ;;  %v1811_v0 = vadd.f32 %v1683_v62, %v5544_v29  ;;  %v1556_v45 = vmul.f32 %v1428_v14, %v5579_v63  ;;  %v1429_v33 = vmul.f32 %v5590_v38, %v5590_v38  ;;  %v5610_v49 = vpop.f32.mrb[33].mxu0  ;;  %v5612_v32 = vpop.f32.mrb[33].mxu1 }
 0x2c1   : > { %7279 = vst [vmem:[#allocation64_spill] sm:$0xff] %v5600_v23  ;;  %v5608_v53 = vadd.f32 %v5371_v39, %v5164_v21  ;;  %7281 = vst [vmem:[#allocation66_spill] sm:$0xff] %v5610_v49  ;;  %4192 = vtanh.f32 %v1936_v18  ;;  %v1937_v3 = vmul.f32 0.7978846, %v1809_v31  ;;  %v1682_v50 = vmul.f32 0.044715, %v1554_v12 }
 0x2c2   : > { %7282 = vst [vmem:[#allocation67_spill] sm:$0xff] %v5612_v32  ;;  %v5616_v10 = vadd.f32 %v5379_v4, %v5166_v41  ;;  %v5618_v62 = vpop.f32.mrb[34].mxu0  ;;  %v5620_v14 = vpop.f32.mrb[34].mxu1  ;;  %v1939_v29 = vmul.f32 0.7978846, %v1811_v0  ;;  %v1557_v39 = vmul.f32 %v1429_v33, %v5590_v38 }
 0x2c3   : > { %7280 = vst [vmem:[#allocation65_spill] sm:$0xff] %v5608_v53  ;;  %7283 = vst [vmem:[#allocation68_spill] sm:$0xff] %v5618_v62  ;;  %v1684_v28 = vmul.f32 0.044715, %v1556_v45  ;;  %v1431_v49 = vmul.f32 %v5608_v53, %v5608_v53  ;;  %v5625_v23 = vpop.f32.mrb[35].mxu0  ;;  %v5627_v18 = vpop.f32.mrb[35].mxu1  ;;  %4194 = vtanh.f32 %v1937_v3  ;;  %v1810_v4 = vadd.f32 %v1682_v50, %v5574_v2 }
 0x2c4   : > { %7284 = vst [vmem:[#allocation69_spill] sm:$0xff] %v5620_v14  ;;  %7285 = vst [vmem:[#allocation70_spill] sm:$0xff] %v5625_v23  ;;  %v5629_v31 = vpop.eup %4182  ;;  %v1430_v12 = vmul.f32 %v5616_v10, %v5616_v10  ;;  %v5636_v45 = vadd.f32 %v5381_v43, %v5168_v26  ;;  %4196 = vtanh.f32 %v1939_v29  ;;  %v1685_v23 = vmul.f32 0.044715, %v1557_v39 }
 0x2c5   : > { %7286 = vst [vmem:[#allocation71_spill] sm:$0xff] %v5627_v18  ;;  %v5638_v0 = vpop.eup %4184  ;;  %v1812_v33 = vadd.f32 %v1684_v28, %v5579_v63  ;;  %v1559_v18 = vmul.f32 %v1431_v49, %v5608_v53  ;;  %v1938_v14 = vmul.f32 0.7978846, %v1810_v4  ;;  %v2162_v2 = vadd.f32 1.0, %v5296_v40 }
 0x2c6   : > { %v1558_v3 = vmul.f32 %v1430_v12, %v5616_v10  ;;  %v1432_v50 = vmul.f32 %v5636_v45, %v5636_v45  ;;  %v5646_v62 = vpop.eup %4186  ;;  %v1813_v32 = vadd.f32 %v1685_v23, %v5590_v38  ;;  %v2166_v29 = vadd.f32 1.0, %v5322_v35  ;;  %v5651_v4 = vpop.f32.mrb[36].mxu0 }
 0x2c7   : > { %7287 = vst [vmem:[#allocation72_spill] sm:$0xff] %v5646_v62  ;;  %v1940_v43 = vmul.f32 0.7978846, %v1812_v33  ;;  %v1687_v19 = vmul.f32 0.044715, %v1559_v18  ;;  %4198 = vtanh.f32 %v1938_v14  ;;  %v2290_v39 = vmul.f32 0.5, %v2162_v2 }
 0x2c8   : > { %v1686_v28 = vmul.f32 0.044715, %v1558_v3  ;;  %v1560_v49 = vmul.f32 %v1432_v50, %v5636_v45  ;;  %v5653_v12 = vpop.f32.mrb[36].mxu1  ;;  %v5655_v63 = vpop.eup %4188  ;;  %v1941_v40 = vmul.f32 0.7978846, %v1813_v32  ;;  %v2294_v62 = vmul.f32 0.5, %v2166_v29 }
 0x2c9   : > { %4200 = vtanh.f32 %v1940_v43  ;;  %v1815_v33 = vadd.f32 %v1687_v19, %v5608_v53  ;;  %v5658_v23 = vpop.f32.mrb[37].mxu0  ;;  %v5660_v18 = vpop.f32.mrb[37].mxu1  ;;  %v2418_v3 = vmul.f32 %v2290_v39, %v5177_v56  ;;  %v2164_v50 = vadd.f32 1.0, %v5300_v34 }
 0x2ca   : > { %7288 = vst [vmem:[#allocation73_spill] sm:$0xff] %v5660_v18  ;;  %v5662_v35 = vpop.eup %4190  ;;  %v1814_v14 = vadd.f32 %v1686_v28, %v5616_v10  ;;  %v1688_v2 = vmul.f32 0.044715, %v1560_v49  ;;  %v5667_v38 = vpop.f32.mrb[38].mxu0  ;;  %4202 = vtanh.f32 %v1941_v40  ;;  %v2422_v32 = vmul.f32 %v2294_v62, %v5197_v61 }
 0x2cb   : > { %v5669_v43 = vpop.f32.mrb[38].mxu1  ;;  %v1943_v19 = vmul.f32 0.7978846, %v1815_v33  ;;  %v2168_v29 = vadd.f32 1.0, %v5327_v36  ;;  %v5673_v18 = vpop.f32.mrb[39].mxu0  ;;  %v2292_v34 = vmul.f32 0.5, %v2164_v50  ;;  %v5682_v39 = vadd.f32 %v5421_v52, %v5162_v46 }
 0x2cc   : > { %7289 = vst [vmem:[#allocation74_spill] sm:$0xff] %v5673_v18  ;;  %v5675_v53 = vpop.f32.mrb[39].mxu1  ;;  %v5677_v28 = vpop.eup %4192  ;;  %v1942_v49 = vmul.f32 0.7978846, %v1814_v14  ;;  %v1816_v56 = vadd.f32 %v1688_v2, %v5636_v45  ;;  %v2578_v40 = vpack.c.bf16 %v2422_v32, %v2418_v3  ;;  %v5686_v61 = vadd.f32 %v5423_v30, %v5164_v21 }
 0x2cd   : > { %7290 = vst [vmem:[#allocation75_spill] sm:$0xff] %v5675_v53  ;;  %7291 = vst [vmem:[#allocation76_spill] sm:$0xff] %v5682_v39  ;;  %4204 = vtanh.f32 %v1943_v19  ;;  %v2296_v33 = vmul.f32 0.5, %v2168_v29  ;;  %v5688_v36 = vpop.eup %4194  ;;  %v2420_v14 = vmul.f32 %v2292_v34, %v5180_v17  ;;  %v1433_v2 = vmul.f32 %v5682_v39, %v5682_v39 }
 0x2ce   : > { %7292 = vst [vmem:[#allocation77_spill] sm:$0xff] %v5686_v61  ;;  %4206 = vtanh.f32 %v1942_v49  ;;  %v1944_v62 = vmul.f32 0.7978846, %v1816_v56  ;;  %v5693_v50 = vpop.eup %4196  ;;  %2929 = vmatprep.mubr.bf16.mxu0 %v2578_v40  ;;  %v1435_v3 = vmul.f32 %v5686_v61, %v5686_v61  ;;  %v5700_v30 = vadd.f32 %v5427_v16, %v5166_v41 }
 0x2cf   : > { %v2424_v52 = vmul.f32 %v2296_v33, %v5200_v7  ;;  %v5704_v19 = vadd.f32 %v5429_v20, %v5168_v26  ;;  %v7293_v17 = vpack.c.bf16 %v5342_v60, %v5312_v5  ;;  %v1561_v32 = vmul.f32 %v1433_v2, %v5682_v39 }
 0x2d0   : > { %4208 = vtanh.f32 %v1944_v62  ;;  %v5712_v7 = vadd.f32 %v5437_v25, %v5162_v46  ;;  %v5716_v29 = vadd.f32 %v5439_v37, %v5164_v21  ;;  %v1563_v49 = vmul.f32 %v1435_v3, %v5686_v61 }
 0x2d1   : > { %2930 = vmatmul.mubr.bf16.vlgmr.msra.gmra.mrb[64].mxu0 %v7293_v17  ;;  %v2580_v16 = vpack.c.bf16 %v2424_v52, %v2420_v14  ;;  %v1434_v20 = vmul.f32 %v5700_v30, %v5700_v30  ;;  %v1436_v5 = vmul.f32 %v5704_v19, %v5704_v19  ;;  %v5723_v60 = vpop.eup %4198  ;;  %v1689_v56 = vmul.f32 0.044715, %v1561_v32 }
 0x2d2   : > { %7294 = vst [vmem:[#allocation78_spill] sm:$0xff] %v5712_v7  ;;  %7295 = vst [vmem:[#allocation79_spill] sm:$0xff] %v5716_v29  ;;  %v1437_v25 = vmul.f32 %v5712_v7, %v5712_v7  ;;  %v1439_v34 = vmul.f32 %v5716_v29, %v5716_v29  ;;  %v5731_v37 = vadd.f32 %v5445_v27, %v5166_v41  ;;  %v1691_v33 = vmul.f32 0.044715, %v1563_v49 }
 0x2d3   : > { %v5733_v40 = vpop.eup %4200  ;;  %3090 = vmatprep.mubr.bf16.mxu1 %v2580_v16  ;;  %v1562_v62 = vmul.f32 %v1434_v20, %v5700_v30  ;;  %v1564_v14 = vmul.f32 %v1436_v5, %v5704_v19  ;;  %v5739_v2 = vadd.f32 %v5447_v11, %v5168_v26  ;;  %v7297_v52 = vpack.c.bf16 %v5354_v8, %v5325_v42 }
 0x2d4   : > { %v1817_v3 = vadd.f32 %v1689_v56, %v5682_v39  ;;  %v1565_v27 = vmul.f32 %v1437_v25, %v5712_v7  ;;  %v1567_v17 = vmul.f32 %v1439_v34, %v5716_v29  ;;  %v1438_v32 = vmul.f32 %v5731_v37, %v5731_v37  ;;  %v5749_v16 = vpop.eup %4202 }
 0x2d5   : > { %7296 = vst [vmem:[#allocation80_spill] sm:$0xff] %v5739_v2  ;;  %3091 = vmatmul.mubr.bf16.vlgmr.msra.gmra.mrb[64].mxu1 %v7297_v52  ;;  %v1819_v49 = vadd.f32 %v1691_v33, %v5686_v61  ;;  %v1690_v20 = vmul.f32 0.044715, %v1562_v62  ;;  %v1692_v11 = vmul.f32 0.044715, %v1564_v14  ;;  %v1440_v5 = vmul.f32 %v5739_v2, %v5739_v2 }
 0x2d6   : > { %v1945_v42 = vmul.f32 0.7978846, %v1817_v3  ;;  %v1693_v8 = vmul.f32 0.044715, %v1565_v27  ;;  %v1695_v52 = vmul.f32 0.044715, %v1567_v17  ;;  %v1566_v56 = vmul.f32 %v1438_v32, %v5731_v37 }
 0x2d7   : > { %v5755_v25 = vpop.eup %4204  ;;  %v1947_v34 = vmul.f32 0.7978846, %v1819_v49  ;;  %v1818_v39 = vadd.f32 %v1690_v20, %v5700_v30  ;;  %v1820_v53 = vadd.f32 %v1692_v11, %v5704_v19  ;;  %v1568_v18 = vmul.f32 %v1440_v5, %v5739_v2 }
 0x2d8   : > { %v5760_v33 = vpop.eup %4206  ;;  %4210 = vtanh.f32 %v1945_v42  ;;  %v1821_v62 = vadd.f32 %v1693_v8, %v5712_v7  ;;  %v1823_v14 = vadd.f32 %v1695_v52, %v5716_v29  ;;  %v1694_v3 = vmul.f32 0.044715, %v1566_v56  ;;  %v7303_v29 = vld [vmem:[#allocation32_spill] sm:$0xff] }
 0x2d9   : > { %4212 = vtanh.f32 %v1947_v34  ;;  %v1946_v27 = vmul.f32 0.7978846, %v1818_v39  ;;  %v1948_v17 = vmul.f32 0.7978846, %v1820_v53  ;;  %v1696_v32 = vmul.f32 0.044715, %v1568_v18 }
 0x2da   : > { %v5764_v61 = vpop.eup %4208  ;;  %v1949_v49 = vmul.f32 0.7978846, %v1821_v62  ;;  %v1951_v20 = vmul.f32 0.7978846, %v1823_v14  ;;  %v1822_v11 = vadd.f32 %v1694_v3, %v5731_v37  ;;  %v2170_v5 = vadd.f32 1.0, %v5391_v47 }
 0x2db   : > { %4214 = vtanh.f32 %v1946_v27  ;;  %v1824_v42 = vadd.f32 %v1696_v32, %v5739_v2  ;;  %v2174_v8 = vadd.f32 1.0, %v5453_v9  ;;  %v2172_v52 = vadd.f32 1.0, %v5401_v54  ;;  %v7298_v27 = vld [vmem:[#allocation21_spill] sm:$0xff]  ;;  %v7299_v32 = vld [vmem:[#allocation18_spill] sm:$0xff] }
 0x2dc   : > { %4216 = vtanh.f32 %v1948_v17  ;;  %v1950_v56 = vmul.f32 0.7978846, %v1822_v11  ;;  %v2298_v39 = vmul.f32 0.5, %v2170_v5  ;;  %v2176_v53 = vadd.f32 1.0, %v5469_v13  ;;  %v7300_v17 = vld [vmem:[#allocation31_spill] sm:$0xff]  ;;  %v7301_v5 = vld [vmem:[#allocation22_spill] sm:$0xff] }
 0x2dd   : > { %4218 = vtanh.f32 %v1949_v49  ;;  %v1952_v18 = vmul.f32 0.7978846, %v1824_v42  ;;  %v2302_v34 = vmul.f32 0.5, %v2174_v8  ;;  %v2300_v62 = vmul.f32 0.5, %v2172_v52  ;;  %v7302_v42 = vld [vmem:[#allocation27_spill] sm:$0xff] }
 0x2de   : > { %4220 = vtanh.f32 %v1951_v20  ;;  %v2426_v14 = vmul.f32 %v2298_v39, %v5235_v15  ;;  %v2304_v47 = vmul.f32 0.5, %v2176_v53  ;;  %v2169_v3 = vadd.f32 1.0, %v5373_v1  ;;  %v7305_v53 = vld [vmem:[#allocation16_spill] sm:$0xff] }
 0x2df   : > { %4222 = vtanh.f32 %v1950_v56  ;;  %v2430_v9 = vmul.f32 %v2302_v34, %v7298_v27  ;;  %v2428_v54 = vmul.f32 %v2300_v62, %v7299_v32  ;;  %v2173_v11 = vadd.f32 1.0, %v7300_v17  ;;  %v7309_v27 = vld [vmem:[#allocation39_spill] sm:$0xff]  ;;  %v7311_v32 = vld [vmem:[#allocation17_spill] sm:$0xff] }
 0x2e0   : > { %4224 = vtanh.f32 %v1952_v18  ;;  %v2432_v13 = vmul.f32 %v2304_v47, %v7301_v5  ;;  %v2297_v49 = vmul.f32 0.5, %v2169_v3  ;;  %v2171_v8 = vadd.f32 1.0, %v7302_v42  ;;  %v7315_v42 = vld [vmem:[#allocation20_spill] sm:$0xff] }
 0x2e1   : > { %v2582_v52 = vpack.c.bf16 %v2430_v9, %v2426_v14  ;;  %v2301_v20 = vmul.f32 0.5, %v2173_v11  ;;  %v2175_v15 = vadd.f32 1.0, %v7303_v29  ;;  %v5782_v1 = vadd.f32 %v5474_v48, %v5162_v46  ;;  %v7308_v14 = vld [vmem:[#allocation19_spill] sm:$0xff]  ;;  %v7313_v11 = vld [vmem:[#allocation41_spill] sm:$0xff] }
 0x2e2   : > { %v5784_v56 = vpop.eup %4210  ;;  %v2584_v39 = vpack.c.bf16 %v2432_v13, %v2428_v54  ;;  %v2425_v34 = vmul.f32 %v2297_v49, %v7305_v53  ;;  %v2299_v62 = vmul.f32 0.5, %v2171_v8  ;;  %v5789_v18 = vadd.f32 %v5476_v57, %v5164_v21 }
 0x2e3   : > { %7304 = vst [vmem:[#allocation21_spill] sm:$0xff] %v5782_v1  ;;  %v5791_v47 = vpop.eup %4212  ;;  %2937 = vmatprep.mubr.bf16.mxu0 %v2582_v52  ;;  %v2429_v3 = vmul.f32 %v2301_v20, %v7308_v14  ;;  %v2303_v29 = vmul.f32 0.5, %v2175_v15  ;;  %v1441_v48 = vmul.f32 %v5782_v1, %v5782_v1  ;;  %v5798_v9 = vadd.f32 %v7309_v27, %v5166_v41 }
 0x2e4   : > { %7306 = vst [vmem:[#allocation18_spill] sm:$0xff] %v5789_v18  ;;  %7307 = vst [vmem:[#allocation31_spill] sm:$0xff] %v5791_v47  ;;  %3098 = vmatprep.mubr.bf16.mxu1 %v2584_v39  ;;  %v2427_v54 = vmul.f32 %v2299_v62, %v7311_v32  ;;  %v1443_v57 = vmul.f32 %v5789_v18, %v5789_v18  ;;  %v5805_v17 = vadd.f32 %v5486_v59, %v5168_v26  ;;  %v7316_v62 = vld [vmem:[#allocation42_spill] sm:$0xff] }
 0x2e5   : > { %7310 = vst [vmem:[#allocation22_spill] sm:$0xff] %v5798_v9  ;;  %v5809_v5 = vadd.f32 %v7313_v11, %v5162_v46  ;;  %v5811_v13 = vpop.eup %4214  ;;  %v2581_v49 = vpack.c.bf16 %v2429_v3, %v2425_v34  ;;  %v2431_v8 = vmul.f32 %v2303_v29, %v7315_v42  ;;  %v1569_v52 = vmul.f32 %v1441_v48, %v5782_v1 }
 0x2e6   : > { %7312 = vst [vmem:[#allocation27_spill] sm:$0xff] %v5805_v17  ;;  %v1442_v20 = vmul.f32 %v5798_v9, %v5798_v9  ;;  %v5817_v15 = vpop.eup %4216  ;;  %v1571_v39 = vmul.f32 %v1443_v57, %v5789_v18  ;;  %v1444_v59 = vmul.f32 %v5805_v17, %v5805_v17  ;;  %v5826_v34 = vadd.f32 %v7316_v62, %v5164_v21 }
 0x2e7   : > { %7314 = vst [vmem:[#allocation32_spill] sm:$0xff] %v5809_v5  ;;  %v1445_v53 = vmul.f32 %v5809_v5, %v5809_v5  ;;  %v5828_v14 = vpop.eup %4218  ;;  %2938 = vmatmul.mubr.bf16.gmra.mrb[68].mxu0 %v2581_v49  ;;  %v2583_v3 = vpack.c.bf16 %v2431_v8, %v2427_v54  ;;  %v1697_v29 = vmul.f32 0.044715, %v1569_v52  ;;  %v5833_v27 = vadd.f32 %v5504_v6, %v5166_v41 }
 0x2e8   : > { %7317 = vst [vmem:[#allocation16_spill] sm:$0xff] %v5826_v34  ;;  %v1570_v48 = vmul.f32 %v1442_v20, %v5798_v9  ;;  %v5835_v32 = vpop.eup %4220  ;;  %v1699_v57 = vmul.f32 0.044715, %v1571_v39  ;;  %v1572_v11 = vmul.f32 %v1444_v59, %v5805_v17  ;;  %v1447_v62 = vmul.f32 %v5826_v34, %v5826_v34 }
 0x2e9   : > { %7318 = vst [vmem:[#allocation19_spill] sm:$0xff] %v5833_v27  ;;  %7319 = vst [vmem:[#allocation39_spill] sm:$0xff] %v5835_v32  ;;  %v1573_v42 = vmul.f32 %v1445_v53, %v5809_v5  ;;  %v5841_v7 = vpop.eup %4222  ;;  %3099 = vmatmul.mubr.bf16.gmra.mrb[68].mxu1 %v2583_v3  ;;  %v1825_v54 = vadd.f32 %v1697_v29, %v5782_v1  ;;  %v1446_v6 = vmul.f32 %v5833_v27, %v5833_v27 }
 0x2ea   : > { %v1698_v49 = vmul.f32 0.044715, %v1570_v48  ;;  %v5848_v8 = vadd.f32 %v5506_v51, %v5168_v26  ;;  %v5850_v52 = vpop.eup %4224  ;;  %v1827_v20 = vadd.f32 %v1699_v57, %v5789_v18  ;;  %v1700_v39 = vmul.f32 0.044715, %v1572_v11 }
 0x2eb   : > { %v1701_v59 = vmul.f32 0.044715, %v1573_v42  ;;  %v1575_v53 = vmul.f32 %v1447_v62, %v5826_v34  ;;  %v1953_v2 = vmul.f32 0.7978846, %v1825_v54  ;;  %v1574_v29 = vmul.f32 %v1446_v6, %v5833_v27 }
 0x2ec   : > { %7320 = vst [vmem:[#allocation17_spill] sm:$0xff] %v5848_v8  ;;  %v1826_v3 = vadd.f32 %v1698_v49, %v5798_v9  ;;  %v1448_v48 = vmul.f32 %v5848_v8, %v5848_v8  ;;  %v1955_v1 = vmul.f32 0.7978846, %v1827_v20  ;;  %v1828_v51 = vadd.f32 %v1700_v39, %v5805_v17  ;;  %v7321_v20 = vld [vmem:[#allocation46_spill] sm:$0xff] }
 0x2ed   : > { %v1829_v32 = vadd.f32 %v1701_v59, %v5809_v5  ;;  %v1703_v47 = vmul.f32 0.044715, %v1575_v53  ;;  %4226 = vtanh.f32 %v1953_v2  ;;  %v1702_v11 = vmul.f32 0.044715, %v1574_v29 }
 0x2ee   : > { %v1954_v57 = vmul.f32 0.7978846, %v1826_v3  ;;  %v1576_v42 = vmul.f32 %v1448_v48, %v5848_v8  ;;  %4228 = vtanh.f32 %v1955_v1  ;;  %v1956_v62 = vmul.f32 0.7978846, %v1828_v51  ;;  %v7322_v51 = vld [vmem:[#allocation25_spill] sm:$0xff] }
 0x2ef   : > { %v1957_v54 = vmul.f32 0.7978846, %v1829_v32  ;;  %v1831_v49 = vadd.f32 %v1703_v47, %v5826_v34  ;;  %v1830_v6 = vadd.f32 %v1702_v11, %v5833_v27  ;;  %v2178_v9 = vadd.f32 1.0, %v7321_v20  ;;  %v7323_v11 = vld [vmem:[#allocation40_spill] sm:$0xff] }
 0x2f0   : > { %4230 = vtanh.f32 %v1954_v57  ;;  %v1704_v18 = vmul.f32 0.044715, %v1576_v42  ;;  %v2182_v59 = vadd.f32 1.0, %v5568_v44  ;;  %v2180_v2 = vadd.f32 1.0, %v5526_v24  ;;  %v7325_v24 = vld [vmem:[#allocation26_spill] sm:$0xff] }
 0x2f1   : > { %4232 = vtanh.f32 %v1956_v62  ;;  %v1959_v39 = vmul.f32 0.7978846, %v1831_v49  ;;  %v1958_v53 = vmul.f32 0.7978846, %v1830_v6  ;;  %v2306_v3 = vmul.f32 0.5, %v2178_v9  ;;  %v7324_v62 = vld [vmem:[#allocation30_spill] sm:$0xff] }
 0x2f2   : > { %4234 = vtanh.f32 %v1957_v54  ;;  %v1832_v1 = vadd.f32 %v1704_v18, %v5848_v8  ;;  %v2310_v32 = vmul.f32 0.5, %v2182_v59  ;;  %v2184_v47 = vadd.f32 1.0, %v5581_v55  ;;  %v7326_v9 = vld [vmem:[#allocation45_spill] sm:$0xff] }
 0x2f3   : > { %4236 = vtanh.f32 %v1959_v39  ;;  %v2308_v29 = vmul.f32 0.5, %v2180_v2  ;;  %v2434_v57 = vmul.f32 %v2306_v3, %v7322_v51  ;;  %v2177_v42 = vadd.f32 1.0, %v7323_v11  ;;  %v7327_v59 = vld [vmem:[#allocation33_spill] sm:$0xff] }
 0x2f4   : > { %4238 = vtanh.f32 %v1958_v53  ;;  %v1960_v48 = vmul.f32 0.7978846, %v1832_v1  ;;  %v2438_v44 = vmul.f32 %v2310_v32, %v7324_v62  ;;  %v2312_v49 = vmul.f32 0.5, %v2184_v47  ;;  %v7328_v1 = vld [vmem:[#allocation49_spill] sm:$0xff]  ;;  %v7331_v47 = vld [vmem:[#allocation23_spill] sm:$0xff] }
 0x2f5   : > { %v2436_v54 = vmul.f32 %v2308_v29, %v7325_v24  ;;  %v2181_v6 = vadd.f32 1.0, %v5550_v58  ;;  %v2305_v18 = vmul.f32 0.5, %v2177_v42  ;;  %v2179_v20 = vadd.f32 1.0, %v7326_v9 }
 0x2f6   : > { %4240 = vtanh.f32 %v1960_v48  ;;  %v2183_v55 = vadd.f32 1.0, %v5559_v22  ;;  %v2586_v39 = vpack.c.bf16 %v2438_v44, %v2434_v57  ;;  %v2440_v2 = vmul.f32 %v2312_v49, %v7327_v59  ;;  %v7332_v48 = vld [vmem:[#allocation50_spill] sm:$0xff]  ;;  %v7335_v57 = vld [vmem:[#allocation28_spill] sm:$0xff] }
 0x2f7   : > { %v2309_v53 = vmul.f32 0.5, %v2181_v6  ;;  %v5878_v3 = vadd.f32 %v7328_v1, %v5162_v46  ;;  %v5880_v32 = vpop.eup %4226  ;;  %v2433_v29 = vmul.f32 %v2305_v18, %v7331_v47  ;;  %v2307_v51 = vmul.f32 0.5, %v2179_v20  ;;  %v7336_v49 = vld [vmem:[#allocation52_spill] sm:$0xff]  ;;  %v7338_v20 = vld [vmem:[#allocation29_spill] sm:$0xff] }
 0x2f8   : > { %7330 = vst [vmem:[#allocation20_spill] sm:$0xff] %v5880_v32  ;;  %v2311_v58 = vmul.f32 0.5, %v2183_v55  ;;  %v5885_v11 = vadd.f32 %v7332_v48, %v5164_v21  ;;  %v5887_v42 = vpop.eup %4228  ;;  %2945 = vmatprep.mubr.bf16.mxu0 %v2586_v39  ;;  %v2588_v22 = vpack.c.bf16 %v2440_v2, %v2436_v54  ;;  %v5894_v24 = vadd.f32 %v7336_v49, %v5166_v41  ;;  %v7337_v18 = vld [vmem:[#allocation24_spill] sm:$0xff]  ;;  %v7339_v54 = vld [vmem:[#allocation53_spill] sm:$0xff] }
 0x2f9   : > { %7329 = vst [vmem:[#allocation41_spill] sm:$0xff] %v5878_v3  ;;  %7334 = vst [vmem:[#allocation46_spill] sm:$0xff] %v5887_v42  ;;  %v2437_v62 = vmul.f32 %v2309_v53, %v7335_v57  ;;  %v1449_v44 = vmul.f32 %v5878_v3, %v5878_v3  ;;  %v2435_v9 = vmul.f32 %v2307_v51, %v7337_v18  ;;  %v7341_v51 = vld [vmem:[#allocation54_spill] sm:$0xff] }
 0x2fa   : > { %7333 = vst [vmem:[#allocation42_spill] sm:$0xff] %v5885_v11  ;;  %v5896_v6 = vpop.eup %4230  ;;  %v2439_v55 = vmul.f32 %v2311_v58, %v7338_v20  ;;  %v1451_v59 = vmul.f32 %v5885_v11, %v5885_v11  ;;  %v5904_v39 = vadd.f32 %v7339_v54, %v5168_v26  ;;  %3106 = vmatprep.mubr.bf16.mxu1 %v2588_v22  ;;  %v7344_v22 = vld [vmem:[#allocation55_spill] sm:$0xff] }
 0x2fb   : > { %v5906_v2 = vpop.eup %4232  ;;  %v2585_v53 = vpack.c.bf16 %v2437_v62, %v2433_v29  ;;  %v1577_v1 = vmul.f32 %v1449_v44, %v5878_v3  ;;  %v1450_v47 = vmul.f32 %v5894_v24, %v5894_v24  ;;  %v5913_v48 = vadd.f32 %v7341_v51, %v5162_v46 }
 0x2fc   : > { %7340 = vst [vmem:[#allocation25_spill] sm:$0xff] %v5904_v39  ;;  %v5915_v58 = vpop.eup %4234  ;;  %v2587_v57 = vpack.c.bf16 %v2439_v55, %v2435_v9  ;;  %v1579_v49 = vmul.f32 %v1451_v59, %v5885_v11  ;;  %v1452_v18 = vmul.f32 %v5904_v39, %v5904_v39  ;;  %v5922_v29 = vadd.f32 %v7344_v22, %v5164_v21  ;;  %v7347_v9 = vld [vmem:[#allocation56_spill] sm:$0xff] }
 0x2fd   : > { %7342 = vst [vmem:[#allocation40_spill] sm:$0xff] %v5913_v48  ;;  %7343 = vst [vmem:[#allocation30_spill] sm:$0xff] %v5915_v58  ;;  %v5924_v62 = vpop.eup %4236  ;;  %2946 = vmatmul.mubr.bf16.gmra.mrb[72].mxu0 %v2585_v53  ;;  %v1705_v44 = vmul.f32 0.044715, %v1577_v1  ;;  %v1578_v20 = vmul.f32 %v1450_v47, %v5894_v24  ;;  %v1453_v54 = vmul.f32 %v5913_v48, %v5913_v48  ;;  %v7349_v53 = vld [vmem:[#allocation57_spill] sm:$0xff] }
 0x2fe   : > { %7345 = vst [vmem:[#allocation26_spill] sm:$0xff] %v5922_v29  ;;  %7346 = vst [vmem:[#allocation45_spill] sm:$0xff] %v5924_v62  ;;  %v5931_v55 = vadd.f32 %v7347_v9, %v5166_v41  ;;  %v5933_v59 = vpop.eup %4238  ;;  %3107 = vmatmul.mubr.bf16.gmra.mrb[72].mxu1 %v2587_v57  ;;  %v1707_v51 = vmul.f32 0.044715, %v1579_v49  ;;  %v1580_v22 = vmul.f32 %v1452_v18, %v5904_v39 }
 0x2ff   : > { %v1455_v34 = vmul.f32 %v5922_v29, %v5922_v29  ;;  %v5940_v1 = vadd.f32 %v7349_v53, %v5168_v26  ;;  %v1833_v47 = vadd.f32 %v1705_v44, %v5878_v3  ;;  %v1706_v5 = vmul.f32 0.044715, %v1578_v20 }
 0x300   : > { %7348 = vst [vmem:[#allocation33_spill] sm:$0xff] %v5931_v55  ;;  %v1581_v8 = vmul.f32 %v1453_v54, %v5913_v48  ;;  %v1454_v9 = vmul.f32 %v5931_v55, %v5931_v55  ;;  %v5946_v62 = vpop.eup %4240  ;;  %v1835_v57 = vadd.f32 %v1707_v51, %v5885_v11  ;;  %v1708_v49 = vmul.f32 0.044715, %v1580_v22 }
 0x301   : > { %7350 = vst [vmem:[#allocation49_spill] sm:$0xff] %v5940_v1  ;;  %v1583_v18 = vmul.f32 %v1455_v34, %v5922_v29  ;;  %v1456_v42 = vmul.f32 %v5940_v1, %v5940_v1  ;;  %v1961_v53 = vmul.f32 0.7978846, %v1833_v47  ;;  %v1834_v17 = vadd.f32 %v1706_v5, %v5894_v24 }
 0x302   : > { %v1709_v44 = vmul.f32 0.044715, %v1581_v8  ;;  %v1582_v20 = vmul.f32 %v1454_v9, %v5931_v55  ;;  %v1963_v54 = vmul.f32 0.7978846, %v1835_v57  ;;  %v1836_v3 = vadd.f32 %v1708_v49, %v5904_v39 }
 0x303   : > { %v1711_v58 = vmul.f32 0.044715, %v1583_v18  ;;  %v1584_v27 = vmul.f32 %v1456_v42, %v5940_v1  ;;  %4242 = vtanh.f32 %v1961_v53  ;;  %v1962_v51 = vmul.f32 0.7978846, %v1834_v17 }
 0x304   : > { %v1837_v22 = vadd.f32 %v1709_v44, %v5913_v48  ;;  %v1710_v34 = vmul.f32 0.044715, %v1582_v20  ;;  %4244 = vtanh.f32 %v1963_v54  ;;  %v1964_v11 = vmul.f32 0.7978846, %v1836_v3  ;;  %v7351_v44 = vld [vmem:[#allocation36_spill] sm:$0xff] }
 0x305   : > { %v1839_v47 = vadd.f32 %v1711_v58, %v5922_v29  ;;  %v1712_v32 = vmul.f32 0.044715, %v1584_v27  ;;  %4246 = vtanh.f32 %v1962_v51  ;;  %v2186_v9 = vadd.f32 1.0, %v5629_v31 }
 0x306   : > { %v1965_v5 = vmul.f32 0.7978846, %v1837_v22  ;;  %v1838_v8 = vadd.f32 %v1710_v34, %v5931_v55  ;;  %4248 = vtanh.f32 %v1964_v11  ;;  %v2190_v17 = vadd.f32 1.0, %v5662_v35  ;;  %v7352_v11 = vld [vmem:[#allocation61_spill] sm:$0xff]  ;;  %v7354_v22 = vld [vmem:[#allocation72_spill] sm:$0xff] }
 0x307   : > { %v1967_v57 = vmul.f32 0.7978846, %v1839_v47  ;;  %v1840_v42 = vadd.f32 %v1712_v32, %v5940_v1  ;;  %v2314_v18 = vmul.f32 0.5, %v2186_v9  ;;  %v2188_v3 = vadd.f32 1.0, %v5638_v0  ;;  %v7353_v32 = vld [vmem:[#allocation44_spill] sm:$0xff]  ;;  %v7355_v47 = vld [vmem:[#allocation37_spill] sm:$0xff] }
 0x308   : > { %4250 = vtanh.f32 %v1965_v5  ;;  %v1966_v49 = vmul.f32 0.7978846, %v1838_v8  ;;  %v2318_v27 = vmul.f32 0.5, %v2190_v17  ;;  %v2192_v53 = vadd.f32 1.0, %v5677_v28  ;;  %v7356_v8 = vld [vmem:[#allocation64_spill] sm:$0xff] }
 0x309   : > { %4252 = vtanh.f32 %v1967_v57  ;;  %v1968_v58 = vmul.f32 0.7978846, %v1840_v42  ;;  %v2442_v20 = vmul.f32 %v2314_v18, %v7351_v44  ;;  %v2316_v31 = vmul.f32 0.5, %v2188_v3  ;;  %v7357_v42 = vld [vmem:[#allocation47_spill] sm:$0xff]  ;;  %v7358_v18 = vld [vmem:[#allocation62_spill] sm:$0xff] }
 0x30a   : > { %4254 = vtanh.f32 %v1966_v49  ;;  %v2185_v54 = vadd.f32 1.0, %v7352_v11  ;;  %v2446_v51 = vmul.f32 %v2318_v27, %v7353_v32  ;;  %v2320_v35 = vmul.f32 0.5, %v2192_v53  ;;  %v7361_v27 = vld [vmem:[#allocation34_spill] sm:$0xff] }
 0x30b   : > { %4256 = vtanh.f32 %v1968_v58  ;;  %v2189_v34 = vadd.f32 1.0, %v7354_v22  ;;  %v2444_v5 = vmul.f32 %v2316_v31, %v7355_v47  ;;  %v2187_v9 = vadd.f32 1.0, %v7356_v8  ;;  %v7362_v31 = vld [vmem:[#allocation63_spill] sm:$0xff]  ;;  %v7366_v22 = vld [vmem:[#allocation66_spill] sm:$0xff] }
 0x30c   : > { %v2313_v0 = vmul.f32 0.5, %v2185_v54  ;;  %v2191_v57 = vadd.f32 1.0, %v5655_v63  ;;  %v2590_v28 = vpack.c.bf16 %v2446_v51, %v2442_v20  ;;  %v2448_v17 = vmul.f32 %v2320_v35, %v7357_v42  ;;  %v7365_v20 = vld [vmem:[#allocation38_spill] sm:$0xff] }
 0x30d   : > { %v2317_v49 = vmul.f32 0.5, %v2189_v34  ;;  %v5974_v3 = vadd.f32 %v7358_v18, %v5162_v46  ;;  %v5976_v58 = vpop.eup %4242  ;;  %v2315_v44 = vmul.f32 0.5, %v2187_v9  ;;  %v5981_v54 = vadd.f32 %v7362_v31, %v5164_v21  ;;  %v7368_v9 = vld [vmem:[#allocation43_spill] sm:$0xff] }
 0x30e   : > { %7360 = vst [vmem:[#allocation50_spill] sm:$0xff] %v5976_v58  ;;  %v2441_v53 = vmul.f32 %v2313_v0, %v7361_v27  ;;  %v2319_v11 = vmul.f32 0.5, %v2191_v57  ;;  %v5983_v32 = vpop.eup %4244  ;;  %2953 = vmatprep.mubr.bf16.mxu0 %v2590_v28  ;;  %v2592_v63 = vpack.c.bf16 %v2448_v17, %v2444_v5  ;;  %v5990_v34 = vadd.f32 %v7366_v22, %v5166_v41  ;;  %v7367_v0 = vld [vmem:[#allocation35_spill] sm:$0xff] }
 0x30f   : > { %7359 = vst [vmem:[#allocation23_spill] sm:$0xff] %v5974_v3  ;;  %7363 = vst [vmem:[#allocation28_spill] sm:$0xff] %v5981_v54  ;;  %v2445_v51 = vmul.f32 %v2317_v49, %v7365_v20  ;;  %v1457_v35 = vmul.f32 %v5974_v3, %v5974_v3  ;;  %v5992_v47 = vpop.eup %4246  ;;  %v2443_v8 = vmul.f32 %v2315_v44, %v7367_v0  ;;  %v7369_v5 = vld [vmem:[#allocation67_spill] sm:$0xff]  ;;  %v7370_v44 = vld [vmem:[#allocation68_spill] sm:$0xff] }
 0x310   : > { %7364 = vst [vmem:[#allocation52_spill] sm:$0xff] %v5983_v32  ;;  %v2447_v57 = vmul.f32 %v2319_v11, %v7368_v9  ;;  %v1459_v42 = vmul.f32 %v5981_v54, %v5981_v54  ;;  %v6000_v28 = vadd.f32 %v7369_v5, %v5168_v26  ;;  %v6002_v17 = vpop.eup %4248  ;;  %3114 = vmatprep.mubr.bf16.mxu1 %v2592_v63  ;;  %v7372_v63 = vld [vmem:[#allocation69_spill] sm:$0xff] }
 0x311   : > { %v2589_v49 = vpack.c.bf16 %v2445_v51, %v2441_v53  ;;  %v1585_v18 = vmul.f32 %v1457_v35, %v5974_v3  ;;  %v1458_v27 = vmul.f32 %v5990_v34, %v5990_v34  ;;  %v6009_v31 = vadd.f32 %v7370_v44, %v5162_v46 }
 0x312   : > { %v6011_v11 = vpop.eup %4250  ;;  %v2591_v20 = vpack.c.bf16 %v2447_v57, %v2443_v8  ;;  %v1587_v22 = vmul.f32 %v1459_v42, %v5981_v54  ;;  %v1460_v0 = vmul.f32 %v6000_v28, %v6000_v28  ;;  %v6018_v53 = vadd.f32 %v7372_v63, %v5164_v21  ;;  %v7374_v8 = vld [vmem:[#allocation70_spill] sm:$0xff] }
 0x313   : > { %7371 = vst [vmem:[#allocation24_spill] sm:$0xff] %v6011_v11  ;;  %v6020_v51 = vpop.eup %4252  ;;  %2954 = vmatmul.mubr.bf16.gmra.mrb[76].mxu0 %v2589_v49  ;;  %v1713_v35 = vmul.f32 0.044715, %v1585_v18  ;;  %v1586_v9 = vmul.f32 %v1458_v27, %v5990_v34  ;;  %v1461_v5 = vmul.f32 %v6009_v31, %v6009_v31  ;;  %v6027_v57 = vadd.f32 %v7374_v8, %v5166_v41  ;;  %v7375_v49 = vld [vmem:[#allocation71_spill] sm:$0xff] }
 0x314   : > { %7373 = vst [vmem:[#allocation29_spill] sm:$0xff] %v6020_v51  ;;  %v6029_v42 = vpop.eup %4254  ;;  %3115 = vmatmul.mubr.bf16.gmra.mrb[76].mxu1 %v2591_v20  ;;  %v1715_v44 = vmul.f32 0.044715, %v1587_v22  ;;  %v1588_v63 = vmul.f32 %v1460_v0, %v6000_v28  ;;  %v1463_v29 = vmul.f32 %v6018_v53, %v6018_v53  ;;  %v6036_v18 = vadd.f32 %v7375_v49, %v5168_v26 }
 0x315   : > { %v6038_v27 = vpop.eup %4256  ;;  %v1841_v48 = vadd.f32 %v1713_v35, %v5974_v3  ;;  %v1714_v1 = vmul.f32 0.044715, %v1586_v9  ;;  %v1589_v8 = vmul.f32 %v1461_v5, %v6009_v31  ;;  %v1462_v20 = vmul.f32 %v6027_v57, %v6027_v57 }
 0x316   : > { %v1843_v22 = vadd.f32 %v1715_v44, %v5981_v54  ;;  %v1716_v0 = vmul.f32 0.044715, %v1588_v63  ;;  %v1591_v51 = vmul.f32 %v1463_v29, %v6018_v53  ;;  %v1464_v32 = vmul.f32 %v6036_v18, %v6036_v18 }
 0x317   : > { %v1969_v49 = vmul.f32 0.7978846, %v1841_v48  ;;  %v1842_v39 = vadd.f32 %v1714_v1, %v5990_v34  ;;  %v1717_v11 = vmul.f32 0.044715, %v1589_v8  ;;  %v1590_v35 = vmul.f32 %v1462_v20, %v6027_v57  ;;  %v6054_v1 = vpop.f32.mrb[40].mxu0  ;;  %v6056_v8 = vpop.f32.mrb[40].mxu1 }
 0x318   : > { %v1971_v9 = vmul.f32 0.7978846, %v1843_v22  ;;  %v1844_v5 = vadd.f32 %v1716_v0, %v6000_v28  ;;  %v1719_v3 = vmul.f32 0.044715, %v1591_v51  ;;  %v1592_v55 = vmul.f32 %v1464_v32, %v6036_v18  ;;  %v6060_v22 = vpop.f32.mrb[41].mxu0 }
 0x319   : > { %4258 = vtanh.f32 %v1969_v49  ;;  %v1970_v44 = vmul.f32 0.7978846, %v1842_v39  ;;  %v1845_v63 = vadd.f32 %v1717_v11, %v6009_v31  ;;  %v1718_v29 = vmul.f32 0.044715, %v1590_v35  ;;  %7376 = vst [vmem:[#allocation53_spill] sm:$0xff] %v6060_v22  ;;  %v6062_v39 = vpop.f32.mrb[41].mxu1 }
 0x31a   : > { %4260 = vtanh.f32 %v1971_v9  ;;  %v1972_v54 = vmul.f32 0.7978846, %v1844_v5  ;;  %v1847_v48 = vadd.f32 %v1719_v3, %v6018_v53  ;;  %v1720_v58 = vmul.f32 0.044715, %v1592_v55  ;;  %7377 = vst [vmem:[#allocation54_spill] sm:$0xff] %v6062_v39  ;;  %v6066_v3 = vpop.f32.mrb[42].mxu0 }
 0x31b   : > { %4262 = vtanh.f32 %v1970_v44  ;;  %v1973_v20 = vmul.f32 0.7978846, %v1845_v63  ;;  %v1846_v51 = vadd.f32 %v1718_v29, %v6027_v57  ;;  %v2194_v32 = vadd.f32 1.0, %v5723_v60  ;;  %7378 = vst [vmem:[#allocation55_spill] sm:$0xff] %v6066_v3  ;;  %v6068_v49 = vpop.f32.mrb[42].mxu1  ;;  %v6071_v60 = vpop.f32.mrb[43].mxu0 }
 0x31c   : > { %4264 = vtanh.f32 %v1972_v54  ;;  %v1975_v11 = vmul.f32 0.7978846, %v1847_v48  ;;  %v1848_v0 = vadd.f32 %v1720_v58, %v6036_v18  ;;  %v2198_v55 = vadd.f32 1.0, %v5760_v33  ;;  %7379 = vst [vmem:[#allocation56_spill] sm:$0xff] %v6068_v49  ;;  %7380 = vst [vmem:[#allocation57_spill] sm:$0xff] %v6071_v60  ;;  %v6073_v44 = vpop.f32.mrb[43].mxu1 }
 0x31d   : > { %4266 = vtanh.f32 %v1973_v20  ;;  %v1974_v35 = vmul.f32 0.7978846, %v1846_v51  ;;  %v2322_v9 = vmul.f32 0.5, %v2194_v32  ;;  %v2196_v5 = vadd.f32 1.0, %v5733_v40  ;;  %7381 = vst [vmem:[#allocation36_spill] sm:$0xff] %v6073_v44  ;;  %v7382_v33 = vld [vmem:[#allocation58_spill] sm:$0xff] }
 0x31e   : > { %4268 = vtanh.f32 %v1975_v11  ;;  %v1976_v54 = vmul.f32 0.7978846, %v1848_v0  ;;  %v2326_v63 = vmul.f32 0.5, %v2198_v55  ;;  %v2200_v58 = vadd.f32 1.0, %v5764_v61  ;;  %v7383_v32 = vld [vmem:[#allocation59_spill] sm:$0xff] }
 0x31f   : > { %4270 = vtanh.f32 %v1974_v35  ;;  %v2450_v29 = vmul.f32 %v2322_v9, %v7382_v33  ;;  %v2324_v48 = vmul.f32 0.5, %v2196_v5  ;;  %v2193_v49 = vadd.f32 1.0, %v5688_v36  ;;  %v6088_v9 = vpop.f32.mrb[44].mxu0  ;;  %v7386_v5 = vld [vmem:[#allocation48_spill] sm:$0xff] }
 0x320   : > { %4272 = vtanh.f32 %v1976_v54  ;;  %v2454_v20 = vmul.f32 %v2326_v63, %v5616_v10  ;;  %v2328_v51 = vmul.f32 0.5, %v2200_v58  ;;  %v2197_v40 = vadd.f32 1.0, %v5749_v16  ;;  %7384 = vst [vmem:[#allocation61_spill] sm:$0xff] %v6088_v9  ;;  %v6090_v10 = vpop.f32.mrb[44].mxu1  ;;  %v7390_v33 = vld [vmem:[#allocation60_spill] sm:$0xff] }
 0x321   : > { %v2452_v60 = vmul.f32 %v2324_v48, %v7383_v32  ;;  %v2321_v44 = vmul.f32 0.5, %v2193_v49  ;;  %v2195_v11 = vadd.f32 1.0, %v5693_v50  ;;  %v2199_v0 = vadd.f32 1.0, %v5755_v25  ;;  %7385 = vst [vmem:[#allocation44_spill] sm:$0xff] %v6090_v10  ;;  %v6101_v63 = vpop.f32.mrb[45].mxu1 }
 0x322   : > { %v2594_v61 = vpack.c.bf16 %v2454_v20, %v2450_v29  ;;  %v2456_v55 = vmul.f32 %v2328_v51, %v5636_v45  ;;  %v2325_v35 = vmul.f32 0.5, %v2197_v40  ;;  %v6086_v36 = vadd.f32 %v5651_v4, %v5162_v46  ;;  %v6099_v45 = vpop.f32.mrb[45].mxu0  ;;  %7389 = vst [vmem:[#allocation64_spill] sm:$0xff] %v6101_v63  ;;  %v7393_v40 = vld [vmem:[#allocation51_spill] sm:$0xff] }
 0x323   : > { %v6092_v16 = vpop.eup %4258  ;;  %v2449_v49 = vmul.f32 %v2321_v44, %v7386_v5  ;;  %v2323_v54 = vmul.f32 0.5, %v2195_v11  ;;  %v2327_v50 = vmul.f32 0.5, %v2199_v0  ;;  %v6097_v25 = vadd.f32 %v5653_v12, %v5164_v21  ;;  %7388 = vst [vmem:[#allocation37_spill] sm:$0xff] %v6099_v45  ;;  %v6112_v20 = vpop.f32.mrb[46].mxu0  ;;  %v7394_v11 = vld [vmem:[#allocation65_spill] sm:$0xff] }
 0x324   : > { %v6103_v4 = vpop.eup %4260  ;;  %2961 = vmatprep.mubr.bf16.mxu0 %v2594_v61  ;;  %v2596_v58 = vpack.c.bf16 %v2456_v55, %v2452_v60  ;;  %v2453_v29 = vmul.f32 %v2325_v35, %v7390_v33  ;;  %v1465_v48 = vmul.f32 %v6086_v36, %v6086_v36  ;;  %v6110_v44 = vadd.f32 %v5658_v23, %v5166_v41  ;;  %v6114_v12 = vpop.f32.mrb[46].mxu1  ;;  %v7395_v61 = vld [vmem:[#allocation73_spill] sm:$0xff] }
 0x325   : > { %7387 = vst [vmem:[#allocation72_spill] sm:$0xff] %v6097_v25  ;;  %7391 = vst [vmem:[#allocation47_spill] sm:$0xff] %v6112_v20  ;;  %v6116_v51 = vpop.eup %4262  ;;  %v2451_v32 = vmul.f32 %v2323_v54, %v7393_v40  ;;  %v2455_v0 = vmul.f32 %v2327_v50, %v7394_v11  ;;  %v1467_v60 = vmul.f32 %v6097_v25, %v6097_v25  ;;  %v6126_v35 = vpop.f32.mrb[47].mxu0 }
 0x326   : > { %7392 = vst [vmem:[#allocation62_spill] sm:$0xff] %v6114_v12  ;;  %v6124_v55 = vadd.f32 %v7395_v61, %v5168_v26  ;;  %7396 = vst [vmem:[#allocation34_spill] sm:$0xff] %v6126_v35  ;;  %v6128_v23 = vpop.f32.mrb[47].mxu1  ;;  %v6130_v5 = vpop.eup %4264  ;;  %3122 = vmatprep.mubr.bf16.mxu1 %v2596_v58  ;;  %v2593_v33 = vpack.c.bf16 %v2453_v29, %v2449_v49  ;;  %v1593_v12 = vmul.f32 %v1465_v48, %v6086_v36 }
 0x327   : > { %7397 = vst [vmem:[#allocation63_spill] sm:$0xff] %v6128_v23  ;;  %v1466_v54 = vmul.f32 %v6110_v44, %v6110_v44  ;;  %v6137_v50 = vadd.f32 %v5667_v38, %v5162_v46  ;;  %v6139_v40 = vpop.eup %4266  ;;  %v2595_v11 = vpack.c.bf16 %v2455_v0, %v2451_v32  ;;  %v1595_v61 = vmul.f32 %v1467_v60, %v6097_v25  ;;  %v7398_v32 = vld [vmem:[#allocation74_spill] sm:$0xff] }
 0x328   : > { %v1468_v23 = vmul.f32 %v6124_v55, %v6124_v55  ;;  %v6146_v49 = vadd.f32 %v5669_v43, %v5164_v21  ;;  %v6148_v58 = vpop.eup %4268  ;;  %2962 = vmatmul.mubr.bf16.gmra.mrb[80].mxu0 %v2593_v33  ;;  %v1721_v29 = vmul.f32 0.044715, %v1593_v12  ;;  %v6155_v0 = vadd.f32 %v7398_v32, %v5166_v41  ;;  %v7399_v12 = vld [vmem:[#allocation75_spill] sm:$0xff] }
 0x329   : > { %v1594_v48 = vmul.f32 %v1466_v54, %v6110_v44  ;;  %v1469_v38 = vmul.f32 %v6137_v50, %v6137_v50  ;;  %v6157_v60 = vpop.eup %4270  ;;  %3123 = vmatmul.mubr.bf16.gmra.mrb[80].mxu1 %v2595_v11  ;;  %v1723_v35 = vmul.f32 0.044715, %v1595_v61  ;;  %v6164_v33 = vadd.f32 %v7399_v12, %v5168_v26  ;;  %v6172_v61 = vpop.f32.mrb[48].mxu0 }
 0x32a   : > { %v1596_v43 = vmul.f32 %v1468_v23, %v6124_v55  ;;  %v1471_v20 = vmul.f32 %v6146_v49, %v6146_v49  ;;  %v6166_v54 = vpop.eup %4272  ;;  %v1849_v63 = vadd.f32 %v1721_v29, %v6086_v36  ;;  %v1470_v11 = vmul.f32 %v6155_v0, %v6155_v0  ;;  %7400 = vst [vmem:[#allocation38_spill] sm:$0xff] %v6172_v61  ;;  %v6174_v23 = vpop.f32.mrb[48].mxu1 }
 0x32b   : > { %v1722_v45 = vmul.f32 0.044715, %v1594_v48  ;;  %v1597_v32 = vmul.f32 %v1469_v38, %v6137_v50  ;;  %7401 = vst [vmem:[#allocation66_spill] sm:$0xff] %v6174_v23  ;;  %v1851_v10 = vadd.f32 %v1723_v35, %v6097_v25  ;;  %v1472_v3 = vmul.f32 %v6164_v33, %v6164_v33  ;;  %v6180_v39 = vpop.f32.mrb[49].mxu0  ;;  %v6182_v29 = vpop.f32.mrb[49].mxu1 }
 0x32c   : > { %v1724_v9 = vmul.f32 0.044715, %v1596_v43  ;;  %v1599_v12 = vmul.f32 %v1471_v20, %v6146_v49  ;;  %7402 = vst [vmem:[#allocation35_spill] sm:$0xff] %v6180_v39  ;;  %v1977_v48 = vmul.f32 0.7978846, %v1849_v63  ;;  %v1598_v61 = vmul.f32 %v1470_v11, %v6155_v0  ;;  %v6186_v22 = vpop.f32.mrb[50].mxu0 }
 0x32d   : > { %v1850_v38 = vadd.f32 %v1722_v45, %v6110_v44  ;;  %v1725_v26 = vmul.f32 0.044715, %v1597_v32  ;;  %7403 = vst [vmem:[#allocation43_spill] sm:$0xff] %v6186_v22  ;;  %v6188_v23 = vpop.f32.mrb[50].mxu1  ;;  %v1979_v35 = vmul.f32 0.7978846, %v1851_v10  ;;  %v1600_v25 = vmul.f32 %v1472_v3, %v6164_v33 }
 0x32e   : > { %7404 = vst [vmem:[#allocation67_spill] sm:$0xff] %v6188_v23  ;;  %v1852_v20 = vadd.f32 %v1724_v9, %v6124_v55  ;;  %v1727_v43 = vmul.f32 0.044715, %v1599_v12  ;;  %v6192_v41 = vpop.f32.mrb[51].mxu0  ;;  %v6194_v39 = vpop.f32.mrb[51].mxu1  ;;  %4274 = vtanh.f32 %v1977_v48  ;;  %v2202_v3 = vadd.f32 1.0, %v5811_v13 }
 0x32f   : > { %7405 = vst [vmem:[#allocation68_spill] sm:$0xff] %v6194_v39  ;;  %v1978_v63 = vmul.f32 0.7978846, %v1850_v38  ;;  %v1853_v45 = vadd.f32 %v1725_v26, %v6137_v50  ;;  %v1726_v32 = vmul.f32 0.044715, %v1598_v61  ;;  %4276 = vtanh.f32 %v1979_v35  ;;  %v6203_v35 = vpop.f32.mrb[52].mxu0 }
 0x330   : > { %v1980_v11 = vmul.f32 0.7978846, %v1852_v20  ;;  %v1855_v22 = vadd.f32 %v1727_v43, %v6146_v49  ;;  %v1728_v23 = vmul.f32 0.044715, %v1600_v25  ;;  %v2206_v48 = vadd.f32 1.0, %v5841_v7  ;;  %v6205_v25 = vpop.f32.mrb[52].mxu1 }
 0x331   : > { %4278 = vtanh.f32 %v1978_v63  ;;  %v1981_v10 = vmul.f32 0.7978846, %v1853_v45  ;;  %v1854_v9 = vadd.f32 %v1726_v32, %v6155_v0  ;;  %v2330_v61 = vmul.f32 0.5, %v2202_v3  ;;  %7406 = vst [vmem:[#allocation69_spill] sm:$0xff] %v6205_v25  ;;  %v6208_v63 = vpop.f32.mrb[53].mxu0 }
 0x332   : > { %4280 = vtanh.f32 %v1980_v11  ;;  %v1983_v12 = vmul.f32 0.7978846, %v1855_v22  ;;  %v1856_v39 = vadd.f32 %v1728_v23, %v6164_v33  ;;  %v2204_v38 = vadd.f32 1.0, %v5817_v15  ;;  %7407 = vst [vmem:[#allocation70_spill] sm:$0xff] %v6208_v63  ;;  %v6210_v22 = vpop.f32.mrb[53].mxu1  ;;  %v6214_v15 = vpop.f32.mrb[54].mxu0 }
 0x333   : > { %4282 = vtanh.f32 %v1981_v10  ;;  %v1982_v26 = vmul.f32 0.7978846, %v1854_v9  ;;  %v2334_v43 = vmul.f32 0.5, %v2206_v48  ;;  %v2208_v13 = vadd.f32 1.0, %v5850_v52  ;;  %7408 = vst [vmem:[#allocation71_spill] sm:$0xff] %v6210_v22  ;;  %7409 = vst [vmem:[#allocation58_spill] sm:$0xff] %v6214_v15 }
 0x334   : > { %4284 = vtanh.f32 %v1983_v12  ;;  %v1984_v20 = vmul.f32 0.7978846, %v1856_v39  ;;  %v2458_v7 = vmul.f32 %v2330_v61, %v5700_v30  ;;  %v2332_v23 = vmul.f32 0.5, %v2204_v38  ;;  %v6216_v32 = vpop.f32.mrb[54].mxu1  ;;  %v6220_v10 = vpop.f32.mrb[55].mxu0  ;;  %v7413_v12 = vld [vmem:[#allocation31_spill] sm:$0xff] }
 0x335   : > { %4286 = vtanh.f32 %v1982_v26  ;;  %v2201_v45 = vadd.f32 1.0, %v5784_v56  ;;  %7410 = vst [vmem:[#allocation59_spill] sm:$0xff] %v6216_v32  ;;  %v2462_v39 = vmul.f32 %v2334_v43, %v5731_v37  ;;  %v2336_v11 = vmul.f32 0.5, %v2208_v13  ;;  %7411 = vst [vmem:[#allocation48_spill] sm:$0xff] %v6220_v10  ;;  %v6222_v9 = vpop.f32.mrb[55].mxu1  ;;  %v7414_v56 = vld [vmem:[#allocation39_spill] sm:$0xff] }
 0x336   : > { %4288 = vtanh.f32 %v1984_v20  ;;  %v2205_v52 = vadd.f32 1.0, %v5828_v14  ;;  %7412 = vst [vmem:[#allocation60_spill] sm:$0xff] %v6222_v9  ;;  %v2460_v3 = vmul.f32 %v2332_v23, %v5704_v19  ;;  %v2203_v48 = vadd.f32 1.0, %v7413_v12  ;;  %v7415_v38 = vld [vmem:[#allocation80_spill] sm:$0xff] }
 0x337   : > { %v2329_v30 = vmul.f32 0.5, %v2201_v45  ;;  %v2207_v26 = vadd.f32 1.0, %v7414_v56  ;;  %v2598_v61 = vpack.c.bf16 %v2462_v39, %v2458_v7  ;;  %v2464_v32 = vmul.f32 %v2336_v11, %v7415_v38  ;;  %v7416_v14 = vld [vmem:[#allocation76_spill] sm:$0xff]  ;;  %v7417_v45 = vld [vmem:[#allocation78_spill] sm:$0xff]  ;;  %v7419_v56 = vld [vmem:[#allocation79_spill] sm:$0xff] }
 0x338   : > { %v2333_v20 = vmul.f32 0.5, %v2205_v52  ;;  %v2210_v37 = vadd.f32 1.0, %v5896_v6  ;;  %v6229_v43 = vpop.eup %4274  ;;  %v2331_v10 = vmul.f32 0.5, %v2203_v48  ;;  %v2214_v9 = vadd.f32 1.0, %v5933_v59  ;;  %v7418_v6 = vld [vmem:[#allocation77_spill] sm:$0xff]  ;;  %v6244_v59 = vpop.f32.mrb[56].mxu1 }
 0x339   : > { %v2457_v13 = vmul.f32 %v2329_v30, %v7416_v14  ;;  %v2335_v15 = vmul.f32 0.5, %v2207_v26  ;;  %v6233_v19 = vpop.eup %4276  ;;  %2969 = vmatprep.mubr.bf16.mxu0 %v2598_v61  ;;  %v2600_v23 = vpack.c.bf16 %v2464_v32, %v2460_v3  ;;  %v2212_v39 = vadd.f32 1.0, %v5906_v2  ;;  %v6242_v26 = vpop.f32.mrb[56].mxu0  ;;  %7421 = vst [vmem:[#allocation65_spill] sm:$0xff] %v6244_v59  ;;  %v7422_v3 = vld [vmem:[#allocation22_spill] sm:$0xff] }
 0x33a   : > { %v2461_v12 = vmul.f32 %v2333_v20, %v7417_v45  ;;  %v2338_v7 = vmul.f32 0.5, %v2210_v37  ;;  %v2459_v52 = vmul.f32 %v2331_v10, %v7418_v6  ;;  %v2342_v30 = vmul.f32 0.5, %v2214_v9  ;;  %7420 = vst [vmem:[#allocation51_spill] sm:$0xff] %v6242_v26  ;;  %v7423_v37 = vld [vmem:[#allocation20_spill] sm:$0xff]  ;;  %v6250_v45 = vpop.f32.mrb[57].mxu0  ;;  %v6252_v10 = vpop.f32.mrb[57].mxu1 }
 0x33b   : > { %v6237_v11 = vpop.eup %4278  ;;  %v2463_v38 = vmul.f32 %v2335_v15, %v7419_v56  ;;  %v2216_v48 = vadd.f32 1.0, %v5946_v62  ;;  %3130 = vmatprep.mubr.bf16.mxu1 %v2600_v23  ;;  %v2340_v2 = vmul.f32 0.5, %v2212_v39  ;;  %v2209_v14 = vadd.f32 1.0, %v7423_v37  ;;  %7424 = vst [vmem:[#allocation73_spill] sm:$0xff] %v6250_v45  ;;  %7425 = vst [vmem:[#allocation74_spill] sm:$0xff] %v6252_v10  ;;  %v7426_v9 = vld [vmem:[#allocation19_spill] sm:$0xff] }
 0x33c   : > { %v6246_v61 = vpop.eup %4280  ;;  %v2597_v32 = vpack.c.bf16 %v2461_v12, %v2457_v13  ;;  %v2466_v20 = vmul.f32 %v2338_v7, %v7422_v3  ;;  %v2470_v6 = vmul.f32 %v2342_v30, %v7426_v9  ;;  %v7427_v59 = vld [vmem:[#allocation30_spill] sm:$0xff]  ;;  %v6258_v22 = vpop.f32.mrb[58].mxu0  ;;  %v7430_v12 = vld [vmem:[#allocation27_spill] sm:$0xff]  ;;  %v7432_v10 = vld [vmem:[#allocation45_spill] sm:$0xff] }
 0x33d   : > { %v6254_v15 = vpop.eup %4282  ;;  %v2599_v62 = vpack.c.bf16 %v2463_v38, %v2459_v52  ;;  %v2344_v56 = vmul.f32 0.5, %v2216_v48  ;;  %v2213_v26 = vadd.f32 1.0, %v7427_v59  ;;  %7428 = vst [vmem:[#allocation75_spill] sm:$0xff] %v6258_v22  ;;  %v6260_v13 = vpop.f32.mrb[58].mxu1  ;;  %v2468_v7 = vmul.f32 %v2340_v2, %v7430_v12  ;;  %v7431_v3 = vld [vmem:[#allocation46_spill] sm:$0xff]  ;;  %v7435_v59 = vld [vmem:[#allocation17_spill] sm:$0xff] }
 0x33e   : > { %7429 = vst [vmem:[#allocation31_spill] sm:$0xff] %v6260_v13  ;;  %v6262_v23 = vpop.eup %4284  ;;  %2970 = vmatmul.mubr.bf16.gmra.mrb[84].mxu0 %v2597_v32  ;;  %v2337_v39 = vmul.f32 0.5, %v2209_v14  ;;  %v2211_v37 = vadd.f32 1.0, %v7431_v3  ;;  %v2215_v45 = vadd.f32 1.0, %v7432_v10  ;;  %v6267_v52 = vpop.f32.mrb[59].mxu0  ;;  %v2602_v48 = vpack.c.bf16 %v2470_v6, %v2466_v20  ;;  %v7436_v2 = vld [vmem:[#allocation21_spill] sm:$0xff] }
 0x33f   : > { %7433 = vst [vmem:[#allocation39_spill] sm:$0xff] %v6267_v52  ;;  %v6269_v38 = vpop.f32.mrb[59].mxu1  ;;  %v6271_v30 = vpop.eup %4286  ;;  %3131 = vmatmul.mubr.bf16.gmra.mrb[84].mxu1 %v2599_v62  ;;  %v2472_v9 = vmul.f32 %v2344_v56, %v7435_v59  ;;  %v2341_v13 = vmul.f32 0.5, %v2213_v26  ;;  %v2218_v32 = vadd.f32 1.0, %v5992_v47  ;;  %v2222_v10 = vadd.f32 1.0, %v6029_v42  ;;  %v7438_v62 = vld [vmem:[#allocation18_spill] sm:$0xff] }
 0x340   : > { %7434 = vst [vmem:[#allocation80_spill] sm:$0xff] %v6269_v38  ;;  %v6275_v22 = vpop.eup %4288  ;;  %v2465_v14 = vmul.f32 %v2337_v39, %v7436_v2  ;;  %v2339_v12 = vmul.f32 0.5, %v2211_v37  ;;  %v2343_v3 = vmul.f32 0.5, %v2215_v45  ;;  %2977 = vmatprep.mubr.bf16.mxu0 %v2602_v48  ;;  %v7437_v38 = vld [vmem:[#allocation32_spill] sm:$0xff]  ;;  %v2220_v20 = vadd.f32 1.0, %v6002_v17  ;;  %v7440_v42 = vld [vmem:[#allocation50_spill] sm:$0xff] }
 0x341   : > { %v2604_v52 = vpack.c.bf16 %v2472_v9, %v2468_v7  ;;  %v2469_v63 = vmul.f32 %v2341_v13, %v7437_v38  ;;  %v2346_v25 = vmul.f32 0.5, %v2218_v32  ;;  %v7439_v26 = vld [vmem:[#allocation16_spill] sm:$0xff]  ;;  %v2350_v47 = vmul.f32 0.5, %v2222_v10  ;;  %v6286_v7 = vpop.f32.mrb[60].mxu0  ;;  %v6288_v13 = vpop.f32.mrb[60].mxu1  ;;  %v7441_v17 = vld [vmem:[#allocation33_spill] sm:$0xff] }
 0x342   : > { %v2467_v6 = vmul.f32 %v2339_v12, %v7438_v62  ;;  %v2471_v56 = vmul.f32 %v2343_v3, %v7439_v26  ;;  %v2224_v59 = vadd.f32 1.0, %v6038_v27  ;;  %v2348_v37 = vmul.f32 0.5, %v2220_v20  ;;  %v7442_v2 = vld [vmem:[#allocation24_spill] sm:$0xff]  ;;  %v6292_v3 = vpop.f32.mrb[61].mxu0  ;;  %v6294_v27 = vpop.f32.mrb[61].mxu1  ;;  %v7445_v10 = vld [vmem:[#allocation29_spill] sm:$0xff] }
 0x343   : > { %3138 = vmatprep.mubr.bf16.mxu1 %v2604_v52  ;;  %v2601_v39 = vpack.c.bf16 %v2469_v63, %v2465_v14  ;;  %v2474_v45 = vmul.f32 %v2346_v25, %v5894_v24  ;;  %v2217_v48 = vadd.f32 1.0, %v7440_v42  ;;  %v2478_v9 = vmul.f32 %v2350_v47, %v7441_v17  ;;  %v7443_v63 = vld [vmem:[#allocation25_spill] sm:$0xff]  ;;  %v7444_v25 = vld [vmem:[#allocation52_spill] sm:$0xff]  ;;  %v6299_v62 = vpop.f32.mrb[62].mxu0  ;;  %v6301_v26 = vpop.f32.mrb[62].mxu1 }
 0x344   : > { %v2603_v38 = vpack.c.bf16 %v2471_v56, %v2467_v6  ;;  %v2352_v32 = vmul.f32 0.5, %v2224_v59  ;;  %v2221_v12 = vadd.f32 1.0, %v7442_v2  ;;  %v2476_v52 = vmul.f32 %v2348_v37, %v7443_v63  ;;  %7446 = vst [vmem:[#allocation76_spill] sm:$0xff] %v6299_v62  ;;  %7447 = vst [vmem:[#allocation78_spill] sm:$0xff] %v6301_v26  ;;  %v7448_v56 = vld [vmem:[#allocation49_spill] sm:$0xff]  ;;  %v6305_v17 = vpop.f32.mrb[63].mxu0 }
 0x345   : > { %v2345_v24 = vmul.f32 0.5, %v2217_v48  ;;  %v2219_v14 = vadd.f32 1.0, %v7444_v25  ;;  %v2223_v20 = vadd.f32 1.0, %v7445_v10  ;;  %v2606_v6 = vpack.c.bf16 %v2478_v9, %v2474_v45  ;;  %7449 = vst [vmem:[#allocation77_spill] sm:$0xff] %v6305_v17  ;;  %v6307_v2 = vpop.f32.mrb[63].mxu1  ;;  %v7450_v37 = vld [vmem:[#allocation41_spill] sm:$0xff] }
 0x346   : > { %2978 = vmatmul.mubr.bf16.gmra.mrb[88].mxu0 %v2601_v39  ;;  %v2480_v47 = vmul.f32 %v2352_v32, %v7448_v56  ;;  %v2349_v59 = vmul.f32 0.5, %v2221_v12  ;;  %v2226_v42 = vadd.f32 1.0, %v6116_v51  ;;  %v2230_v10 = vadd.f32 1.0, %v6157_v60  ;;  %v7451_v39 = vld [vmem:[#allocation40_spill] sm:$0xff]  ;;  %v7452_v12 = vld [vmem:[#allocation42_spill] sm:$0xff] }
 0x347   : > { %3139 = vmatmul.mubr.bf16.gmra.mrb[88].mxu1 %v2603_v38  ;;  %v2473_v48 = vmul.f32 %v2345_v24, %v7450_v37  ;;  %v2347_v63 = vmul.f32 0.5, %v2219_v14  ;;  %v2351_v25 = vmul.f32 0.5, %v2223_v20  ;;  %2985 = vmatprep.mubr.bf16.mxu0 %v2606_v6  ;;  %v2228_v32 = vadd.f32 1.0, %v6130_v5  ;;  %v7453_v56 = vld [vmem:[#allocation26_spill] sm:$0xff] }
 0x348   : > { %v2608_v26 = vpack.c.bf16 %v2480_v47, %v2476_v52  ;;  %v2477_v45 = vmul.f32 %v2349_v59, %v7451_v39  ;;  %v2354_v9 = vmul.f32 0.5, %v2226_v42  ;;  %v2358_v62 = vmul.f32 0.5, %v2230_v10  ;;  %v7455_v10 = vld [vmem:[#allocation28_spill] sm:$0xff] }
 0x349   : > { %v2475_v51 = vmul.f32 %v2347_v63, %v7452_v12  ;;  %v2479_v17 = vmul.f32 %v2351_v25, %v7453_v56  ;;  %v2232_v38 = vadd.f32 1.0, %v6166_v54  ;;  %v2356_v20 = vmul.f32 0.5, %v2228_v32 }
 0x34a   : > { %3146 = vmatprep.mubr.bf16.mxu1 %v2608_v26  ;;  %v2605_v24 = vpack.c.bf16 %v2477_v45, %v2473_v48  ;;  %v2482_v14 = vmul.f32 %v2354_v9, %v5990_v34  ;;  %v2225_v60 = vadd.f32 1.0, %v6092_v16  ;;  %v2486_v6 = vmul.f32 %v2358_v62, %v6027_v57  ;;  %v7454_v16 = vld [vmem:[#allocation23_spill] sm:$0xff] }
 0x34b   : > { %v2607_v52 = vpack.c.bf16 %v2479_v17, %v2475_v51  ;;  %v2360_v47 = vmul.f32 0.5, %v2232_v38  ;;  %v2229_v5 = vadd.f32 1.0, %v6139_v40  ;;  %v2484_v59 = vmul.f32 %v2356_v20, %v6000_v28 }
 0x34c   : > { %v2353_v42 = vmul.f32 0.5, %v2225_v60  ;;  %v2227_v37 = vadd.f32 1.0, %v6103_v4  ;;  %v2231_v54 = vadd.f32 1.0, %v6148_v58  ;;  %v2610_v26 = vpack.c.bf16 %v2486_v6, %v2482_v14  ;;  %v7457_v6 = vld [vmem:[#allocation53_spill] sm:$0xff] }
 0x34d   : > { %v2488_v48 = vmul.f32 %v2360_v47, %v6036_v18  ;;  %v2357_v34 = vmul.f32 0.5, %v2229_v5  ;;  %v2234_v63 = vadd.f32 1.0, %v6237_v11  ;;  %v2238_v40 = vadd.f32 1.0, %v6271_v30 }
 0x34e   : > { %2986 = vmatmul.mubr.bf16.gmra.mrb[92].mxu0 %v2605_v24  ;;  %v2481_v17 = vmul.f32 %v2353_v42, %v7454_v16  ;;  %v2355_v57 = vmul.f32 0.5, %v2227_v37  ;;  %v2359_v62 = vmul.f32 0.5, %v2231_v54  ;;  %v2236_v58 = vadd.f32 1.0, %v6246_v61  ;;  %v7459_v37 = vld [vmem:[#allocation15_spill] sm:$0xff]  ;;  %v7460_v54 = vld [vmem:[#allocation54_spill] sm:$0xff]  ;;  %v7462_v16 = vld [vmem:[#allocation56_spill] sm:$0xff] }
 0x34f   : > { %3147 = vmatmul.mubr.bf16.gmra.mrb[92].mxu1 %v2607_v52  ;;  %2993 = vmatprep.mubr.bf16.mxu0 %v2610_v26  ;;  %v2612_v28 = vpack.c.bf16 %v2488_v48, %v2484_v59  ;;  %v2485_v4 = vmul.f32 %v2357_v34, %v6009_v31  ;;  %v2362_v25 = vmul.f32 0.5, %v2234_v63  ;;  %v2366_v11 = vmul.f32 0.5, %v2238_v40  ;;  %v7461_v63 = vld [vmem:[#allocation55_spill] sm:$0xff] }
 0x350   : > { %v2483_v18 = vmul.f32 %v2355_v57, %v7455_v10  ;;  %v2487_v39 = vmul.f32 %v2359_v62, %v6018_v53  ;;  %v2240_v45 = vadd.f32 1.0, %v6275_v22  ;;  %v2364_v30 = vmul.f32 0.5, %v2236_v58 }
 0x351   : > { %3154 = vmatprep.mubr.bf16.mxu1 %v2612_v28  ;;  %v2609_v9 = vpack.c.bf16 %v2485_v4, %v2481_v17  ;;  %v2490_v32 = vmul.f32 %v2362_v25, %v6110_v44  ;;  %v2233_v12 = vadd.f32 1.0, %v6229_v43  ;;  %v2494_v31 = vmul.f32 %v2366_v11, %v6155_v0  ;;  %v7463_v28 = vld [vmem:[#allocation57_spill] sm:$0xff] }
 0x352   : > { %v2611_v51 = vpack.c.bf16 %v2487_v39, %v2483_v18  ;;  %v2368_v56 = vmul.f32 0.5, %v2240_v45  ;;  %v2237_v61 = vadd.f32 1.0, %v6254_v15  ;;  %v2492_v38 = vmul.f32 %v2364_v30, %v6124_v55  ;;  %v7464_v18 = vld [vmem:[#allocation36_spill] sm:$0xff] }
 0x353   : > { %v2361_v24 = vmul.f32 0.5, %v2233_v12  ;;  %v2235_v53 = vadd.f32 1.0, %v6233_v19  ;;  %v2239_v22 = vadd.f32 1.0, %v6262_v23  ;;  %v2614_v14 = vpack.c.bf16 %v2494_v31, %v2490_v32  ;;  %v7456_v23 = vld [vmem:[#allocation14_spill] sm:$0xff] }
 0x354   : > { %v2496_v20 = vmul.f32 %v2368_v56, %v6164_v33  ;;  %v2365_v44 = vmul.f32 0.5, %v2237_v61  ;;  %v6342_v43 = vadd.f32 %v6054_v1, %v5162_v46  ;;  %v6347_v55 = vadd.f32 %v6056_v8, %v5164_v21  ;;  %v7458_v1 = vld [vmem:[#allocation72_spill] sm:$0xff] }
 0x355   : > { %v2489_v0 = vmul.f32 %v2361_v24, %v6086_v36  ;;  %v2363_v60 = vmul.f32 0.5, %v2235_v53  ;;  %v2367_v52 = vmul.f32 0.5, %v2239_v22  ;;  %v6354_v47 = vadd.f32 %v7457_v6, %v7456_v23 }
 0x356   : > { %2994 = vmatmul.mubr.bf16.gmra.mrb[96].mxu0 %v2609_v9  ;;  %v2616_v19 = vpack.c.bf16 %v2496_v20, %v2492_v38  ;;  %v2493_v15 = vmul.f32 %v2365_v44, %v6137_v50  ;;  %v1473_v33 = vmul.f32 %v6342_v43, %v6342_v43  ;;  %v1475_v8 = vmul.f32 %v6347_v55, %v6347_v55 }
 0x357   : > { %3155 = vmatmul.mubr.bf16.gmra.mrb[96].mxu1 %v2611_v51  ;;  %3001 = vmatprep.mubr.bf16.mxu0 %v2614_v14  ;;  %v2491_v36 = vmul.f32 %v2363_v60, %v7458_v1  ;;  %v2495_v5 = vmul.f32 %v2367_v52, %v6146_v49  ;;  %v1474_v42 = vmul.f32 %v6354_v47, %v6354_v47  ;;  %v7465_v1 = vld [vmem:[#allocation61_spill] sm:$0xff] }
 0x358   : > { %3162 = vmatprep.mubr.bf16.mxu1 %v2616_v19  ;;  %v2613_v59 = vpack.c.bf16 %v2493_v15, %v2489_v0  ;;  %v1601_v50 = vmul.f32 %v1473_v33, %v6342_v43  ;;  %v6365_v26 = vadd.f32 %v7460_v54, %v7459_v37  ;;  %v1603_v34 = vmul.f32 %v1475_v8, %v6347_v55 }
 0x359   : > { %v2615_v48 = vpack.c.bf16 %v2495_v5, %v2491_v36  ;;  %v6370_v49 = vadd.f32 %v7461_v63, %v5162_v46  ;;  %v6374_v17 = vadd.f32 %v7462_v16, %v5164_v21  ;;  %v1602_v62 = vmul.f32 %v1474_v42, %v6354_v47 }
 0x35a   : > { %v1729_v57 = vmul.f32 0.044715, %v1601_v50  ;;  %v1476_v40 = vmul.f32 %v6365_v26, %v6365_v26  ;;  %v6381_v4 = vadd.f32 %v7463_v28, %v7456_v23  ;;  %v1731_v25 = vmul.f32 0.044715, %v1603_v34  ;;  %v7466_v50 = vld [vmem:[#allocation44_spill] sm:$0xff]  ;;  %v7468_v34 = vld [vmem:[#allocation37_spill] sm:$0xff] }
 0x35b   : > { %v1477_v58 = vmul.f32 %v6370_v49, %v6370_v49  ;;  %v1479_v10 = vmul.f32 %v6374_v17, %v6374_v17  ;;  %v6389_v39 = vadd.f32 %v7464_v18, %v7459_v37  ;;  %v1730_v45 = vmul.f32 0.044715, %v1602_v62  ;;  %v7469_v62 = vld [vmem:[#allocation64_spill] sm:$0xff] }
 0x35c   : > { %v1857_v11 = vadd.f32 %v1729_v57, %v6342_v43  ;;  %v1604_v9 = vmul.f32 %v1476_v40, %v6365_v26  ;;  %v1478_v32 = vmul.f32 %v6381_v4, %v6381_v4  ;;  %v1859_v30 = vadd.f32 %v1731_v25, %v6347_v55 }
 0x35d   : > { %v1605_v12 = vmul.f32 %v1477_v58, %v6370_v49  ;;  %v1607_v51 = vmul.f32 %v1479_v10, %v6374_v17  ;;  %v1480_v31 = vmul.f32 %v6389_v39, %v6389_v39  ;;  %v1858_v61 = vadd.f32 %v1730_v45, %v6354_v47  ;;  %v7470_v58 = vld [vmem:[#allocation47_spill] sm:$0xff]  ;;  %v7472_v45 = vld [vmem:[#allocation62_spill] sm:$0xff] }
 0x35e   : > { %3002 = vmatmul.mubr.bf16.gmra.mrb[100].mxu0 %v2613_v59  ;;  %v1985_v56 = vmul.f32 0.7978846, %v1857_v11  ;;  %v1732_v38 = vmul.f32 0.044715, %v1604_v9  ;;  %v1606_v24 = vmul.f32 %v1478_v32, %v6381_v4  ;;  %v1987_v53 = vmul.f32 0.7978846, %v1859_v30 }
 0x35f   : > { %3163 = vmatmul.mubr.bf16.gmra.mrb[100].mxu1 %v2615_v48  ;;  %v1733_v22 = vmul.f32 0.044715, %v1605_v12  ;;  %v1735_v14 = vmul.f32 0.044715, %v1607_v51  ;;  %v1608_v20 = vmul.f32 %v1480_v31, %v6389_v39  ;;  %v1986_v44 = vmul.f32 0.7978846, %v1858_v61 }
 0x360   : > { %4290 = vtanh.f32 %v1985_v56  ;;  %v1860_v0 = vadd.f32 %v1732_v38, %v6365_v26  ;;  %v1734_v60 = vmul.f32 0.044715, %v1606_v24  ;;  %v6409_v36 = vadd.f32 %v7465_v1, %v5162_v46  ;;  %v7474_v61 = vld [vmem:[#allocation34_spill] sm:$0xff] }
 0x361   : > { %4292 = vtanh.f32 %v1987_v53  ;;  %v1861_v52 = vadd.f32 %v1733_v22, %v6370_v49  ;;  %v1863_v19 = vadd.f32 %v1735_v14, %v6374_v17  ;;  %v1736_v15 = vmul.f32 0.044715, %v1608_v20  ;;  %v7475_v20 = vld [vmem:[#allocation63_spill] sm:$0xff] }
 0x362   : > { %4294 = vtanh.f32 %v1986_v44  ;;  %v1988_v33 = vmul.f32 0.7978846, %v1860_v0  ;;  %v1862_v6 = vadd.f32 %v1734_v60, %v6381_v4  ;;  %v6414_v42 = vadd.f32 %v7466_v50, %v5164_v21 }
 0x363   : > { %v1989_v5 = vmul.f32 0.7978846, %v1861_v52  ;;  %v1991_v8 = vmul.f32 0.7978846, %v1863_v19  ;;  %v1864_v59 = vadd.f32 %v1736_v15, %v6389_v39  ;;  %v1481_v48 = vmul.f32 %v6409_v36, %v6409_v36 }
 0x364   : > { %7467 = vst [vmem:[#allocation79_spill] sm:$0xff] %v6414_v42  ;;  %4296 = vtanh.f32 %v1988_v33  ;;  %v1990_v54 = vmul.f32 0.7978846, %v1862_v6  ;;  %v6420_v63 = vadd.f32 %v7468_v34, %v7456_v23  ;;  %v1483_v57 = vmul.f32 %v6414_v42, %v6414_v42 }
 0x365   : > { %4298 = vtanh.f32 %v1989_v5  ;;  %v1992_v16 = vmul.f32 0.7978846, %v1864_v59  ;;  %v6426_v40 = vadd.f32 %v7469_v62, %v7459_v37  ;;  %v1609_v28 = vmul.f32 %v1481_v48, %v6409_v36 }
 0x366   : > { %4300 = vtanh.f32 %v1991_v8  ;;  %v1482_v25 = vmul.f32 %v6420_v63, %v6420_v63  ;;  %v6433_v10 = vadd.f32 %v7470_v58, %v5162_v46  ;;  %v1611_v18 = vmul.f32 %v1483_v57, %v6414_v42 }
 0x367   : > { %4302 = vtanh.f32 %v1990_v54  ;;  %v1484_v11 = vmul.f32 %v6426_v40, %v6426_v40  ;;  %v6440_v9 = vadd.f32 %v7472_v45, %v5164_v21  ;;  %v1737_v32 = vmul.f32 0.044715, %v1609_v28 }
 0x368   : > { %7471 = vst [vmem:[#allocation22_spill] sm:$0xff] %v6433_v10  ;;  %4304 = vtanh.f32 %v1992_v16  ;;  %v1610_v30 = vmul.f32 %v1482_v25, %v6420_v63  ;;  %v1485_v12 = vmul.f32 %v6433_v10, %v6433_v10  ;;  %v1739_v51 = vmul.f32 0.044715, %v1611_v18 }
 0x369   : > { %7473 = vst [vmem:[#allocation20_spill] sm:$0xff] %v6440_v9  ;;  %v1612_v31 = vmul.f32 %v1484_v11, %v6426_v40  ;;  %v1487_v56 = vmul.f32 %v6440_v9, %v6440_v9  ;;  %v6450_v38 = vadd.f32 %v7474_v61, %v7456_v23  ;;  %v1865_v53 = vadd.f32 %v1737_v32, %v6409_v36  ;;  %v7478_v61 = vld [vmem:[#allocation66_spill] sm:$0xff] }
 0x36a   : > { %v6452_v24 = vpop.eup %4290  ;;  %v1738_v22 = vmul.f32 0.044715, %v1610_v30  ;;  %v1613_v14 = vmul.f32 %v1485_v12, %v6433_v10  ;;  %v6458_v44 = vadd.f32 %v7475_v20, %v7459_v37  ;;  %v1867_v60 = vadd.f32 %v1739_v51, %v6414_v42  ;;  %v7476_v30 = vld [vmem:[#allocation38_spill] sm:$0xff] }
 0x36b   : > { %v6460_v0 = vpop.eup %4292  ;;  %v1740_v52 = vmul.f32 0.044715, %v1612_v31  ;;  %v1615_v19 = vmul.f32 %v1487_v56, %v6440_v9  ;;  %v1486_v15 = vmul.f32 %v6450_v38, %v6450_v38  ;;  %v1993_v6 = vmul.f32 0.7978846, %v1865_v53 }
 0x36c   : > { %v6466_v33 = vpop.eup %4294  ;;  %v1866_v1 = vadd.f32 %v1738_v22, %v6420_v63  ;;  %v1741_v5 = vmul.f32 0.044715, %v1613_v14  ;;  %v1488_v8 = vmul.f32 %v6458_v44, %v6458_v44  ;;  %v1995_v59 = vmul.f32 0.7978846, %v1867_v60  ;;  %v7480_v60 = vld [vmem:[#allocation35_spill] sm:$0xff] }
 0x36d   : > { %v1868_v50 = vadd.f32 %v1740_v52, %v6426_v40  ;;  %v1743_v54 = vmul.f32 0.044715, %v1615_v19  ;;  %v1614_v48 = vmul.f32 %v1486_v15, %v6450_v38  ;;  %4306 = vtanh.f32 %v1993_v6 }
 0x36e   : > { %v6473_v34 = vpop.eup %4296  ;;  %v1994_v16 = vmul.f32 0.7978846, %v1866_v1  ;;  %v1869_v57 = vadd.f32 %v1741_v5, %v6433_v10  ;;  %v1616_v62 = vmul.f32 %v1488_v8, %v6458_v44  ;;  %4308 = vtanh.f32 %v1995_v59  ;;  %v7483_v59 = vld [vmem:[#allocation43_spill] sm:$0xff] }
 0x36f   : > { %v6477_v28 = vpop.eup %4298  ;;  %v1996_v25 = vmul.f32 0.7978846, %v1868_v50  ;;  %v1871_v58 = vadd.f32 %v1743_v54, %v6440_v9  ;;  %v1742_v18 = vmul.f32 0.044715, %v1614_v48  ;;  %v6484_v12 = vadd.f32 %v7476_v30, %v5162_v46 }
 0x370   : > { %v6480_v11 = vpop.eup %4300  ;;  %4310 = vtanh.f32 %v1994_v16  ;;  %v1997_v45 = vmul.f32 0.7978846, %v1869_v57  ;;  %v1744_v32 = vmul.f32 0.044715, %v1616_v62  ;;  %v6491_v53 = vadd.f32 %v7478_v61, %v5164_v21  ;;  %v7485_v16 = vld [vmem:[#allocation67_spill] sm:$0xff] }
 0x371   : > { %7477 = vst [vmem:[#allocation19_spill] sm:$0xff] %v6484_v12  ;;  %v6486_v51 = vpop.eup %4302  ;;  %4312 = vtanh.f32 %v1996_v25  ;;  %v1999_v31 = vmul.f32 0.7978846, %v1871_v58  ;;  %v1870_v56 = vadd.f32 %v1742_v18, %v6450_v38  ;;  %v1489_v20 = vmul.f32 %v6484_v12, %v6484_v12 }
 0x372   : > { %7479 = vst [vmem:[#allocation30_spill] sm:$0xff] %v6491_v53  ;;  %v6493_v22 = vpop.eup %4304  ;;  %4314 = vtanh.f32 %v1997_v45  ;;  %v1872_v14 = vadd.f32 %v1744_v32, %v6458_v44  ;;  %v6500_v52 = vadd.f32 %v7480_v60, %v7456_v23  ;;  %v1491_v15 = vmul.f32 %v6491_v53, %v6491_v53 }
 0x373   : > { %4316 = vtanh.f32 %v1999_v31  ;;  %v1998_v19 = vmul.f32 0.7978846, %v1870_v56  ;;  %v6506_v6 = vadd.f32 %v6182_v29, %v7459_v37  ;;  %v1617_v5 = vmul.f32 %v1489_v20, %v6484_v12 }
 0x374   : > { %7481 = vst [vmem:[#allocation27_spill] sm:$0xff] %v6500_v52  ;;  %v2000_v1 = vmul.f32 0.7978846, %v1872_v14  ;;  %v1490_v8 = vmul.f32 %v6500_v52, %v6500_v52  ;;  %v6513_v50 = vadd.f32 %v7483_v59, %v5162_v46  ;;  %v1619_v54 = vmul.f32 %v1491_v15, %v6491_v53  ;;  %v7488_v14 = vld [vmem:[#allocation68_spill] sm:$0xff] }
 0x375   : > { %7482 = vst [vmem:[#allocation46_spill] sm:$0xff] %v6506_v6  ;;  %4318 = vtanh.f32 %v1998_v19  ;;  %v1492_v48 = vmul.f32 %v6506_v6, %v6506_v6  ;;  %v6520_v29 = vadd.f32 %v7485_v16, %v5164_v21  ;;  %v1745_v57 = vmul.f32 0.044715, %v1617_v5 }
 0x376   : > { %7484 = vst [vmem:[#allocation45_spill] sm:$0xff] %v6513_v50  ;;  %4320 = vtanh.f32 %v2000_v1  ;;  %v1618_v62 = vmul.f32 %v1490_v8, %v6500_v52  ;;  %v1493_v25 = vmul.f32 %v6513_v50, %v6513_v50  ;;  %v1747_v58 = vmul.f32 0.044715, %v1619_v54 }
 0x377   : > { %7486 = vst [vmem:[#allocation17_spill] sm:$0xff] %v6520_v29  ;;  %v1620_v18 = vmul.f32 %v1492_v48, %v6506_v6  ;;  %v1495_v45 = vmul.f32 %v6520_v29, %v6520_v29  ;;  %v6530_v32 = vadd.f32 %v6192_v41, %v7456_v23  ;;  %v6532_v30 = vpop.eup %4306  ;;  %v1873_v31 = vadd.f32 %v1745_v57, %v6484_v12 }
 0x378   : > { %v1746_v56 = vmul.f32 0.044715, %v1618_v62  ;;  %v1621_v61 = vmul.f32 %v1493_v25, %v6513_v50  ;;  %v6538_v20 = vadd.f32 %v7488_v14, %v7459_v37  ;;  %v6540_v60 = vpop.eup %4308  ;;  %v1875_v19 = vadd.f32 %v1747_v58, %v6491_v53 }
 0x379   : > { %7487 = vst [vmem:[#allocation21_spill] sm:$0xff] %v6530_v32  ;;  %v1748_v15 = vmul.f32 0.044715, %v1620_v18  ;;  %v1623_v1 = vmul.f32 %v1495_v45, %v6520_v29  ;;  %v1494_v41 = vmul.f32 %v6530_v32, %v6530_v32  ;;  %v2001_v8 = vmul.f32 0.7978846, %v1873_v31 }
 0x37a   : > { %7489 = vst [vmem:[#allocation32_spill] sm:$0xff] %v6538_v20  ;;  %v6546_v5 = vpop.eup %4310  ;;  %v1874_v59 = vadd.f32 %v1746_v56, %v6500_v52  ;;  %v1749_v54 = vmul.f32 0.044715, %v1621_v61  ;;  %v1496_v48 = vmul.f32 %v6538_v20, %v6538_v20  ;;  %v2003_v57 = vmul.f32 0.7978846, %v1875_v19 }
 0x37b   : > { %v6551_v16 = vpop.eup %4312  ;;  %v1876_v62 = vadd.f32 %v1748_v15, %v6506_v6  ;;  %v1751_v25 = vmul.f32 0.044715, %v1623_v1  ;;  %v1622_v58 = vmul.f32 %v1494_v41, %v6530_v32  ;;  %4322 = vtanh.f32 %v2001_v8 }
 0x37c   : > { %v6555_v18 = vpop.eup %4314  ;;  %v2002_v45 = vmul.f32 0.7978846, %v1874_v59  ;;  %v1877_v31 = vadd.f32 %v1749_v54, %v6513_v50  ;;  %v1624_v56 = vmul.f32 %v1496_v48, %v6538_v20  ;;  %4324 = vtanh.f32 %v2003_v57  ;;  %v7491_v48 = vld [vmem:[#allocation69_spill] sm:$0xff] }
 0x37d   : > { %v6559_v61 = vpop.eup %4316  ;;  %v2004_v14 = vmul.f32 0.7978846, %v1876_v62  ;;  %v1879_v53 = vadd.f32 %v1751_v25, %v6520_v29  ;;  %v1750_v19 = vmul.f32 0.044715, %v1622_v58  ;;  %v6564_v41 = vadd.f32 %v6203_v35, %v5162_v46  ;;  %v7493_v35 = vld [vmem:[#allocation70_spill] sm:$0xff] }
 0x37e   : > { %4326 = vtanh.f32 %v2002_v45  ;;  %v2005_v15 = vmul.f32 0.7978846, %v1877_v31  ;;  %v1752_v1 = vmul.f32 0.044715, %v1624_v56  ;;  %v6571_v57 = vadd.f32 %v7491_v48, %v5164_v21  ;;  %v7495_v56 = vld [vmem:[#allocation71_spill] sm:$0xff]  ;;  %v7497_v48 = vld [vmem:[#allocation58_spill] sm:$0xff] }
 0x37f   : > { %7490 = vst [vmem:[#allocation18_spill] sm:$0xff] %v6564_v41  ;;  %v6566_v8 = vpop.eup %4318  ;;  %4328 = vtanh.f32 %v2004_v14  ;;  %v2007_v59 = vmul.f32 0.7978846, %v1879_v53  ;;  %v1878_v54 = vadd.f32 %v1750_v19, %v6530_v32  ;;  %v1497_v58 = vmul.f32 %v6564_v41, %v6564_v41 }
 0x380   : > { %7492 = vst [vmem:[#allocation16_spill] sm:$0xff] %v6571_v57  ;;  %v6573_v62 = vpop.eup %4320  ;;  %4330 = vtanh.f32 %v2005_v15  ;;  %v1880_v25 = vadd.f32 %v1752_v1, %v6538_v20  ;;  %v6580_v45 = vadd.f32 %v7493_v35, %v7456_v23  ;;  %v1499_v31 = vmul.f32 %v6571_v57, %v6571_v57  ;;  %v7499_v35 = vld [vmem:[#allocation59_spill] sm:$0xff] }
 0x381   : > { %4332 = vtanh.f32 %v2007_v59  ;;  %v2006_v53 = vmul.f32 0.7978846, %v1878_v54  ;;  %v6586_v14 = vadd.f32 %v7495_v56, %v7459_v37  ;;  %v1625_v15 = vmul.f32 %v1497_v58, %v6564_v41 }
 0x382   : > { %7494 = vst [vmem:[#allocation50_spill] sm:$0xff] %v6580_v45  ;;  %v2008_v19 = vmul.f32 0.7978846, %v1880_v25  ;;  %v1498_v1 = vmul.f32 %v6580_v45, %v6580_v45  ;;  %v6593_v29 = vadd.f32 %v7497_v48, %v5162_v46  ;;  %v1627_v59 = vmul.f32 %v1499_v31, %v6571_v57  ;;  %v7501_v31 = vld [vmem:[#allocation48_spill] sm:$0xff] }
 0x383   : > { %7496 = vst [vmem:[#allocation33_spill] sm:$0xff] %v6586_v14  ;;  %4334 = vtanh.f32 %v2006_v53  ;;  %v1500_v54 = vmul.f32 %v6586_v14, %v6586_v14  ;;  %v6600_v56 = vadd.f32 %v7499_v35, %v5164_v21  ;;  %v1753_v25 = vmul.f32 0.044715, %v1625_v15  ;;  %v7504_v35 = vld [vmem:[#allocation60_spill] sm:$0xff] }
 0x384   : > { %7498 = vst [vmem:[#allocation24_spill] sm:$0xff] %v6593_v29  ;;  %4336 = vtanh.f32 %v2008_v19  ;;  %v1626_v58 = vmul.f32 %v1498_v1, %v6580_v45  ;;  %v1501_v50 = vmul.f32 %v6593_v29, %v6593_v29  ;;  %v1755_v12 = vmul.f32 0.044715, %v1627_v59 }
 0x385   : > { %7500 = vst [vmem:[#allocation25_spill] sm:$0xff] %v6600_v56  ;;  %v1628_v48 = vmul.f32 %v1500_v54, %v6586_v14  ;;  %v1503_v53 = vmul.f32 %v6600_v56, %v6600_v56  ;;  %v6610_v20 = vadd.f32 %v7501_v31, %v7456_v23  ;;  %v6612_v6 = vpop.eup %4322  ;;  %v1881_v19 = vadd.f32 %v1753_v25, %v6564_v41 }
 0x386   : > { %7503 = vst [vmem:[#allocation29_spill] sm:$0xff] %v6612_v6  ;;  %v1754_v15 = vmul.f32 0.044715, %v1626_v58  ;;  %v1629_v1 = vmul.f32 %v1501_v50, %v6593_v29  ;;  %v6618_v32 = vadd.f32 %v7504_v35, %v7459_v37  ;;  %v6620_v59 = vpop.eup %4324  ;;  %v1883_v54 = vadd.f32 %v1755_v12, %v6571_v57 }
 0x387   : > { %7502 = vst [vmem:[#allocation52_spill] sm:$0xff] %v6610_v20  ;;  %7506 = vst [vmem:[#allocation41_spill] sm:$0xff] %v6620_v59  ;;  %v1756_v52 = vmul.f32 0.044715, %v1628_v48  ;;  %v1631_v9 = vmul.f32 %v1503_v53, %v6600_v56  ;;  %v1502_v31 = vmul.f32 %v6610_v20, %v6610_v20  ;;  %v2009_v25 = vmul.f32 0.7978846, %v1881_v19 }
 0x388   : > { %7505 = vst [vmem:[#allocation49_spill] sm:$0xff] %v6618_v32  ;;  %v6626_v6 = vpop.eup %4326  ;;  %v1882_v58 = vadd.f32 %v1754_v15, %v6580_v45  ;;  %v1757_v50 = vmul.f32 0.044715, %v1629_v1  ;;  %v1504_v35 = vmul.f32 %v6618_v32, %v6618_v32  ;;  %v2011_v59 = vmul.f32 0.7978846, %v1883_v54 }
 0x389   : > { %v6631_v41 = vpop.eup %4328  ;;  %v1884_v12 = vadd.f32 %v1756_v52, %v6586_v14  ;;  %v1759_v48 = vmul.f32 0.044715, %v1631_v9  ;;  %v1630_v53 = vmul.f32 %v1502_v31, %v6610_v20  ;;  %4338 = vtanh.f32 %v2009_v25  ;;  %v7510_v31 = vld [vmem:[#allocation51_spill] sm:$0xff] }
 0x38a   : > { %7507 = vst [vmem:[#allocation40_spill] sm:$0xff] %v6631_v41  ;;  %v6635_v57 = vpop.eup %4330  ;;  %v2010_v42 = vmul.f32 0.7978846, %v1882_v58  ;;  %v1885_v19 = vadd.f32 %v1757_v50, %v6593_v29  ;;  %v1632_v15 = vmul.f32 %v1504_v35, %v6618_v32  ;;  %4340 = vtanh.f32 %v2011_v59  ;;  %v7513_v35 = vld [vmem:[#allocation65_spill] sm:$0xff] }
 0x38b   : > { %7508 = vst [vmem:[#allocation42_spill] sm:$0xff] %v6635_v57  ;;  %v6639_v1 = vpop.eup %4332  ;;  %v2012_v45 = vmul.f32 0.7978846, %v1884_v12  ;;  %v1887_v41 = vadd.f32 %v1759_v48, %v6600_v56  ;;  %v1758_v54 = vmul.f32 0.044715, %v1630_v53  ;;  %v6644_v14 = vadd.f32 %v7510_v31, %v5162_v46  ;;  %v7516_v53 = vld [vmem:[#allocation73_spill] sm:$0xff] }
 0x38c   : > { %7509 = vst [vmem:[#allocation26_spill] sm:$0xff] %v6639_v1  ;;  %4342 = vtanh.f32 %v2010_v42  ;;  %v2013_v52 = vmul.f32 0.7978846, %v1885_v19  ;;  %v1760_v9 = vmul.f32 0.044715, %v1632_v15  ;;  %v6651_v59 = vadd.f32 %v7513_v35, %v5164_v21  ;;  %v7518_v15 = vld [vmem:[#allocation74_spill] sm:$0xff] }
 0x38d   : > { %7511 = vst [vmem:[#allocation23_spill] sm:$0xff] %v6644_v14  ;;  %v6646_v25 = vpop.eup %4334  ;;  %4344 = vtanh.f32 %v2012_v45  ;;  %v2015_v58 = vmul.f32 0.7978846, %v1887_v41  ;;  %v1886_v50 = vadd.f32 %v1758_v54, %v6610_v20  ;;  %v1505_v48 = vmul.f32 %v6644_v14, %v6644_v14  ;;  %v7520_v35 = vld [vmem:[#allocation75_spill] sm:$0xff] }
 0x38e   : > { %7512 = vst [vmem:[#allocation28_spill] sm:$0xff] %v6646_v25  ;;  %7514 = vst [vmem:[#allocation14_spill] sm:$0xff] %v6651_v59  ;;  %v6653_v12 = vpop.eup %4336  ;;  %4346 = vtanh.f32 %v2013_v52  ;;  %v1888_v42 = vadd.f32 %v1760_v9, %v6618_v32  ;;  %v6660_v19 = vadd.f32 %v7516_v53, %v7456_v23  ;;  %v1507_v45 = vmul.f32 %v6651_v59, %v6651_v59  ;;  %v7521_v53 = vld [vmem:[#allocation31_spill] sm:$0xff] }
 0x38f   : > { %7515 = vst [vmem:[#allocation53_spill] sm:$0xff] %v6653_v12  ;;  %4348 = vtanh.f32 %v2015_v58  ;;  %v2014_v41 = vmul.f32 0.7978846, %v1886_v50  ;;  %v6666_v54 = vadd.f32 %v7518_v15, %v7459_v37  ;;  %v1633_v52 = vmul.f32 %v1505_v48, %v6644_v14 }
 0x390   : > { %7517 = vst [vmem:[#allocation72_spill] sm:$0xff] %v6660_v19  ;;  %v2016_v31 = vmul.f32 0.7978846, %v1888_v42  ;;  %v1506_v9 = vmul.f32 %v6660_v19, %v6660_v19  ;;  %v6673_v56 = vadd.f32 %v7520_v35, %v5162_v46  ;;  %v1635_v58 = vmul.f32 %v1507_v45, %v6651_v59  ;;  %v7522_v45 = vld [vmem:[#allocation39_spill] sm:$0xff] }
 0x391   : > { %7519 = vst [vmem:[#allocation15_spill] sm:$0xff] %v6666_v54  ;;  %4350 = vtanh.f32 %v2014_v41  ;;  %v1508_v50 = vmul.f32 %v6666_v54, %v6666_v54  ;;  %v6680_v15 = vadd.f32 %v7521_v53, %v5164_v21  ;;  %v1761_v42 = vmul.f32 0.044715, %v1633_v52  ;;  %v7524_v53 = vld [vmem:[#allocation80_spill] sm:$0xff] }
 0x392   : > { %4352 = vtanh.f32 %v2016_v31  ;;  %v1634_v48 = vmul.f32 %v1506_v9, %v6660_v19  ;;  %v1509_v29 = vmul.f32 %v6673_v56, %v6673_v56  ;;  %v1763_v32 = vmul.f32 0.044715, %v1635_v58 }
 0x393   : > { %v1636_v35 = vmul.f32 %v1508_v50, %v6666_v54  ;;  %v1511_v41 = vmul.f32 %v6680_v15, %v6680_v15  ;;  %v6690_v20 = vadd.f32 %v7522_v45, %v7456_v23  ;;  %v6692_v1 = vpop.eup %4338  ;;  %v1889_v31 = vadd.f32 %v1761_v42, %v6644_v14 }
 0x394   : > { %7523 = vst [vmem:[#allocation54_spill] sm:$0xff] %v6692_v1  ;;  %v1762_v52 = vmul.f32 0.044715, %v1634_v48  ;;  %v1637_v9 = vmul.f32 %v1509_v29, %v6673_v56  ;;  %v6698_v57 = vadd.f32 %v7524_v53, %v7459_v37  ;;  %v6700_v58 = vpop.eup %4340  ;;  %v1891_v50 = vadd.f32 %v1763_v32, %v6651_v59 }
 0x395   : > { %7525 = vst [vmem:[#allocation55_spill] sm:$0xff] %v6700_v58  ;;  %v1764_v12 = vmul.f32 0.044715, %v1636_v35  ;;  %v1639_v10 = vmul.f32 %v1511_v41, %v6680_v15  ;;  %v1510_v45 = vmul.f32 %v6690_v20, %v6690_v20  ;;  %v2017_v42 = vmul.f32 0.7978846, %v1889_v31 }
 0x396   : > { %v6706_v1 = vpop.eup %4342  ;;  %v1890_v48 = vadd.f32 %v1762_v52, %v6660_v19  ;;  %v1765_v29 = vmul.f32 0.044715, %v1637_v9  ;;  %v1512_v53 = vmul.f32 %v6698_v57, %v6698_v57  ;;  %v2019_v58 = vmul.f32 0.7978846, %v1891_v50 }
 0x397   : > { %v6711_v14 = vpop.eup %4344  ;;  %v1892_v32 = vadd.f32 %v1764_v12, %v6666_v54  ;;  %v1767_v35 = vmul.f32 0.044715, %v1639_v10  ;;  %v1638_v41 = vmul.f32 %v1510_v45, %v6690_v20  ;;  %4354 = vtanh.f32 %v2017_v42 }
 0x398   : > { %7526 = vst [vmem:[#allocation56_spill] sm:$0xff] %v6711_v14  ;;  %v6715_v59 = vpop.eup %4346  ;;  %v2018_v25 = vmul.f32 0.7978846, %v1890_v48  ;;  %v1893_v31 = vadd.f32 %v1765_v29, %v6673_v56  ;;  %v1640_v52 = vmul.f32 %v1512_v53, %v6698_v57  ;;  %4356 = vtanh.f32 %v2019_v58 }
 0x399   : > { %v6719_v9 = vpop.eup %4348  ;;  %v2020_v19 = vmul.f32 0.7978846, %v1892_v32  ;;  %v1895_v14 = vadd.f32 %v1767_v35, %v6680_v15  ;;  %v1766_v50 = vmul.f32 0.044715, %v1638_v41  ;;  %v2242_v45 = vadd.f32 1.0, %v6466_v33 }
 0x39a   : > { %4358 = vtanh.f32 %v2018_v25  ;;  %v2021_v12 = vmul.f32 0.7978846, %v1893_v31  ;;  %v1768_v10 = vmul.f32 0.044715, %v1640_v52  ;;  %v2246_v29 = vadd.f32 1.0, %v6486_v51 }
 0x39b   : > { %v6723_v54 = vpop.eup %4350  ;;  %4360 = vtanh.f32 %v2020_v19  ;;  %v2023_v42 = vmul.f32 0.7978846, %v1895_v14  ;;  %v1894_v48 = vadd.f32 %v1766_v50, %v6690_v20  ;;  %v2370_v32 = vmul.f32 0.5, %v2242_v45 }
 0x39c   : > { %v6727_v53 = vpop.eup %4352  ;;  %4362 = vtanh.f32 %v2021_v12  ;;  %v1896_v58 = vadd.f32 %v1768_v10, %v6698_v57  ;;  %v2244_v25 = vadd.f32 1.0, %v6473_v34  ;;  %v2374_v41 = vmul.f32 0.5, %v2246_v29 }
 0x39d   : > { %4364 = vtanh.f32 %v2023_v42  ;;  %v2022_v35 = vmul.f32 0.7978846, %v1894_v48  ;;  %v2248_v33 = vadd.f32 1.0, %v6493_v22  ;;  %v2498_v14 = vmul.f32 %v2370_v32, %v6354_v47 }
 0x39e   : > { %v2024_v31 = vmul.f32 0.7978846, %v1896_v58  ;;  %v2372_v19 = vmul.f32 0.5, %v2244_v25  ;;  %v2241_v52 = vadd.f32 1.0, %v6452_v24  ;;  %v2502_v51 = vmul.f32 %v2374_v41, %v6381_v4 }
 0x39f   : > { %4366 = vtanh.f32 %v2022_v35  ;;  %v2376_v50 = vmul.f32 0.5, %v2248_v33  ;;  %v2245_v12 = vadd.f32 1.0, %v6477_v28  ;;  %v2243_v45 = vadd.f32 1.0, %v6460_v0 }
 0x3a0   : > { %4368 = vtanh.f32 %v2024_v31  ;;  %v2500_v34 = vmul.f32 %v2372_v19, %v6365_v26  ;;  %v2369_v10 = vmul.f32 0.5, %v2241_v52  ;;  %v2618_v42 = vpack.c.bf16 %v2502_v51, %v2498_v14  ;;  %v7529_v51 = vld [vmem:[#allocation78_spill] sm:$0xff] }
 0x3a1   : > { %v2504_v22 = vmul.f32 %v2376_v50, %v6389_v39  ;;  %v2373_v48 = vmul.f32 0.5, %v2245_v12  ;;  %v2247_v47 = vadd.f32 1.0, %v6480_v11  ;;  %v6740_v29 = vpop.eup %4354  ;;  %v2371_v4 = vmul.f32 0.5, %v2243_v45  ;;  %v7530_v45 = vld [vmem:[#allocation77_spill] sm:$0xff] }
 0x3a2   : > { %v2497_v24 = vmul.f32 %v2369_v10, %v6342_v43  ;;  %v6745_v28 = vadd.f32 %v6286_v7, %v5162_v46  ;;  %v6749_v26 = vadd.f32 %v6288_v13, %v5164_v21  ;;  %v6751_v0 = vpop.eup %4356  ;;  %3009 = vmatprep.mubr.bf16.mxu0 %v2618_v42  ;;  %v6756_v32 = vadd.f32 %v6292_v3, %v7456_v23 }
 0x3a3   : > { %v2620_v39 = vpack.c.bf16 %v2504_v22, %v2500_v34  ;;  %v2501_v58 = vmul.f32 %v2373_v48, %v6370_v49  ;;  %v2375_v11 = vmul.f32 0.5, %v2247_v47  ;;  %v2499_v7 = vmul.f32 %v2371_v4, %v6347_v55  ;;  %v7528_v55 = vld [vmem:[#allocation76_spill] sm:$0xff] }
 0x3a4   : > { %7527 = vst [vmem:[#allocation57_spill] sm:$0xff] %v6749_v26  ;;  %v6758_v43 = vpop.eup %4358  ;;  %v1513_v25 = vmul.f32 %v6745_v28, %v6745_v28  ;;  %v1515_v13 = vmul.f32 %v6749_v26, %v6749_v26  ;;  %v6767_v35 = vadd.f32 %v6294_v27, %v7459_v37  ;;  %v1514_v33 = vmul.f32 %v6756_v32, %v6756_v32 }
 0x3a5   : > { %v6769_v49 = vpop.eup %4360  ;;  %3170 = vmatprep.mubr.bf16.mxu1 %v2620_v39  ;;  %v2617_v41 = vpack.c.bf16 %v2501_v58, %v2497_v24  ;;  %v2503_v3 = vmul.f32 %v2375_v11, %v6374_v17  ;;  %v6776_v31 = vadd.f32 %v7528_v55, %v5162_v46  ;;  %v6786_v50 = vadd.f32 %v7529_v51, %v5164_v21  ;;  %v6788_v17 = vpop.f32.mrb[64].mxu0 }
 0x3a6   : > { %v6778_v14 = vpop.eup %4362  ;;  %v1641_v19 = vmul.f32 %v1513_v25, %v6745_v28  ;;  %v1643_v27 = vmul.f32 %v1515_v13, %v6749_v26  ;;  %v1516_v52 = vmul.f32 %v6767_v35, %v6767_v35  ;;  %v1642_v34 = vmul.f32 %v1514_v33, %v6756_v32  ;;  %v6799_v22 = vpop.f32.mrb[65].mxu0 }
 0x3a7   : > { %v6790_v12 = vpop.eup %4364  ;;  %3010 = vmatmul.mubr.bf16.gmra.mrb[104].mxu0 %v2617_v41  ;;  %v2619_v46 = vpack.c.bf16 %v2503_v3, %v2499_v7  ;;  %v1517_v10 = vmul.f32 %v6776_v31, %v6776_v31  ;;  %v6797_v42 = vadd.f32 %v7530_v45, %v7456_v23  ;;  %v1519_v24 = vmul.f32 %v6786_v50, %v6786_v50  ;;  %v6804_v4 = vpop.f32.mrb[66].mxu0 }
 0x3a8   : > { %v1769_v48 = vmul.f32 0.044715, %v1641_v19  ;;  %v1771_v21 = vmul.f32 0.044715, %v1643_v27  ;;  %v1644_v47 = vmul.f32 %v1516_v52, %v6767_v35  ;;  %v1770_v58 = vmul.f32 0.044715, %v1642_v34 }
 0x3a9   : > { %v6806_v39 = vpop.eup %4366  ;;  %3171 = vmatmul.mubr.bf16.gmra.mrb[104].mxu1 %v2619_v46  ;;  %v1645_v11 = vmul.f32 %v1517_v10, %v6776_v31  ;;  %v1518_v23 = vmul.f32 %v6797_v42, %v6797_v42  ;;  %v6813_v7 = vadd.f32 %v6307_v2, %v7459_v37  ;;  %v6815_v25 = vpop.f32.mrb[67].mxu0  ;;  %v1647_v55 = vmul.f32 %v1519_v24, %v6786_v50 }
 0x3aa   : > { %7531 = vst [vmem:[#allocation36_spill] sm:$0xff] %v6815_v25  ;;  %v6817_v13 = vpop.eup %4368  ;;  %v1897_v41 = vadd.f32 %v1769_v48, %v6745_v28  ;;  %v1899_v3 = vadd.f32 %v1771_v21, %v6749_v26  ;;  %v1772_v33 = vmul.f32 0.044715, %v1644_v47  ;;  %v6822_v19 = vpop.f32.mrb[64].mxu1  ;;  %v1898_v27 = vadd.f32 %v1770_v58, %v6756_v32 }
 0x3ab   : > { %v1773_v52 = vmul.f32 0.044715, %v1645_v11  ;;  %v1646_v51 = vmul.f32 %v1518_v23, %v6797_v42  ;;  %v1520_v2 = vmul.f32 %v6813_v7, %v6813_v7  ;;  %v6828_v37 = vpop.f32.mrb[65].mxu1  ;;  %v1775_v45 = vmul.f32 0.044715, %v1647_v55 }
 0x3ac   : > { %v2025_v46 = vmul.f32 0.7978846, %v1897_v41  ;;  %v2027_v34 = vmul.f32 0.7978846, %v1899_v3  ;;  %v1900_v10 = vadd.f32 %v1772_v33, %v6767_v35  ;;  %v2026_v48 = vmul.f32 0.7978846, %v1898_v27 }
 0x3ad   : > { %v1901_v21 = vadd.f32 %v1773_v52, %v6776_v31  ;;  %v1774_v47 = vmul.f32 0.044715, %v1646_v51  ;;  %v1648_v24 = vmul.f32 %v1520_v2, %v6813_v7  ;;  %v6833_v58 = vpop.f32.mrb[66].mxu1  ;;  %v1903_v23 = vadd.f32 %v1775_v45, %v6786_v50 }
 0x3ae   : > { %4370 = vtanh.f32 %v2025_v46  ;;  %v2028_v11 = vmul.f32 0.7978846, %v1900_v10  ;;  %v2250_v26 = vadd.f32 1.0, %v6546_v5  ;;  %v6837_v25 = vpop.f32.mrb[67].mxu1  ;;  %v2254_v27 = vadd.f32 1.0, %v6566_v8 }
 0x3af   : > { %4372 = vtanh.f32 %v2027_v34  ;;  %v2029_v41 = vmul.f32 0.7978846, %v1901_v21  ;;  %v1902_v3 = vadd.f32 %v1774_v47, %v6797_v42  ;;  %v1776_v33 = vmul.f32 0.044715, %v1648_v24 }
 0x3b0   : > { %4374 = vtanh.f32 %v2026_v48  ;;  %v2031_v55 = vmul.f32 0.7978846, %v1903_v23  ;;  %v2378_v52 = vmul.f32 0.5, %v2250_v26  ;;  %v2252_v46 = vadd.f32 1.0, %v6551_v16 }
 0x3b1   : > { %4376 = vtanh.f32 %v2028_v11  ;;  %v2030_v51 = vmul.f32 0.7978846, %v1902_v3  ;;  %v1904_v2 = vadd.f32 %v1776_v33, %v6813_v7  ;;  %v2382_v5 = vmul.f32 0.5, %v2254_v27  ;;  %v7532_v33 = vld [vmem:[#allocation28_spill] sm:$0xff]  ;;  %v7533_v27 = vld [vmem:[#allocation22_spill] sm:$0xff] }
 0x3b2   : > { %4378 = vtanh.f32 %v2029_v41  ;;  %v2506_v10 = vmul.f32 %v2378_v52, %v6420_v63  ;;  %v2256_v34 = vadd.f32 1.0, %v6573_v62  ;;  %v2380_v21 = vmul.f32 0.5, %v2252_v46  ;;  %v7535_v46 = vld [vmem:[#allocation79_spill] sm:$0xff] }
 0x3b3   : > { %4380 = vtanh.f32 %v2031_v55  ;;  %v2032_v45 = vmul.f32 0.7978846, %v1904_v2  ;;  %v2249_v48 = vadd.f32 1.0, %v6532_v30  ;;  %v2510_v8 = vmul.f32 %v2382_v5, %v6450_v38 }
 0x3b4   : > { %4382 = vtanh.f32 %v2030_v51  ;;  %v2384_v26 = vmul.f32 0.5, %v2256_v34  ;;  %v2253_v47 = vadd.f32 1.0, %v6555_v18  ;;  %v2508_v16 = vmul.f32 %v2380_v21, %v6426_v40  ;;  %v7534_v51 = vld [vmem:[#allocation40_spill] sm:$0xff] }
 0x3b5   : > { %4384 = vtanh.f32 %v2032_v45  ;;  %v2377_v24 = vmul.f32 0.5, %v2249_v48  ;;  %v2251_v11 = vadd.f32 1.0, %v6540_v60  ;;  %v2622_v63 = vpack.c.bf16 %v2510_v8, %v2506_v10  ;;  %v7536_v10 = vld [vmem:[#allocation53_spill] sm:$0xff]  ;;  %v7537_v21 = vld [vmem:[#allocation20_spill] sm:$0xff] }
 0x3b6   : > { %v2512_v62 = vmul.f32 %v2384_v26, %v6458_v44  ;;  %v2381_v23 = vmul.f32 0.5, %v2253_v47  ;;  %v2255_v41 = vadd.f32 1.0, %v6559_v61  ;;  %v2258_v38 = vadd.f32 1.0, %v6626_v6  ;;  %v7538_v26 = vld [vmem:[#allocation29_spill] sm:$0xff] }
 0x3b7   : > { %v2505_v30 = vmul.f32 %v2377_v24, %v6409_v36  ;;  %v2379_v3 = vmul.f32 0.5, %v2251_v11  ;;  %v2262_v55 = vadd.f32 1.0, %v7532_v33  ;;  %3017 = vmatprep.mubr.bf16.mxu0 %v2622_v63  ;;  %v2260_v2 = vadd.f32 1.0, %v7534_v51  ;;  %v7539_v24 = vld [vmem:[#allocation27_spill] sm:$0xff]  ;;  %v7540_v63 = vld [vmem:[#allocation21_spill] sm:$0xff] }
 0x3b8   : > { %v6855_v18 = vpop.eup %4370  ;;  %v2624_v40 = vpack.c.bf16 %v2512_v62, %v2508_v16  ;;  %v2509_v52 = vmul.f32 %v2381_v23, %v7533_v27  ;;  %v2383_v60 = vmul.f32 0.5, %v2255_v41  ;;  %v2386_v5 = vmul.f32 0.5, %v2258_v38  ;;  %v7541_v41 = vld [vmem:[#allocation42_spill] sm:$0xff]  ;;  %v7543_v27 = vld [vmem:[#allocation41_spill] sm:$0xff] }
 0x3b9   : > { %v6859_v44 = vpop.eup %4372  ;;  %v2507_v61 = vmul.f32 %v2379_v3, %v7535_v46  ;;  %v2390_v36 = vmul.f32 0.5, %v2262_v55  ;;  %v2264_v34 = vadd.f32 1.0, %v7536_v10  ;;  %v2388_v8 = vmul.f32 0.5, %v2260_v2  ;;  %v7542_v55 = vld [vmem:[#allocation46_spill] sm:$0xff]  ;;  %v7544_v2 = vld [vmem:[#allocation32_spill] sm:$0xff] }
 0x3ba   : > { %v6863_v6 = vpop.eup %4374  ;;  %3178 = vmatprep.mubr.bf16.mxu1 %v2624_v40  ;;  %v2621_v45 = vpack.c.bf16 %v2509_v52, %v2505_v30  ;;  %v2511_v48 = vmul.f32 %v2383_v60, %v7537_v21  ;;  %v2257_v47 = vadd.f32 1.0, %v7538_v26  ;;  %v2514_v11 = vmul.f32 %v2386_v5, %v7539_v24  ;;  %v7545_v10 = vld [vmem:[#allocation26_spill] sm:$0xff] }
 0x3bb   : > { %v6867_v16 = vpop.eup %4376  ;;  %v2518_v62 = vmul.f32 %v2390_v36, %v7540_v63  ;;  %v2392_v23 = vmul.f32 0.5, %v2264_v34  ;;  %v2261_v3 = vadd.f32 1.0, %v7541_v41  ;;  %v2516_v30 = vmul.f32 %v2388_v8, %v7542_v55  ;;  %v6880_v34 = vpop.f32.mrb[68].mxu0  ;;  %v7547_v63 = vld [vmem:[#allocation45_spill] sm:$0xff]  ;;  %v7548_v41 = vld [vmem:[#allocation56_spill] sm:$0xff] }
 0x3bc   : > { %v6872_v38 = vpop.eup %4378  ;;  %3018 = vmatmul.mubr.bf16.gmra.mrb[108].mxu0 %v2621_v45  ;;  %v2623_v33 = vpack.c.bf16 %v2511_v48, %v2507_v61  ;;  %v2385_v40 = vmul.f32 0.5, %v2257_v47  ;;  %v2259_v52 = vadd.f32 1.0, %v7543_v27  ;;  %v2263_v36 = vadd.f32 1.0, %v7545_v10  ;;  %v7546_v45 = vld [vmem:[#allocation19_spill] sm:$0xff]  ;;  %v6887_v47 = vpop.f32.mrb[69].mxu0 }
 0x3bd   : > { %v6876_v60 = vpop.eup %4380  ;;  %v2626_v51 = vpack.c.bf16 %v2518_v62, %v2514_v11  ;;  %v2520_v46 = vmul.f32 %v2392_v23, %v7544_v2  ;;  %v2389_v5 = vmul.f32 0.5, %v2261_v3  ;;  %v2266_v8 = vadd.f32 1.0, %v6706_v1  ;;  %v6893_v55 = vpop.f32.mrb[68].mxu1 }
 0x3be   : > { %v6882_v21 = vpop.eup %4382  ;;  %3179 = vmatmul.mubr.bf16.gmra.mrb[108].mxu1 %v2623_v33  ;;  %v2513_v61 = vmul.f32 %v2385_v40, %v7546_v45  ;;  %v2387_v48 = vmul.f32 0.5, %v2259_v52  ;;  %v2270_v26 = vadd.f32 1.0, %v6723_v54  ;;  %v2391_v23 = vmul.f32 0.5, %v2263_v36  ;;  %v6895_v33 = vpop.f32.mrb[70].mxu0  ;;  %v7550_v40 = vld [vmem:[#allocation30_spill] sm:$0xff] }
 0x3bf   : > { %v6889_v24 = vpop.eup %4384  ;;  %3025 = vmatprep.mubr.bf16.mxu0 %v2626_v51  ;;  %v2628_v11 = vpack.c.bf16 %v2520_v46, %v2516_v30  ;;  %v2517_v62 = vmul.f32 %v2389_v5, %v7547_v63  ;;  %v2268_v3 = vadd.f32 1.0, %v7548_v41  ;;  %7549 = vst [vmem:[#allocation61_spill] sm:$0xff] %v6895_v33  ;;  %v2394_v1 = vmul.f32 0.5, %v2266_v8  ;;  %v6899_v2 = vpop.f32.mrb[69].mxu1  ;;  %v7553_v51 = vld [vmem:[#allocation17_spill] sm:$0xff]  ;;  %v7554_v36 = vld [vmem:[#allocation54_spill] sm:$0xff] }
 0x3c0   : > { %v2515_v27 = vmul.f32 %v2387_v48, %v7550_v40  ;;  %v2398_v52 = vmul.f32 0.5, %v2270_v26  ;;  %v2272_v54 = vadd.f32 1.0, %v6727_v53  ;;  %7551 = vst [vmem:[#allocation44_spill] sm:$0xff] %v6899_v2  ;;  %v6901_v10 = vpop.f32.mrb[71].mxu0  ;;  %v2519_v46 = vmul.f32 %v2391_v23, %v7553_v51  ;;  %v6905_v63 = vpop.f32.mrb[70].mxu1  ;;  %v7556_v41 = vld [vmem:[#allocation50_spill] sm:$0xff] }
 0x3c1   : > { %7552 = vst [vmem:[#allocation37_spill] sm:$0xff] %v6901_v10  ;;  %3186 = vmatprep.mubr.bf16.mxu1 %v2628_v11  ;;  %v2625_v30 = vpack.c.bf16 %v2517_v62, %v2513_v61  ;;  %v2396_v5 = vmul.f32 0.5, %v2268_v3  ;;  %v2265_v45 = vadd.f32 1.0, %v7554_v36  ;;  %7555 = vst [vmem:[#allocation64_spill] sm:$0xff] %v6905_v63  ;;  %v2522_v33 = vmul.f32 %v2394_v1, %v7556_v41  ;;  %v7557_v48 = vld [vmem:[#allocation52_spill] sm:$0xff]  ;;  %v6910_v40 = vpop.f32.mrb[71].mxu1 }
 0x3c2   : > { %v2526_v8 = vmul.f32 %v2398_v52, %v7557_v48  ;;  %v2400_v26 = vmul.f32 0.5, %v2272_v54  ;;  %v2269_v53 = vadd.f32 1.0, %v6715_v59  ;;  %v2627_v2 = vpack.c.bf16 %v2519_v46, %v2515_v27  ;;  %v7558_v10 = vld [vmem:[#allocation33_spill] sm:$0xff]  ;;  %v7559_v62 = vld [vmem:[#allocation55_spill] sm:$0xff]  ;;  %v7561_v41 = vld [vmem:[#allocation18_spill] sm:$0xff] }
 0x3c3   : > { %v2524_v11 = vmul.f32 %v2396_v5, %v7558_v10  ;;  %v2393_v61 = vmul.f32 0.5, %v2265_v45  ;;  %v2267_v23 = vadd.f32 1.0, %v7559_v62  ;;  %v7560_v51 = vld [vmem:[#allocation49_spill] sm:$0xff]  ;;  %v2271_v1 = vadd.f32 1.0, %v6719_v9  ;;  %v7562_v10 = vld [vmem:[#allocation24_spill] sm:$0xff] }
 0x3c4   : > { %3026 = vmatmul.mubr.bf16.gmra.mrb[112].mxu0 %v2625_v30  ;;  %v2630_v3 = vpack.c.bf16 %v2526_v8, %v2522_v33  ;;  %v2528_v36 = vmul.f32 %v2400_v26, %v7560_v51  ;;  %v2397_v63 = vmul.f32 0.5, %v2269_v53  ;;  %v2274_v59 = vadd.f32 1.0, %v6758_v43  ;;  %v7563_v30 = vld [vmem:[#allocation16_spill] sm:$0xff]  ;;  %v7566_v51 = vld [vmem:[#allocation15_spill] sm:$0xff] }
 0x3c5   : > { %v2521_v52 = vmul.f32 %v2393_v61, %v7561_v41  ;;  %v2395_v54 = vmul.f32 0.5, %v2267_v23  ;;  %v2278_v48 = vadd.f32 1.0, %v6806_v39  ;;  %v2399_v5 = vmul.f32 0.5, %v2271_v1  ;;  %v7564_v61 = vld [vmem:[#allocation25_spill] sm:$0xff] }
 0x3c6   : > { %3187 = vmatmul.mubr.bf16.gmra.mrb[112].mxu1 %v2627_v2  ;;  %3033 = vmatprep.mubr.bf16.mxu0 %v2630_v3  ;;  %v2632_v27 = vpack.c.bf16 %v2528_v36, %v2524_v11  ;;  %v2525_v46 = vmul.f32 %v2397_v63, %v7562_v10  ;;  %v2276_v33 = vadd.f32 1.0, %v6769_v49  ;;  %v2402_v8 = vmul.f32 0.5, %v2274_v59  ;;  %v7565_v2 = vld [vmem:[#allocation72_spill] sm:$0xff] }
 0x3c7   : > { %v2523_v45 = vmul.f32 %v2395_v54, %v7563_v30  ;;  %v2406_v26 = vmul.f32 0.5, %v2278_v48  ;;  %v2280_v9 = vadd.f32 1.0, %v6817_v13  ;;  %v2527_v43 = vmul.f32 %v2399_v5, %v7564_v61 }
 0x3c8   : > { %3194 = vmatprep.mubr.bf16.mxu1 %v2632_v27  ;;  %v2629_v53 = vpack.c.bf16 %v2525_v46, %v2521_v52  ;;  %v2404_v62 = vmul.f32 0.5, %v2276_v33  ;;  %v2273_v39 = vadd.f32 1.0, %v6740_v29  ;;  %v2530_v11 = vmul.f32 %v2402_v8, %v7565_v2  ;;  %v7567_v29 = vld [vmem:[#allocation23_spill] sm:$0xff] }
 0x3c9   : > { %v2534_v63 = vmul.f32 %v2406_v26, %v6690_v20  ;;  %v2408_v23 = vmul.f32 0.5, %v2280_v9  ;;  %v2277_v49 = vadd.f32 1.0, %v6778_v14  ;;  %v2631_v3 = vpack.c.bf16 %v2527_v43, %v2523_v45 }
 0x3ca   : > { %v2532_v36 = vmul.f32 %v2404_v62, %v7566_v51  ;;  %v2401_v1 = vmul.f32 0.5, %v2273_v39  ;;  %v2275_v13 = vadd.f32 1.0, %v6751_v0  ;;  %v2279_v59 = vadd.f32 1.0, %v6790_v12 }
 0x3cb   : > { %v2634_v41 = vpack.c.bf16 %v2534_v63, %v2530_v11  ;;  %v2536_v52 = vmul.f32 %v2408_v23, %v6698_v57  ;;  %v2405_v54 = vmul.f32 0.5, %v2277_v49  ;;  %v2282_v20 = vadd.f32 1.0, %v6863_v6  ;;  %v7568_v57 = vld [vmem:[#allocation14_spill] sm:$0xff] }
 0x3cc   : > { %3034 = vmatmul.mubr.bf16.gmra.mrb[116].mxu0 %v2629_v53  ;;  %v2529_v48 = vmul.f32 %v2401_v1, %v7567_v29  ;;  %v2403_v27 = vmul.f32 0.5, %v2275_v13  ;;  %v2286_v14 = vadd.f32 1.0, %v6882_v21  ;;  %v2407_v5 = vmul.f32 0.5, %v2279_v59  ;;  %v7570_v1 = vld [vmem:[#allocation57_spill] sm:$0xff]  ;;  %v7571_v59 = vld [vmem:[#allocation44_spill] sm:$0xff] }
 0x3cd   : > { %3041 = vmatprep.mubr.bf16.mxu0 %v2634_v41  ;;  %v2636_v10 = vpack.c.bf16 %v2536_v52, %v2532_v36  ;;  %v2533_v46 = vmul.f32 %v2405_v54, %v6673_v56  ;;  %v2284_v0 = vadd.f32 1.0, %v6867_v16  ;;  %v2410_v30 = vmul.f32 0.5, %v2282_v20  ;;  %v6966_v52 = vld [vmem:[%s7133_s4] ss:$0 sm:$0xff]  ;;  %v3287_v54 = vld [vmem:[%s4797_s27 + $0x8] sm:$0xff]  ;;  %v3288_v20 = vld [vmem:[%s4797_s27 + $0x10] sm:$0xff] }
 0x3ce   : > { %3195 = vmatmul.mubr.bf16.gmra.mrb[116].mxu1 %v2631_v3  ;;  %v2531_v33 = vmul.f32 %v2403_v27, %v7568_v57  ;;  %v2414_v12 = vmul.f32 0.5, %v2286_v14  ;;  %v2288_v45 = vadd.f32 1.0, %v6889_v24  ;;  %v2535_v6 = vmul.f32 %v2407_v5, %v6680_v15  ;;  %v3286_v3 = vld [vmem:[%s4797_s27] sm:$0xff] }
 0x3cf   : > { %3202 = vmatprep.mubr.bf16.mxu1 %v2636_v10  ;;  %v2633_v8 = vpack.c.bf16 %v2533_v46, %v2529_v48  ;;  %v2412_v26 = vmul.f32 0.5, %v2284_v0  ;;  %v2281_v21 = vadd.f32 1.0, %v6855_v18  ;;  %v2538_v9 = vmul.f32 %v2410_v30, %v6756_v32  ;;  %v3289_v0 = vld [vmem:[%s4797_s27 + $0x18] sm:$0xff] }
 0x3d0   : > { %v2542_v56 = vmul.f32 %v2414_v12, %v6797_v42  ;;  %v2416_v53 = vmul.f32 0.5, %v2288_v45  ;;  %v2285_v16 = vadd.f32 1.0, %v6872_v38  ;;  %v2635_v61 = vpack.c.bf16 %v2535_v6, %v2531_v33  ;;  %v3698_v11 = vpop.f32.mrb[72].mxu0  ;;  %v3290_v45 = vld [vmem:[%s4797_s27 + $0x20] sm:$0xff] }
 0x3d1   : > { %v2540_v43 = vmul.f32 %v2412_v26, %v6767_v35  ;;  %v2409_v62 = vmul.f32 0.5, %v2281_v21  ;;  %v2283_v24 = vadd.f32 1.0, %v6859_v44  ;;  %v2287_v18 = vadd.f32 1.0, %v6876_v60  ;;  %v3810_v63 = vpop.f32.mrb[72].mxu1  ;;  %v3699_v23 = vpop.f32.mrb[73].mxu0  ;;  %v7569_v60 = vld [vmem:[#allocation36_spill] sm:$0xff] }
 0x3d2   : > { %v2638_v39 = vpack.c.bf16 %v2542_v56, %v2538_v9  ;;  %v2544_v15 = vmul.f32 %v2416_v53, %v6813_v7  ;;  %v2413_v2 = vmul.f32 0.5, %v2285_v16  ;;  %v3688_v38 = vadd.f32 %v6799_v22, %v6788_v17  ;;  %v3701_v36 = vpop.f32.mrb[74].mxu0  ;;  %v3291_v21 = vld [vmem:[%s4797_s27 + $0x28] sm:$0xff] }
 0x3d3   : > { %v2537_v32 = vmul.f32 %v2409_v62, %v6745_v28  ;;  %v2411_v42 = vmul.f32 0.5, %v2283_v24  ;;  %v3800_v35 = vadd.f32 %v6828_v37, %v6822_v19  ;;  %v2415_v7 = vmul.f32 0.5, %v2287_v18  ;;  %v3811_v28 = vpop.f32.mrb[73].mxu1  ;;  %v3702_v13 = vpop.f32.mrb[75].mxu0 }
 0x3d4   : > { %3042 = vmatmul.mubr.bf16.gmra.mrb[120].mxu0 %v2633_v8  ;;  %v2640_v44 = vpack.c.bf16 %v2544_v15, %v2540_v43  ;;  %v2541_v49 = vmul.f32 %v2413_v2, %v6776_v31  ;;  %v3691_v51 = vadd.f32 %v7569_v60, %v6804_v4  ;;  %v3803_v19 = vadd.f32 %v6837_v25, %v6833_v58  ;;  %v3813_v31 = vpop.f32.mrb[74].mxu1  ;;  %v7572_v25 = vld [vmem:[#allocation61_spill] sm:$0xff] }
 0x3d5   : > { %3049 = vmatprep.mubr.bf16.mxu0 %v2638_v39  ;;  %v2539_v17 = vmul.f32 %v2411_v42, %v7570_v1  ;;  %v3093_v22 = vadd.f32 %v3800_v35, %v3688_v38  ;;  %v3694_v37 = vadd.f32 %v6887_v47, %v6880_v34  ;;  %v2543_v4 = vmul.f32 %v2415_v7, %v6786_v50  ;;  %v7573_v58 = vld [vmem:[#allocation37_spill] sm:$0xff]  ;;  %v3814_v34 = vpop.f32.mrb[75].mxu1  ;;  %v7574_v50 = vld [vmem:[#allocation64_spill] sm:$0xff] }
 0x3d6   : > { %3203 = vmatmul.mubr.bf16.gmra.mrb[120].mxu1 %v2635_v61  ;;  %v2637_v41 = vpack.c.bf16 %v2541_v49, %v2537_v32  ;;  %v3806_v29 = vadd.f32 %v7571_v59, %v6893_v55  ;;  %v3697_v48 = vadd.f32 %v7573_v58, %v7572_v25  ;;  %v3096_v27 = vadd.f32 %v3803_v19, %v3691_v51  ;;  %v3294_v59 = vld [vmem:[%s4797_s27 + $0x40] sm:$0xff] }
 0x3d7   : > { %3210 = vmatprep.mubr.bf16.mxu1 %v2640_v44  ;;  %v3350_v47 = vadd.f32 %v3286_v3, %v3093_v22  ;;  %v3809_v14 = vadd.f32 %v6910_v40, %v7574_v50  ;;  %v3700_v10 = vadd.f32 %v3699_v23, %v3698_v11  ;;  %v2639_v46 = vpack.c.bf16 %v2543_v4, %v2539_v17  ;;  %v3293_v3 = vld [vmem:[%s4797_s27 + $0x38] sm:$0xff] }
 0x3d8   : > { %v3101_v5 = vadd.f32 %v3806_v29, %v3694_v37  ;;  %v3812_v57 = vadd.f32 %v3811_v28, %v3810_v63  ;;  %v3703_v55 = vadd.f32 %v3702_v13, %v3701_v36  ;;  %v3351_v30 = vadd.f32 %v3287_v54, %v3096_v27  ;;  %v3292_v63 = vld [vmem:[%s4797_s27 + $0x30] sm:$0xff] }
 0x3d9   : > { %v3389_v33 = vadd.f32 %v6966_v52, %v3350_v47  ;;  %v3104_v12 = vadd.f32 %v3809_v14, %v3697_v48  ;;  %v3815_v8 = vadd.f32 %v3814_v34, %v3813_v31  ;;  %v3295_v34 = vld [vmem:[%s4797_s27 + $0x48] sm:$0xff] }
 0x3da   : > { %v3352_v6 = vadd.f32 %v3288_v20, %v3101_v5  ;;  %v3109_v26 = vadd.f32 %v3812_v57, %v3700_v10  ;;  %v3390_v40 = vadd.f32 %v6966_v52, %v3351_v30 }
 0x3db   : > { %3421 = vst [vmem:[%s6982_s6] sm:$0xff] %v3389_v33  ;;  %v3353_v9 = vadd.f32 %v3289_v0, %v3104_v12  ;;  %v3112_v56 = vadd.f32 %v3815_v8, %v3703_v55 }
 0x3dc   : > { %3050 = vmatmul.mubr.bf16.gmra.mrb[124].mxu0 %v2637_v41  ;;  %v3391_v53 = vadd.f32 %v6966_v52, %v3352_v6  ;;  %v3354_v16 = vadd.f32 %v3290_v45, %v3109_v26  ;;  %3422 = vst [vmem:[%s6982_s6 + $0x8] sm:$0xff] %v3390_v40  ;;  %v3296_v45 = vld [vmem:[%s4797_s27 + $0x50] sm:$0xff]  ;;  %v3297_v40 = vld [vmem:[%s4797_s27 + $0x58] sm:$0xff] }
 0x3dd   : > { %v3392_v61 = vadd.f32 %v6966_v52, %v3353_v9  ;;  %v3355_v43 = vadd.f32 %v3291_v21, %v3112_v56 }
 0x3de   : > { %3211 = vmatmul.mubr.bf16.gmra.mrb[124].mxu1 %v2639_v46  ;;  %3423 = vst [vmem:[%s6982_s6 + $0x10] sm:$0xff] %v3391_v53  ;;  %v3393_v62 = vadd.f32 %v6966_v52, %v3354_v16 }
 0x3df   : > { %3424 = vst [vmem:[%s6982_s6 + $0x18] sm:$0xff] %v3392_v61  ;;  %v3394_v24 = vadd.f32 %v6966_v52, %v3355_v43 }
 0x3e0   : > { %3425 = vst [vmem:[%s6982_s6 + $0x20] sm:$0xff] %v3393_v62 }
 0x3e1   : > { %3426 = vst [vmem:[%s6982_s6 + $0x28] sm:$0xff] %v3394_v24 }
 0x3e6   : > { %v3704_v39 = vpop.f32.mrb[76].mxu0 }
 0x3e7   : > { %v3816_v15 = vpop.f32.mrb[76].mxu1  ;;  %v3705_v2 = vpop.f32.mrb[77].mxu0 }
 0x3e8   : > { %v3706_v18 = vadd.f32 %v3705_v2, %v3704_v39  ;;  %v3817_v11 = vpop.f32.mrb[77].mxu1  ;;  %v3707_v32 = vpop.f32.mrb[78].mxu0 }
 0x3e9   : > { %v3818_v42 = vadd.f32 %v3817_v11, %v3816_v15  ;;  %v3819_v38 = vpop.f32.mrb[78].mxu1  ;;  %v3708_v35 = vpop.f32.mrb[79].mxu0 }
 0x3ea   : > { %v3709_v23 = vadd.f32 %v3708_v35, %v3707_v32  ;;  %v3820_v44 = vpop.f32.mrb[79].mxu1 }
 0x3eb   : > { %v3117_v49 = vadd.f32 %v3818_v42, %v3706_v18  ;;  %v3821_v7 = vadd.f32 %v3820_v44, %v3819_v38  ;;  %v3298_v42 = vld [vmem:[%s4797_s27 + $0x60] sm:$0xff]  ;;  %v3299_v44 = vld [vmem:[%s4797_s27 + $0x68] sm:$0xff] }
 0x3ed   : > { %v3356_v60 = vadd.f32 %v3292_v63, %v3117_v49  ;;  %v3120_v51 = vadd.f32 %v3821_v7, %v3709_v23 }
 0x3ef   : > { %v3395_v28 = vadd.f32 %v6966_v52, %v3356_v60  ;;  %v3357_v36 = vadd.f32 %v3293_v3, %v3120_v51 }
 0x3f1   : > { %3427 = vst [vmem:[%s6982_s6 + $0x30] sm:$0xff] %v3395_v28  ;;  %v3396_v1 = vadd.f32 %v6966_v52, %v3357_v36 }
 0x3f3   : > { %3428 = vst [vmem:[%s6982_s6 + $0x38] sm:$0xff] %v3396_v1 }
 0x3fb   : > { %v3710_v17 = vpop.f32.mrb[80].mxu0 }
 0x3fc   : > { %v3822_v22 = vpop.f32.mrb[80].mxu1  ;;  %v3711_v19 = vpop.f32.mrb[81].mxu0 }
 0x3fd   : > { %v3712_v37 = vadd.f32 %v3711_v19, %v3710_v17  ;;  %v3823_v31 = vpop.f32.mrb[81].mxu1  ;;  %v3713_v13 = vpop.f32.mrb[82].mxu0 }
 0x3fe   : > { %v3824_v41 = vadd.f32 %v3823_v31, %v3822_v22  ;;  %v3825_v4 = vpop.f32.mrb[82].mxu1  ;;  %v3714_v54 = vpop.f32.mrb[83].mxu0 }
 0x3ff   : > { %v3715_v29 = vadd.f32 %v3714_v54, %v3713_v13  ;;  %v3826_v25 = vpop.f32.mrb[83].mxu1 }
 0x400   : > { %v3125_v58 = vadd.f32 %v3824_v41, %v3712_v37  ;;  %v3827_v48 = vadd.f32 %v3826_v25, %v3825_v4  ;;  %v3300_v41 = vld [vmem:[%s4797_s27 + $0x70] sm:$0xff]  ;;  %v3301_v25 = vld [vmem:[%s4797_s27 + $0x78] sm:$0xff] }
 0x402   : > { %v3358_v47 = vadd.f32 %v3294_v59, %v3125_v58  ;;  %v3128_v27 = vadd.f32 %v3827_v48, %v3715_v29 }
 0x404   : > { %v3397_v20 = vadd.f32 %v6966_v52, %v3358_v47  ;;  %v3359_v50 = vadd.f32 %v3295_v34, %v3128_v27 }
 0x406   : > { %3429 = vst [vmem:[%s6982_s6 + $0x40] sm:$0xff] %v3397_v20  ;;  %v3398_v14 = vadd.f32 %v6966_v52, %v3359_v50 }
 0x408   : > { %3430 = vst [vmem:[%s6982_s6 + $0x48] sm:$0xff] %v3398_v14 }
 0x411   : > { %v3716_v10 = vpop.f32.mrb[84].mxu0 }
 0x412   : > { %v3828_v46 = vpop.f32.mrb[84].mxu1  ;;  %v3717_v5 = vpop.f32.mrb[85].mxu0 }
 0x413   : > { %v3718_v0 = vadd.f32 %v3717_v5, %v3716_v10  ;;  %v3829_v57 = vpop.f32.mrb[85].mxu1  ;;  %v3719_v55 = vpop.f32.mrb[86].mxu0 }
 0x414   : > { %v3830_v33 = vadd.f32 %v3829_v57, %v3828_v46  ;;  %v3831_v30 = vpop.f32.mrb[86].mxu1  ;;  %v3720_v12 = vpop.f32.mrb[87].mxu0 }
 0x415   : > { %v3721_v8 = vadd.f32 %v3720_v12, %v3719_v55  ;;  %v3832_v6 = vpop.f32.mrb[87].mxu1 }
 0x416   : > { %v3133_v26 = vadd.f32 %v3830_v33, %v3718_v0  ;;  %v3833_v21 = vadd.f32 %v3832_v6, %v3831_v30  ;;  %v3302_v33 = vld [vmem:[%s4797_s27 + $0x80] sm:$0xff]  ;;  %v3303_v6 = vld [vmem:[%s4797_s27 + $0x88] sm:$0xff] }
 0x418   : > { %v3360_v9 = vadd.f32 %v3296_v45, %v3133_v26  ;;  %v3136_v56 = vadd.f32 %v3833_v21, %v3721_v8 }
 0x419   : > { %v3722_v53 = vpop.f32.mrb[88].mxu0 }
 0x41a   : > { %v3399_v16 = vadd.f32 %v6966_v52, %v3360_v9  ;;  %v3361_v61 = vadd.f32 %v3297_v40, %v3136_v56  ;;  %v3834_v43 = vpop.f32.mrb[88].mxu1  ;;  %v3723_v62 = vpop.f32.mrb[89].mxu0 }
 0x41b   : > { %v3724_v24 = vadd.f32 %v3723_v62, %v3722_v53  ;;  %v3835_v39 = vpop.f32.mrb[89].mxu1  ;;  %v3725_v15 = vpop.f32.mrb[90].mxu0 }
 0x41c   : > { %3431 = vst [vmem:[%s6982_s6 + $0x50] sm:$0xff] %v3399_v16  ;;  %v3400_v2 = vadd.f32 %v6966_v52, %v3361_v61  ;;  %v3836_v18 = vadd.f32 %v3835_v39, %v3834_v43  ;;  %v3837_v11 = vpop.f32.mrb[90].mxu1  ;;  %v3726_v32 = vpop.f32.mrb[91].mxu0 }
 0x41d   : > { %v3727_v38 = vadd.f32 %v3726_v32, %v3725_v15  ;;  %v3838_v35 = vpop.f32.mrb[91].mxu1 }
 0x41e   : > { %3432 = vst [vmem:[%s6982_s6 + $0x58] sm:$0xff] %v3400_v2  ;;  %v3141_v63 = vadd.f32 %v3836_v18, %v3724_v24  ;;  %v3839_v23 = vadd.f32 %v3838_v35, %v3837_v11  ;;  %v3304_v18 = vld [vmem:[%s4797_s27 + $0x90] sm:$0xff]  ;;  %v3305_v35 = vld [vmem:[%s4797_s27 + $0x98] sm:$0xff] }
 0x420   : > { %v3362_v49 = vadd.f32 %v3298_v42, %v3141_v63  ;;  %v3144_v7 = vadd.f32 %v3839_v23, %v3727_v38 }
 0x421   : > { %v3728_v3 = vpop.f32.mrb[92].mxu0 }
 0x422   : > { %v3401_v60 = vadd.f32 %v6966_v52, %v3362_v49  ;;  %v3363_v51 = vadd.f32 %v3299_v44, %v3144_v7  ;;  %v3840_v28 = vpop.f32.mrb[92].mxu1  ;;  %v3729_v36 = vpop.f32.mrb[93].mxu0 }
 0x423   : > { %v3730_v1 = vadd.f32 %v3729_v36, %v3728_v3  ;;  %v3841_v17 = vpop.f32.mrb[93].mxu1  ;;  %v3731_v22 = vpop.f32.mrb[94].mxu0 }
 0x424   : > { %3433 = vst [vmem:[%s6982_s6 + $0x60] sm:$0xff] %v3401_v60  ;;  %v3402_v19 = vadd.f32 %v6966_v52, %v3363_v51  ;;  %v3842_v37 = vadd.f32 %v3841_v17, %v3840_v28  ;;  %v3843_v31 = vpop.f32.mrb[94].mxu1  ;;  %v3732_v13 = vpop.f32.mrb[95].mxu0 }
 0x425   : > { %v3733_v4 = vadd.f32 %v3732_v13, %v3731_v22  ;;  %v3844_v54 = vpop.f32.mrb[95].mxu1 }
 0x426   : > { %3434 = vst [vmem:[%s6982_s6 + $0x68] sm:$0xff] %v3402_v19  ;;  %v3149_v59 = vadd.f32 %v3842_v37, %v3730_v1  ;;  %v3845_v29 = vadd.f32 %v3844_v54, %v3843_v31  ;;  %v3306_v31 = vld [vmem:[%s4797_s27 + $0xa0] sm:$0xff]  ;;  %v3307_v54 = vld [vmem:[%s4797_s27 + $0xa8] sm:$0xff] }
 0x428   : > { %v3364_v58 = vadd.f32 %v3300_v41, %v3149_v59  ;;  %v3152_v48 = vadd.f32 %v3845_v29, %v3733_v4 }
 0x429   : > { %v3734_v34 = vpop.f32.mrb[96].mxu0 }
 0x42a   : > { %v3403_v47 = vadd.f32 %v6966_v52, %v3364_v58  ;;  %v3365_v27 = vadd.f32 %v3301_v25, %v3152_v48  ;;  %v3846_v20 = vpop.f32.mrb[96].mxu1  ;;  %v3735_v50 = vpop.f32.mrb[97].mxu0 }
 0x42b   : > { %v3736_v14 = vadd.f32 %v3735_v50, %v3734_v34  ;;  %v3847_v10 = vpop.f32.mrb[97].mxu1  ;;  %v3737_v46 = vpop.f32.mrb[98].mxu0 }
 0x42c   : > { %3435 = vst [vmem:[%s6982_s6 + $0x70] sm:$0xff] %v3403_v47  ;;  %v3404_v5 = vadd.f32 %v6966_v52, %v3365_v27  ;;  %v3848_v0 = vadd.f32 %v3847_v10, %v3846_v20  ;;  %v3849_v57 = vpop.f32.mrb[98].mxu1  ;;  %v3738_v55 = vpop.f32.mrb[99].mxu0 }
 0x42d   : > { %v3739_v30 = vadd.f32 %v3738_v55, %v3737_v46  ;;  %v3850_v12 = vpop.f32.mrb[99].mxu1 }
 0x42e   : > { %3436 = vst [vmem:[%s6982_s6 + $0x78] sm:$0xff] %v3404_v5  ;;  %v3157_v45 = vadd.f32 %v3848_v0, %v3736_v14  ;;  %v3851_v8 = vadd.f32 %v3850_v12, %v3849_v57  ;;  %v3308_v57 = vld [vmem:[%s4797_s27 + $0xb0] sm:$0xff]  ;;  %v3309_v12 = vld [vmem:[%s4797_s27 + $0xb8] sm:$0xff] }
 0x430   : > { %v3366_v26 = vadd.f32 %v3302_v33, %v3157_v45  ;;  %v3160_v21 = vadd.f32 %v3851_v8, %v3739_v30 }
 0x431   : > { %v3740_v40 = vpop.f32.mrb[100].mxu0 }
 0x432   : > { %v3405_v9 = vadd.f32 %v6966_v52, %v3366_v26  ;;  %v3367_v56 = vadd.f32 %v3303_v6, %v3160_v21  ;;  %v3852_v53 = vpop.f32.mrb[100].mxu1  ;;  %v3741_v16 = vpop.f32.mrb[101].mxu0 }
 0x433   : > { %v3742_v61 = vadd.f32 %v3741_v16, %v3740_v40  ;;  %v3853_v43 = vpop.f32.mrb[101].mxu1  ;;  %v3743_v62 = vpop.f32.mrb[102].mxu0 }
 0x434   : > { %3437 = vst [vmem:[%s6982_s6 + $0x80] sm:$0xff] %v3405_v9  ;;  %v3406_v24 = vadd.f32 %v6966_v52, %v3367_v56  ;;  %v3854_v39 = vadd.f32 %v3853_v43, %v3852_v53  ;;  %v3855_v15 = vpop.f32.mrb[102].mxu1  ;;  %v3744_v2 = vpop.f32.mrb[103].mxu0 }
 0x435   : > { %v3745_v11 = vadd.f32 %v3744_v2, %v3743_v62  ;;  %v3856_v32 = vpop.f32.mrb[103].mxu1 }
 0x436   : > { %3438 = vst [vmem:[%s6982_s6 + $0x88] sm:$0xff] %v3406_v24  ;;  %v3165_v42 = vadd.f32 %v3854_v39, %v3742_v61  ;;  %v3857_v38 = vadd.f32 %v3856_v32, %v3855_v15  ;;  %v3310_v15 = vld [vmem:[%s4797_s27 + $0xc0] sm:$0xff]  ;;  %v3311_v32 = vld [vmem:[%s4797_s27 + $0xc8] sm:$0xff] }
 0x438   : > { %v3368_v63 = vadd.f32 %v3304_v18, %v3165_v42  ;;  %v3168_v23 = vadd.f32 %v3857_v38, %v3745_v11 }
 0x43a   : > { %v3407_v44 = vadd.f32 %v6966_v52, %v3368_v63  ;;  %v3369_v49 = vadd.f32 %v3305_v35, %v3168_v23 }
 0x43c   : > { %3439 = vst [vmem:[%s6982_s6 + $0x90] sm:$0xff] %v3407_v44  ;;  %v3408_v7 = vadd.f32 %v6966_v52, %v3369_v49 }
 0x43e   : > { %3440 = vst [vmem:[%s6982_s6 + $0x98] sm:$0xff] %v3408_v7 }
 0x47a   : > { %v3746_v3 = vpop.f32.mrb[104].mxu0 }
 0x47b   : > { %v3747_v60 = vpop.f32.mrb[105].mxu0 }
 0x47c   : > { %v3858_v51 = vpop.f32.mrb[104].mxu1  ;;  %v3748_v28 = vadd.f32 %v3747_v60, %v3746_v3  ;;  %v3749_v36 = vpop.f32.mrb[106].mxu0 }
 0x47d   : > { %v3859_v1 = vpop.f32.mrb[105].mxu1  ;;  %v3750_v17 = vpop.f32.mrb[107].mxu0 }
 0x47e   : > { %v3860_v22 = vadd.f32 %v3859_v1, %v3858_v51  ;;  %v3861_v19 = vpop.f32.mrb[106].mxu1  ;;  %v3751_v37 = vadd.f32 %v3750_v17, %v3749_v36 }
 0x47f   : > { %v3862_v13 = vpop.f32.mrb[107].mxu1 }
 0x480   : > { %v3173_v41 = vadd.f32 %v3860_v22, %v3748_v28  ;;  %v3863_v4 = vadd.f32 %v3862_v13, %v3861_v19  ;;  %v3312_v22 = vld [vmem:[%s4797_s27 + $0xd0] sm:$0xff]  ;;  %v3313_v13 = vld [vmem:[%s4797_s27 + $0xd8] sm:$0xff] }
 0x482   : > { %v3370_v59 = vadd.f32 %v3306_v31, %v3173_v41  ;;  %v3176_v29 = vadd.f32 %v3863_v4, %v3751_v37 }
 0x484   : > { %v3409_v25 = vadd.f32 %v6966_v52, %v3370_v59  ;;  %v3371_v58 = vadd.f32 %v3307_v54, %v3176_v29 }
 0x486   : > { %3441 = vst [vmem:[%s6982_s6 + $0xa0] sm:$0xff] %v3409_v25  ;;  %v3410_v48 = vadd.f32 %v6966_v52, %v3371_v58 }
 0x488   : > { %3442 = vst [vmem:[%s6982_s6 + $0xa8] sm:$0xff] %v3410_v48 }
 0x48f   : > { %v3752_v34 = vpop.f32.mrb[108].mxu0 }
 0x490   : > { %v3753_v47 = vpop.f32.mrb[109].mxu0 }
 0x491   : > { %v3864_v27 = vpop.f32.mrb[108].mxu1  ;;  %v3754_v20 = vadd.f32 %v3753_v47, %v3752_v34  ;;  %v3755_v50 = vpop.f32.mrb[110].mxu0 }
 0x492   : > { %v3865_v14 = vpop.f32.mrb[109].mxu1  ;;  %v3756_v10 = vpop.f32.mrb[111].mxu0 }
 0x493   : > { %v3866_v46 = vadd.f32 %v3865_v14, %v3864_v27  ;;  %v3867_v5 = vpop.f32.mrb[110].mxu1  ;;  %v3757_v0 = vadd.f32 %v3756_v10, %v3755_v50 }
 0x494   : > { %v3868_v55 = vpop.f32.mrb[111].mxu1 }
 0x495   : > { %v3181_v33 = vadd.f32 %v3866_v46, %v3754_v20  ;;  %v3869_v30 = vadd.f32 %v3868_v55, %v3867_v5  ;;  %v3314_v46 = vld [vmem:[%s4797_s27 + $0xe0] sm:$0xff]  ;;  %v3315_v55 = vld [vmem:[%s4797_s27 + $0xe8] sm:$0xff] }
 0x497   : > { %v3372_v45 = vadd.f32 %v3308_v57, %v3181_v33  ;;  %v3184_v8 = vadd.f32 %v3869_v30, %v3757_v0  ;;  %v3758_v6 = vpop.f32.mrb[112].mxu0 }
 0x498   : > { %v3759_v26 = vpop.f32.mrb[113].mxu0 }
 0x499   : > { %v3411_v21 = vadd.f32 %v6966_v52, %v3372_v45  ;;  %v3373_v40 = vadd.f32 %v3309_v12, %v3184_v8  ;;  %v3870_v9 = vpop.f32.mrb[112].mxu1  ;;  %v3760_v56 = vadd.f32 %v3759_v26, %v3758_v6  ;;  %v3761_v53 = vpop.f32.mrb[114].mxu0 }
 0x49a   : > { %v3871_v16 = vpop.f32.mrb[113].mxu1  ;;  %v3762_v61 = vpop.f32.mrb[115].mxu0 }
 0x49b   : > { %3443 = vst [vmem:[%s6982_s6 + $0xb0] sm:$0xff] %v3411_v21  ;;  %v3412_v43 = vadd.f32 %v6966_v52, %v3373_v40  ;;  %v3872_v62 = vadd.f32 %v3871_v16, %v3870_v9  ;;  %v3873_v24 = vpop.f32.mrb[114].mxu1  ;;  %v3763_v39 = vadd.f32 %v3762_v61, %v3761_v53 }
 0x49c   : > { %v3874_v2 = vpop.f32.mrb[115].mxu1 }
 0x49d   : > { %3444 = vst [vmem:[%s6982_s6 + $0xb8] sm:$0xff] %v3412_v43  ;;  %v3189_v18 = vadd.f32 %v3872_v62, %v3760_v56  ;;  %v3875_v11 = vadd.f32 %v3874_v2, %v3873_v24  ;;  %v3316_v62 = vld [vmem:[%s4797_s27 + $0xf0] sm:$0xff]  ;;  %v3317_v2 = vld [vmem:[%s4797_s27 + $0xf8] sm:$0xff]  ;;  %s4478_s27 = scalar_lea.vmem %s4477_s15, 8192 }
 0x49e   : > { %p4480_p5 = scmp.lt.s32.totalorder %s4478_s27, %s4472_s21 }
 0x49f   : > { %v3374_v42 = vadd.f32 %v3310_v15, %v3189_v18  ;;  %v3192_v38 = vadd.f32 %v3875_v11, %v3763_v39  ;;  %v3764_v35 = vpop.f32.mrb[116].mxu0 }
 0x4a0   : > { %v3765_v63 = vpop.f32.mrb[117].mxu0  ;;  %p4481_p9 = por %p4480_p5, %p4479_p3 }
 0x4a1   : > { %v3413_v23 = vadd.f32 %v6966_v52, %v3374_v42  ;;  %v3375_v44 = vadd.f32 %v3311_v32, %v3192_v38  ;;  %v3876_v49 = vpop.f32.mrb[116].mxu1  ;;  %v3766_v7 = vadd.f32 %v3765_v63, %v3764_v35  ;;  %v3767_v3 = vpop.f32.mrb[118].mxu0 }
 0x4a2   : > { %v3877_v60 = vpop.f32.mrb[117].mxu1  ;;  %v3768_v51 = vpop.f32.mrb[119].mxu0  ;;  %p4482_p11 = pnand %p4481_p9, %p4475_p10 }
 0x4a3   : > { %3445 = vst [vmem:[%s6982_s6 + $0xc0] sm:$0xff] %v3413_v23  ;;  %v3414_v28 = vadd.f32 %v6966_v52, %v3375_v44  ;;  %v3878_v36 = vadd.f32 %v3877_v60, %v3876_v49  ;;  %v3879_v1 = vpop.f32.mrb[118].mxu1  ;;  %v3769_v17 = vadd.f32 %v3768_v51, %v3767_v3 }
 0x4a4   : > { %v3880_v19 = vpop.f32.mrb[119].mxu1 }
 0x4a5   : > { %3446 = vst [vmem:[%s6982_s6 + $0xc8] sm:$0xff] %v3414_v28  ;;  %v3197_v37 = vadd.f32 %v3878_v36, %v3766_v7  ;;  %v3881_v31 = vadd.f32 %v3880_v19, %v3879_v1 }
 0x4a7   : > { %v3376_v41 = vadd.f32 %v3312_v22, %v3197_v37  ;;  %v3200_v4 = vadd.f32 %v3881_v31, %v3769_v17  ;;  %v3770_v54 = vpop.f32.mrb[120].mxu0 }
 0x4a8   : > { %v3771_v59 = vpop.f32.mrb[121].mxu0 }
 0x4a9   : > { %v3415_v29 = vadd.f32 %v6966_v52, %v3376_v41  ;;  %v3377_v25 = vadd.f32 %v3313_v13, %v3200_v4  ;;  %v3882_v58 = vpop.f32.mrb[120].mxu1  ;;  %v3772_v48 = vadd.f32 %v3771_v59, %v3770_v54  ;;  %v3773_v34 = vpop.f32.mrb[122].mxu0 }
 0x4aa   : > { %v3883_v47 = vpop.f32.mrb[121].mxu1  ;;  %v3774_v27 = vpop.f32.mrb[123].mxu0 }
 0x4ab   : > { %3447 = vst [vmem:[%s6982_s6 + $0xd0] sm:$0xff] %v3415_v29  ;;  %v3416_v20 = vadd.f32 %v6966_v52, %v3377_v25  ;;  %v3884_v50 = vadd.f32 %v3883_v47, %v3882_v58  ;;  %v3885_v14 = vpop.f32.mrb[122].mxu1  ;;  %v3775_v10 = vadd.f32 %v3774_v27, %v3773_v34 }
 0x4ac   : > { %v3886_v5 = vpop.f32.mrb[123].mxu1 }
 0x4ad   : > { %3448 = vst [vmem:[%s6982_s6 + $0xd8] sm:$0xff] %v3416_v20  ;;  %v3205_v0 = vadd.f32 %v3884_v50, %v3772_v48  ;;  %v3887_v57 = vadd.f32 %v3886_v5, %v3885_v14 }
 0x4af   : > { %v3378_v33 = vadd.f32 %v3314_v46, %v3205_v0  ;;  %v3208_v30 = vadd.f32 %v3887_v57, %v3775_v10  ;;  %v3776_v12 = vpop.f32.mrb[124].mxu0 }
 0x4b0   : > { %v3777_v45 = vpop.f32.mrb[125].mxu0 }
 0x4b1   : > { %v3417_v8 = vadd.f32 %v6966_v52, %v3378_v33  ;;  %v3379_v6 = vadd.f32 %v3315_v55, %v3208_v30  ;;  %v3888_v26 = vpop.f32.mrb[124].mxu1  ;;  %v3778_v21 = vadd.f32 %v3777_v45, %v3776_v12  ;;  %v3779_v40 = vpop.f32.mrb[126].mxu0 }
 0x4b2   : > { %v3889_v9 = vpop.f32.mrb[125].mxu1  ;;  %v3780_v56 = vpop.f32.mrb[127].mxu0 }
 0x4b3   : > { %3449 = vst [vmem:[%s6982_s6 + $0xe0] sm:$0xff] %v3417_v8  ;;  %v3418_v53 = vadd.f32 %v6966_v52, %v3379_v6  ;;  %v3890_v16 = vadd.f32 %v3889_v9, %v3888_v26  ;;  %v3891_v61 = vpop.f32.mrb[126].mxu1  ;;  %v3781_v43 = vadd.f32 %v3780_v56, %v3779_v40 }
 0x4b4   : > { %v3892_v24 = vpop.f32.mrb[127].mxu1 }
 0x4b5   : > { %3450 = vst [vmem:[%s6982_s6 + $0xe8] sm:$0xff] %v3418_v53  ;;  %v3213_v39 = vadd.f32 %v3890_v16, %v3778_v21  ;;  %v3893_v15 = vadd.f32 %v3892_v24, %v3891_v61 }
 0x4b7   : > { %v3380_v18 = vadd.f32 %v3316_v62, %v3213_v39  ;;  %v3216_v11 = vadd.f32 %v3893_v15, %v3781_v43 }
 0x4b9   : > { %v3419_v32 = vadd.f32 %v6966_v52, %v3380_v18  ;;  %v3381_v42 = vadd.f32 %v3317_v2, %v3216_v11 }
 0x4bb   : > { %3451 = vst [vmem:[%s6982_s6 + $0xf0] sm:$0xff] %v3419_v32  ;;  %v3420_v38 = vadd.f32 %v6966_v52, %v3381_v42 }
 0x4bd   : > { %3452 = vst [vmem:[%s6982_s6 + $0xf8] sm:$0xff] %v3420_v38 }
 0x4be   : > { %4485 = shalt.err (!%p4482_p11)
}
 0x4bf   : > { %s4486_s26 = scalar_lea.hbm %s7075_s13, 4096  ;;  %s4490_s25 = scalar_lea.hbm %s7134_s5, 8192 }
 0x4c0   : > { %p4487_p0 = scmp.ne.s32.totalorder %s7075_s13, %s4486_s26  ;;  %p4491_p6 = scmp.lt.u32.totalorder %s7075_s13, %s7134_s5 }
 0x4c1   : > { %p4492_p7 = scmp.lt.u32.totalorder %s4490_s25, %s4486_s26  ;;  %p4494_p8 = scmp.lt.u32.totalorder %s4486_s26, %s7075_s13 }
 0x4c2   : > { %p4488_p4 = pnand %p4487_p0, %p7575_p12 }
 0x4c3   : > { %p4493_p2 = por %p4492_p7, %p4491_p6 }
 0x4c4   : > { %p4489_p13 = pneg %p4488_p4 }
 0x4c5   : > { %p4495_p1 = por %p4494_p8, %p4493_p2 }
 0x4c7   : > { %p4496_p10 = pnand %p4495_p1, %p4489_p13 }
 0x4c9   : > { %4499 = shalt.err (!%p4496_p10)
}
 0x4ca   : > { %s4571_s8 = smov 128   ;;  %s4572_s10 = smov 8  }
 0x4cb   : > { %3904 = dma.vmem_to_hbm [thread:$0]  (%p7575_p12), %s7077_s11, 4096, %s7075_s13, %s3454_s16, %s4571_s8, %s4571_s8, %s4572_s10  }
 0x4cc PF: > { %s3482_s21 = sand.u32 1, %s4538_s18   ;;  %p7576_p3 = scmp.ne.s32.totalorder %s7222_s29, 0 }
 0x4cd   : > { %p7577_p5 = scmp.ge.s32.totalorder %s4558_s23, 2  ;;  %s3483_s7 = scalar_lea.sflag [#allocation6], %s3482_s21 }
 0x4cf   : > { %p3918_p9 = pnand %p7577_p5, %p7576_p3 }
 0x4d1   : > { %4533 = dma.done.wait (!%p3918_p9), %s3483_s7, 4096  }
 0x4d2   : > { %4535 = vsyncadd (!%p3918_p9), %s3483_s7, 4294963200  ;;  %s22_s23 = sadd.s32 1, %s4558_s23   ;;  %s7578_s18 = smov %s4542_s19 }
 0x4d3   : > { %p19_p11 = scmp.ge.s32.totalorder %s22_s23, 4   ;;  %s7579_s19 = smov %s4546_s20 }
 0x4d4   : > { %s7580_s20 = smov %s4745_s17  ;;  %s7581_s21 = smov %s4554_s22 }
 0x4d5   : > { %s7582_s22 = smov %s7584_s12  ;;  %21 = sbr.rel (!%p19_p11) target bundleno = 7 (0x7), region = 106 }
 0x4dc   :  { %3488 = vsyncpa [#allocation5], 1 }
 0x4dd   :  { %3490 = vsyncpa [#allocation5 + $0x1], 1 }
 0x4de   :  { %3491 = vsyncpa [#allocation8], 1 }
 0x4df   :  { %3492 = vsyncpa [#allocation6], 1 }
 0x4e0   :  { %3494 = vsyncpa [#allocation6 + $0x1], 1 }

</bundles_post_ra>
